<compile_context>
chip_gen: v6e
topology: v6e:2x2x1
jax: 0.10.0
libtpu: 0.0.40
codegen_flags: <defaults>
</compile_context>

<pallas_src>
import functools

import jax
import jax.numpy as jnp
import numpy as np
from jax.experimental import pallas as pl
from jax.experimental.pallas import tpu as pltpu

CIN_PAD = 8      # conv1 input channels padded k -> 8
OUT_PAD = 128    # fc3 output lanes padded k*k -> 128 (lane-dense store)


def tnet_kernel(tb, n,
                x_ref,
                w1, t1,
                w2, t2,
                w3, t3,
                wf1, t4,
                wf2, t5,
                wf3, b3,
                out_ref):
    # x_ref: (TB, N, CIN_PAD) bf16 block; flatten to one (TB*N, CIN_PAD) slab so
    # the conv matmuls run with M = TB*N rows (free sublane concat).
    x = x_ref[...].reshape(tb * n, x_ref.shape[-1])

    def layer(a, w_ref, t_ref):
        # bf16 matmul, f32 accumulate; bias (BN shift) add + ReLU in f32.
        h = jnp.dot(a, w_ref[...], preferred_element_type=jnp.float32)
        return jnp.maximum(h + t_ref[...], 0.0)

    h = layer(x, w1, t1)                                    # (TB*N, 64)
    h = layer(h.astype(jnp.bfloat16), w2, t2)               # (TB*N, 128)
    h = layer(h.astype(jnp.bfloat16), w3, t3)               # (TB*N, 1024)

    # MaxPool1d over the N points of each batch element (static slices, tb tiny).
    pool = jnp.concatenate(
        [jnp.max(h[b * n:(b + 1) * n, :], axis=0, keepdims=True)
         for b in range(tb)],
        axis=0)                                             # (TB, 1024)

    # FC stack runs once per grid step with M = TB.
    f = layer(pool.astype(jnp.bfloat16), wf1, t4)           # (TB, 512)
    f = layer(f.astype(jnp.bfloat16), wf2, t5)              # (TB, 256)

    # fc3; b3 already contains the flattened identity and is zero-padded to OUT_PAD.
    o = jnp.dot(f.astype(jnp.bfloat16), wf3[...],
                preferred_element_type=jnp.float32) + b3[...]   # (TB, OUT_PAD)
    out_ref[0] = o


def tnet_forward(x_nkw, params, k, tb=None):
    """x_nkw: (B, K, N) float32 (PyTorch NCW layout). Returns (B, k, k) f32."""
    B, K, N = x_nkw.shape
    assert K == k
    if tb is None:
        tb = 2 if B % 2 == 0 else 1          # TB=2 fills the 256-row MXU (v6e/v7x)
    assert B % tb == 0
    nblocks = B // tb

    # NCW -> NWC, pad channels to CIN_PAD, cast matmul input to bf16.
    x = jnp.transpose(x_nkw, (0, 2, 1))                                 # (B, N, K)
    xp = jnp.zeros((B, N, CIN_PAD), jnp.float32).at[..., :K].set(x)
    xp = xp.astype(jnp.bfloat16)

    def full_spec(a):
        nd = a.ndim
        return pl.BlockSpec(a.shape, lambda b, nd=nd: (0,) * nd)

    # NOTE: weights have constant index_maps so they are DMA'd once and stay
    # resident in VMEM across the (parallel) batch grid.
    in_specs = [pl.BlockSpec((tb, N, CIN_PAD), lambda b: (b, 0, 0))] + \
               [full_spec(p) for p in params]

    out = pl.pallas_call(
        functools.partial(tnet_kernel, tb, N),
        out_shape=jax.ShapeDtypeStruct((nblocks, tb, OUT_PAD), jnp.float32),
        grid_spec=pltpu.PrefetchScalarGridSpec(
            num_scalar_prefetch=0,
            grid=(nblocks,),
            in_specs=in_specs,
            out_specs=pl.BlockSpec((1, tb, OUT_PAD), lambda b: (b, 0, 0)),
        ),
        compiler_params=pltpu.CompilerParams(
            dimension_semantics=("parallel",)),
    )(xp, *params)

    # Un-pad the output lanes and reshape to (B, k, k).
    return out.reshape(B, OUT_PAD)[:, :k * k].reshape(B, k, k)


def init_params(key, k):
    """Deterministic synthetic parameters with eval-mode BN folded:
    each conv/fc layer (except fc3) is stored as (W' = W*scale in bf16,
    shift t in f32[1, cout]).  fc3 is stored padded to OUT_PAD lanes with the
    flattened identity folded into its bias."""
    eps = 1e-5

    def make_layer(key, cin, cout):
        kw, kb, kg, kbe, km, kv = jax.random.split(key, 6)
        W = 0.05 * jax.random.normal(kw, (cin, cout), jnp.float32)
        b = 0.05 * jax.random.normal(kb, (cout,), jnp.float32)
        gamma = 1.0 + 0.1 * jax.random.normal(kg, (cout,), jnp.float32)
        beta = 0.1 * jax.random.normal(kbe, (cout,), jnp.float32)
        mean = 0.1 * jax.random.normal(km, (cout,), jnp.float32)
        var = jnp.abs(jax.random.normal(kv, (cout,), jnp.float32)) + 0.5
        s = gamma / jnp.sqrt(var + eps)
        t = (b - mean) * s + beta
        # Fold the BN scale into the weight columns: relu((x@W)*s + t) == relu(x@(W*s) + t)
        Wf = (W * s[None, :]).astype(jnp.bfloat16)
        return Wf, t.reshape(1, cout)

    keys = jax.random.split(key, 6)
    p = []
    W1, t1 = make_layer(keys[0], k, 64)
    # Pad conv1 input channels k -> CIN_PAD (extra rows are zero; x is zero-padded too).
    W1 = jnp.zeros((CIN_PAD, 64), jnp.bfloat16).at[:k].set(W1)
    p += [W1, t1]
    p += list(make_layer(keys[1], 64, 128))     # conv2 + bn2
    p += list(make_layer(keys[2], 128, 1024))   # conv3 + bn3
    p += list(make_layer(keys[3], 1024, 512))   # fc1  + bn4
    p += list(make_layer(keys[4], 512, 256))    # fc2  + bn5

    kw, kb = jax.random.split(keys[5])
    Wf3 = 0.05 * jax.random.normal(kw, (256, k * k), jnp.float32)
    bf3 = 0.05 * jax.random.normal(kb, (k * k,), jnp.float32)
    eye_flat = jnp.eye(k, dtype=jnp.float32).reshape(k * k)
    # Fold identity into bias; pad output lanes k*k -> OUT_PAD.
    Wf3p = jnp.zeros((256, OUT_PAD), jnp.bfloat16).at[:, :k * k].set(
        Wf3.astype(jnp.bfloat16))
    b3p = jnp.zeros((1, OUT_PAD), jnp.float32).at[0, :k * k].set(bf3 + eye_flat)
    p += [Wf3p, b3p]
    return tuple(p)


def tnet_reference(x_nkw, params, k):
    """Plain-JAX reference of the same (bf16-weight, f32-accumulate) math."""
    (W1, t1, W2, t2, W3, t3, Wf1, t4, Wf2, t5, Wf3, b3) = params
    B, K, N = x_nkw.shape
    x = jnp.transpose(x_nkw, (0, 2, 1))                                 # (B, N, K)
    xp = jnp.zeros((B, N, CIN_PAD), jnp.float32).at[..., :K].set(x)
    xp = xp.astype(jnp.bfloat16)

    def layer(a, W, t):
        h = jnp.dot(a.astype(jnp.bfloat16), W,
                    preferred_element_type=jnp.float32)
        return jax.nn.relu(h + t)

    h = layer(xp, W1, t1)
    h = layer(h, W2, t2)
    h = layer(h, W3, t3)
    pool = jnp.max(h, axis=1)                                           # (B, 1024)
    f = layer(pool, Wf1, t4)
    f = layer(f, Wf2, t5)
    o = jnp.dot(f.astype(jnp.bfloat16), Wf3,
                preferred_element_type=jnp.float32) + b3
    return o[:, :k * k].reshape(B, k, k)


if __name__ == "__main__":
    key = jax.random.PRNGKey(0)
    k_dim = 3          # Tnet(k=3)
    B, N = 4, 128      # batch, number of points (small)

    kx, kp = jax.random.split(key)
    x = jax.random.normal(kx, (B, k_dim, N), jnp.float32)   # PyTorch (B, C=k, N)
    params = init_params(kp, k_dim)

    out = tnet_forward(x, params, k_dim)
    out = jax.block_until_ready(out)

    ref = tnet_reference(x, params, k_dim)
    np.testing.assert_allclose(np.asarray(out), np.asarray(ref),
                               rtol=2e-3, atol=2e-3)
    assert out.shape == (B, k_dim, k_dim)
    print("KERNEL_OK")
</pallas_src>

<mosaic_0001>
module attributes {stable_mosaic.version = 11 : i64} {
  func.func @tnet_kernel(%arg0: i32, %arg1: memref<2x128x8xbf16, #tpu.memory_space<vmem>>, %arg2: memref<8x64xbf16, #tpu.memory_space<vmem>>, %arg3: memref<1x64xf32, #tpu.memory_space<vmem>>, %arg4: memref<64x128xbf16, #tpu.memory_space<vmem>>, %arg5: memref<1x128xf32, #tpu.memory_space<vmem>>, %arg6: memref<128x1024xbf16, #tpu.memory_space<vmem>>, %arg7: memref<1x1024xf32, #tpu.memory_space<vmem>>, %arg8: memref<1024x512xbf16, #tpu.memory_space<vmem>>, %arg9: memref<1x512xf32, #tpu.memory_space<vmem>>, %arg10: memref<512x256xbf16, #tpu.memory_space<vmem>>, %arg11: memref<1x256xf32, #tpu.memory_space<vmem>>, %arg12: memref<256x128xbf16, #tpu.memory_space<vmem>>, %arg13: memref<1x128xf32, #tpu.memory_space<vmem>>, %arg14: memref<1x2x128xf32, #tpu.memory_space<vmem>>) attributes {dimension_semantics = [#tpu.dimension_semantics<parallel>], iteration_bounds = array<i64: 2>, scalar_prefetch = 0 : i64, scratch_operands = 0 : i64, tpu.core_type = #tpu.core_type<tc>, window_params = [{transform_indices = @transform_0, window_bounds = array<i64: 2, 128, 8>}, {pipeline_mode = #tpu.pipeline_mode<synchronous>, transform_indices = @transform_1, window_bounds = array<i64: 8, 64>}, {pipeline_mode = #tpu.pipeline_mode<synchronous>, transform_indices = @transform_2, window_bounds = array<i64: 1, 64>}, {pipeline_mode = #tpu.pipeline_mode<synchronous>, transform_indices = @transform_3, window_bounds = array<i64: 64, 128>}, {pipeline_mode = #tpu.pipeline_mode<synchronous>, transform_indices = @transform_4, window_bounds = array<i64: 1, 128>}, {pipeline_mode = #tpu.pipeline_mode<synchronous>, transform_indices = @transform_5, window_bounds = array<i64: 128, 1024>}, {pipeline_mode = #tpu.pipeline_mode<synchronous>, transform_indices = @transform_6, window_bounds = array<i64: 1, 1024>}, {pipeline_mode = #tpu.pipeline_mode<synchronous>, transform_indices = @transform_7, window_bounds = array<i64: 1024, 512>}, {pipeline_mode = #tpu.pipeline_mode<synchronous>, transform_indices = @transform_8, window_bounds = array<i64: 1, 512>}, {pipeline_mode = #tpu.pipeline_mode<synchronous>, transform_indices = @transform_9, window_bounds = array<i64: 512, 256>}, {pipeline_mode = #tpu.pipeline_mode<synchronous>, transform_indices = @transform_10, window_bounds = array<i64: 1, 256>}, {pipeline_mode = #tpu.pipeline_mode<synchronous>, transform_indices = @transform_11, window_bounds = array<i64: 256, 128>}, {pipeline_mode = #tpu.pipeline_mode<synchronous>, transform_indices = @transform_12, window_bounds = array<i64: 1, 128>}, {transform_indices = @transform_13, window_bounds = array<i64: 1, 2, 128>}]} {
    %c0 = arith.constant 0 : index
    %c0_0 = arith.constant 0 : index
    %c0_1 = arith.constant 0 : index
    %0 = vector.load %arg1[%c0, %c0_0, %c0_1] : memref<2x128x8xbf16, #tpu.memory_space<vmem>>, vector<2x128x8xbf16>
    %1 = vector.shape_cast %0 : vector<2x128x8xbf16> to vector<256x8xbf16>
    %c0_2 = arith.constant 0 : index
    %c0_3 = arith.constant 0 : index
    %2 = vector.load %arg2[%c0_2, %c0_3] : memref<8x64xbf16, #tpu.memory_space<vmem>>, vector<8x64xbf16>
    %cst = arith.constant dense<0.000000e+00> : vector<256x64xf32>
    %3 = tpu.matmul %1, %2, %cst {dimension_numbers = #tpu.dot_dimension_numbers<[1], [0], [0], [1], [0, 0, 1, 1], [], []>} : vector<256x8xbf16>, vector<8x64xbf16>, vector<256x64xf32> -> vector<256x64xf32>
    %c0_4 = arith.constant 0 : index
    %c0_5 = arith.constant 0 : index
    %4 = vector.load %arg3[%c0_4, %c0_5] : memref<1x64xf32, #tpu.memory_space<vmem>>, vector<1x64xf32>
    %5 = vector.broadcast %4 : vector<1x64xf32> to vector<256x64xf32>
    %6 = arith.addf %3, %5 : vector<256x64xf32>
    %cst_6 = arith.constant 0.000000e+00 : f32
    %7 = vector.broadcast %cst_6 : f32 to vector<256x64xf32>
    %8 = arith.maximumf %6, %7 : vector<256x64xf32>
    %9 = arith.truncf %8 : vector<256x64xf32> to vector<256x64xbf16>
    %c0_7 = arith.constant 0 : index
    %c0_8 = arith.constant 0 : index
    %10 = vector.load %arg4[%c0_7, %c0_8] : memref<64x128xbf16, #tpu.memory_space<vmem>>, vector<64x128xbf16>
    %cst_9 = arith.constant dense<0.000000e+00> : vector<256x128xf32>
    %11 = tpu.matmul %9, %10, %cst_9 {dimension_numbers = #tpu.dot_dimension_numbers<[1], [0], [0], [1], [0, 0, 1, 1], [], []>} : vector<256x64xbf16>, vector<64x128xbf16>, vector<256x128xf32> -> vector<256x128xf32>
    %c0_10 = arith.constant 0 : index
    %c0_11 = arith.constant 0 : index
    %12 = vector.load %arg5[%c0_10, %c0_11] : memref<1x128xf32, #tpu.memory_space<vmem>>, vector<1x128xf32>
    %13 = vector.broadcast %12 : vector<1x128xf32> to vector<256x128xf32>
    %14 = arith.addf %11, %13 : vector<256x128xf32>
    %cst_12 = arith.constant 0.000000e+00 : f32
    %15 = vector.broadcast %cst_12 : f32 to vector<256x128xf32>
    %16 = arith.maximumf %14, %15 : vector<256x128xf32>
    %17 = arith.truncf %16 : vector<256x128xf32> to vector<256x128xbf16>
    %c0_13 = arith.constant 0 : index
    %c0_14 = arith.constant 0 : index
    %18 = vector.load %arg6[%c0_13, %c0_14] : memref<128x1024xbf16, #tpu.memory_space<vmem>>, vector<128x1024xbf16>
    %cst_15 = arith.constant dense<0.000000e+00> : vector<256x1024xf32>
    %19 = tpu.matmul %17, %18, %cst_15 {dimension_numbers = #tpu.dot_dimension_numbers<[1], [0], [0], [1], [0, 0, 1, 1], [], []>} : vector<256x128xbf16>, vector<128x1024xbf16>, vector<256x1024xf32> -> vector<256x1024xf32>
    %c0_16 = arith.constant 0 : index
    %c0_17 = arith.constant 0 : index
    %20 = vector.load %arg7[%c0_16, %c0_17] : memref<1x1024xf32, #tpu.memory_space<vmem>>, vector<1x1024xf32>
    %21 = vector.broadcast %20 : vector<1x1024xf32> to vector<256x1024xf32>
    %22 = arith.addf %19, %21 : vector<256x1024xf32>
    %cst_18 = arith.constant 0.000000e+00 : f32
    %23 = vector.broadcast %cst_18 : f32 to vector<256x1024xf32>
    %24 = arith.maximumf %22, %23 : vector<256x1024xf32>
    %25 = vector.extract_strided_slice %24 {offsets = [0, 0], sizes = [128, 1024], strides = [1, 1]} : vector<256x1024xf32> to vector<128x1024xf32>
    %cst_19 = arith.constant dense<0xFF800000> : vector<1024xf32>
    %26 = vector.multi_reduction <maximumf>, %25, %cst_19 [0] : vector<128x1024xf32> to vector<1024xf32>
    %27 = vector.shape_cast %26 : vector<1024xf32> to vector<1x1024xf32>
    %28 = vector.extract_strided_slice %24 {offsets = [128, 0], sizes = [128, 1024], strides = [1, 1]} : vector<256x1024xf32> to vector<128x1024xf32>
    %cst_20 = arith.constant dense<0xFF800000> : vector<1024xf32>
    %29 = vector.multi_reduction <maximumf>, %28, %cst_20 [0] : vector<128x1024xf32> to vector<1024xf32>
    %30 = vector.shape_cast %29 : vector<1024xf32> to vector<1x1024xf32>
    %31 = tpu.concatenate %27, %30 in 0 : vector<1x1024xf32>, vector<1x1024xf32> -> vector<2x1024xf32>
    %32 = arith.truncf %31 : vector<2x1024xf32> to vector<2x1024xbf16>
    %c0_21 = arith.constant 0 : index
    %c0_22 = arith.constant 0 : index
    %33 = vector.load %arg8[%c0_21, %c0_22] : memref<1024x512xbf16, #tpu.memory_space<vmem>>, vector<1024x512xbf16>
    %cst_23 = arith.constant dense<0.000000e+00> : vector<2x512xf32>
    %34 = tpu.matmul %32, %33, %cst_23 {dimension_numbers = #tpu.dot_dimension_numbers<[1], [0], [0], [1], [0, 0, 1, 1], [], []>} : vector<2x1024xbf16>, vector<1024x512xbf16>, vector<2x512xf32> -> vector<2x512xf32>
    %c0_24 = arith.constant 0 : index
    %c0_25 = arith.constant 0 : index
    %35 = vector.load %arg9[%c0_24, %c0_25] : memref<1x512xf32, #tpu.memory_space<vmem>>, vector<1x512xf32>
    %36 = vector.broadcast %35 : vector<1x512xf32> to vector<2x512xf32>
    %37 = arith.addf %34, %36 : vector<2x512xf32>
    %cst_26 = arith.constant 0.000000e+00 : f32
    %38 = vector.broadcast %cst_26 : f32 to vector<2x512xf32>
    %39 = arith.maximumf %37, %38 : vector<2x512xf32>
    %40 = arith.truncf %39 : vector<2x512xf32> to vector<2x512xbf16>
    %c0_27 = arith.constant 0 : index
    %c0_28 = arith.constant 0 : index
    %41 = vector.load %arg10[%c0_27, %c0_28] : memref<512x256xbf16, #tpu.memory_space<vmem>>, vector<512x256xbf16>
    %cst_29 = arith.constant dense<0.000000e+00> : vector<2x256xf32>
    %42 = tpu.matmul %40, %41, %cst_29 {dimension_numbers = #tpu.dot_dimension_numbers<[1], [0], [0], [1], [0, 0, 1, 1], [], []>} : vector<2x512xbf16>, vector<512x256xbf16>, vector<2x256xf32> -> vector<2x256xf32>
    %c0_30 = arith.constant 0 : index
    %c0_31 = arith.constant 0 : index
    %43 = vector.load %arg11[%c0_30, %c0_31] : memref<1x256xf32, #tpu.memory_space<vmem>>, vector<1x256xf32>
    %44 = vector.broadcast %43 : vector<1x256xf32> to vector<2x256xf32>
    %45 = arith.addf %42, %44 : vector<2x256xf32>
    %cst_32 = arith.constant 0.000000e+00 : f32
    %46 = vector.broadcast %cst_32 : f32 to vector<2x256xf32>
    %47 = arith.maximumf %45, %46 : vector<2x256xf32>
    %48 = arith.truncf %47 : vector<2x256xf32> to vector<2x256xbf16>
    %c0_33 = arith.constant 0 : index
    %c0_34 = arith.constant 0 : index
    %49 = vector.load %arg12[%c0_33, %c0_34] : memref<256x128xbf16, #tpu.memory_space<vmem>>, vector<256x128xbf16>
    %cst_35 = arith.constant dense<0.000000e+00> : vector<2x128xf32>
    %50 = tpu.matmul %48, %49, %cst_35 {dimension_numbers = #tpu.dot_dimension_numbers<[1], [0], [0], [1], [0, 0, 1, 1], [], []>} : vector<2x256xbf16>, vector<256x128xbf16>, vector<2x128xf32> -> vector<2x128xf32>
    %c0_36 = arith.constant 0 : index
    %c0_37 = arith.constant 0 : index
    %51 = vector.load %arg13[%c0_36, %c0_37] : memref<1x128xf32, #tpu.memory_space<vmem>>, vector<1x128xf32>
    %52 = vector.broadcast %51 : vector<1x128xf32> to vector<2x128xf32>
    %53 = arith.addf %50, %52 : vector<2x128xf32>
    %c0_38 = arith.constant 0 : index
    %c0_39 = arith.constant 0 : index
    %c0_40 = arith.constant 0 : index
    %54 = vector.load %arg14[%c0_38, %c0_39, %c0_40] : memref<1x2x128xf32, #tpu.memory_space<vmem>>, vector<1x2x128xf32>
    %55 = vector.shape_cast %54 : vector<1x2x128xf32> to vector<2x128xf32>
    %56 = vector.shape_cast %53 : vector<2x128xf32> to vector<1x2x128xf32>
    tpu.vector_store %arg14[%c0_38, %c0_39, %c0_40], %56 {strides = array<i32>} : memref<1x2x128xf32, #tpu.memory_space<vmem>>, vector<1x2x128xf32>,
    return
  }
  func.func @transform_0(%arg0: i32) -> (i32, i32, i32) {
    %c0_i32 = arith.constant 0 : i32
    %c0_i32_0 = arith.constant 0 : i32
    %c0_i32_1 = arith.constant 0 : i32
    return %arg0, %c0_i32, %c0_i32_0 : i32, i32, i32
  }
  func.func @transform_1(%arg0: i32) -> (i32, i32) {
    %c0_i32 = arith.constant 0 : i32
    %c0_i32_0 = arith.constant 0 : i32
    %c0_i32_1 = arith.constant 0 : i32
    return %c0_i32, %c0_i32_0 : i32, i32
  }
  func.func @transform_2(%arg0: i32) -> (i32, i32) {
    %c0_i32 = arith.constant 0 : i32
    %c0_i32_0 = arith.constant 0 : i32
    %c0_i32_1 = arith.constant 0 : i32
    return %c0_i32, %c0_i32_0 : i32, i32
  }
  func.func @transform_3(%arg0: i32) -> (i32, i32) {
    %c0_i32 = arith.constant 0 : i32
    %c0_i32_0 = arith.constant 0 : i32
    %c0_i32_1 = arith.constant 0 : i32
    return %c0_i32, %c0_i32_0 : i32, i32
  }
  func.func @transform_4(%arg0: i32) -> (i32, i32) {
    %c0_i32 = arith.constant 0 : i32
    %c0_i32_0 = arith.constant 0 : i32
    %c0_i32_1 = arith.constant 0 : i32
    return %c0_i32, %c0_i32_0 : i32, i32
  }
  func.func @transform_5(%arg0: i32) -> (i32, i32) {
    %c0_i32 = arith.constant 0 : i32
    %c0_i32_0 = arith.constant 0 : i32
    %c0_i32_1 = arith.constant 0 : i32
    return %c0_i32, %c0_i32_0 : i32, i32
  }
  func.func @transform_6(%arg0: i32) -> (i32, i32) {
    %c0_i32 = arith.constant 0 : i32
    %c0_i32_0 = arith.constant 0 : i32
    %c0_i32_1 = arith.constant 0 : i32
    return %c0_i32, %c0_i32_0 : i32, i32
  }
  func.func @transform_7(%arg0: i32) -> (i32, i32) {
    %c0_i32 = arith.constant 0 : i32
    %c0_i32_0 = arith.constant 0 : i32
    %c0_i32_1 = arith.constant 0 : i32
    return %c0_i32, %c0_i32_0 : i32, i32
  }
  func.func @transform_8(%arg0: i32) -> (i32, i32) {
    %c0_i32 = arith.constant 0 : i32
    %c0_i32_0 = arith.constant 0 : i32
    %c0_i32_1 = arith.constant 0 : i32
    return %c0_i32, %c0_i32_0 : i32, i32
  }
  func.func @transform_9(%arg0: i32) -> (i32, i32) {
    %c0_i32 = arith.constant 0 : i32
    %c0_i32_0 = arith.constant 0 : i32
    %c0_i32_1 = arith.constant 0 : i32
    return %c0_i32, %c0_i32_0 : i32, i32
  }
  func.func @transform_10(%arg0: i32) -> (i32, i32) {
    %c0_i32 = arith.constant 0 : i32
    %c0_i32_0 = arith.constant 0 : i32
    %c0_i32_1 = arith.constant 0 : i32
    return %c0_i32, %c0_i32_0 : i32, i32
  }
  func.func @transform_11(%arg0: i32) -> (i32, i32) {
    %c0_i32 = arith.constant 0 : i32
    %c0_i32_0 = arith.constant 0 : i32
    %c0_i32_1 = arith.constant 0 : i32
    return %c0_i32, %c0_i32_0 : i32, i32
  }
  func.func @transform_12(%arg0: i32) -> (i32, i32) {
    %c0_i32 = arith.constant 0 : i32
    %c0_i32_0 = arith.constant 0 : i32
    %c0_i32_1 = arith.constant 0 : i32
    return %c0_i32, %c0_i32_0 : i32, i32
  }
  func.func @transform_13(%arg0: i32) -> (i32, i32, i32) {
    %c0_i32 = arith.constant 0 : i32
    %c0_i32_0 = arith.constant 0 : i32
    %c0_i32_1 = arith.constant 0 : i32
    return %arg0, %c0_i32, %c0_i32_0 : i32, i32, i32
  }
}

</mosaic_0001>

<bundles_post_ra>
// kernel: tpu_custom_call.1
= control target key start
LH: loop header
LB: loop body
LE: loop exit
PB: predicated region body
PF: predicated region fallthrough
CT: control target
= control target key end

     0   :  { %18 = vsyncpa [#allocation3], 0  ;;  %s8048_s0 = inlined_call_operand.vmem [shape: bf16[4,128,8], index: 0, kind: input, shape index: {}]   ;;  %s8049_s1 = inlined_call_operand.vmem [shape: bf16[8,64], index: 1, kind: input, shape index: {}]   ;;  %s8050_s2 = inlined_call_operand.vmem [shape: f32[1,64], index: 2, kind: input, shape index: {}]   ;;  %s8051_s3 = inlined_call_operand.vmem [shape: bf16[64,128], index: 3, kind: input, shape index: {}]   ;;  %s8052_s4 = inlined_call_operand.vmem [shape: f32[1,128], index: 4, kind: input, shape index: {}]   ;;  %s8053_s5 = inlined_call_operand.hbm [shape: bf16[128,1024], index: 5, kind: input, shape index: {}]   ;;  %s8054_s6 = inlined_call_operand.vmem [shape: f32[1,1024], index: 6, kind: input, shape index: {}]   ;;  %s8055_s7 = inlined_call_operand.hbm [shape: bf16[1024,512], index: 7, kind: input, shape index: {}]   ;;  %s8056_s8 = inlined_call_operand.vmem [shape: f32[1,512], index: 8, kind: input, shape index: {}]   ;;  %s8057_s9 = inlined_call_operand.hbm [shape: bf16[512,256], index: 9, kind: input, shape index: {}]   ;;  %s8058_s10 = inlined_call_operand.vmem [shape: f32[1,256], index: 10, kind: input, shape index: {}]   ;;  %s8059_s11 = inlined_call_operand.vmem [shape: bf16[256,128], index: 11, kind: input, shape index: {}]   ;;  %s8060_s12 = inlined_call_operand.vmem [shape: f32[1,128], index: 12, kind: input, shape index: {}]   ;;  %s8061_s13 = inlined_call_operand.hbm [shape: f32[2,2,128], index: 13, kind: output, shape index: {}]  }
   0x1   :  { %19 = vsyncpa [#allocation6], 0 }
   0x2   :  { %20 = vsyncpa [#allocation4], 0 }
   0x3   :  { %22 = vsyncpa [#allocation4 + $0x1], 0  ;;  %s7064_s25 = smov 0   ;;  %s7066_s26 = smov 0  }
   0x4   :  { %s7068_s27 = smov 0   ;;  %s7070_s28 = smov 0  }
   0x5 LB: > { %8068 = sst [smem:[#allocation12_spill]] %s6969_s25  ;;  %s7085_s29 = sadd.s32 4294967295, %s6981_s28   ;;  %s6981_s28 = sphi %s7070_s28, %s8084_s28   ;;  %s6977_s27 = sphi %s7068_s27, %s8086_s27   ;;  %s6973_s26 = sphi %s7066_s26, %s8088_s26   ;;  %s6969_s25 = sphi %s7064_s25, %s8087_s25  }
   0x6   : > { %8069 = sst [smem:[#allocation13_spill]] %s6977_s27  ;;  %s5631_s30 = sadd.s32 4294967294, %s6981_s28  }
   0x7   : > { %s7089_s14 = sadd.s32 1, %s6981_s28   ;;  %s313_s15 = sadd.s32 1, %s6977_s27 }
   0x8   : > { %8070 = sst [smem:[#allocation14_spill]] %s7089_s14  ;;  %s310_s16 = ssub.s32 %s6981_s28, %s7089_s14 }
   0x9   : > { %p323_p0 = scmp.ne.s32.totalorder %s6977_s27, %s6973_s26  ;;  %p311_p1 = scmp.eq.s32.totalorder %s310_s16, 0 }
   0xa   : > { %p324_p2 = scmp.eq.s32.totalorder %s7085_s29, 1  ;;  %p329_p3 = scmp.ne.s32.totalorder %s6973_s26, %s6969_s25 }
   0xb   : > { %p330_p4 = scmp.eq.s32.totalorder %s5631_s30, 1  ;;  %p5632_p7 = scmp.ge.s32.totalorder %s6981_s28, 1 }
   0xc   : > { %s7100_s17 = scalar_select %p311_p1, %s6977_s27, %s313_s15  }
   0xd   : > { %p7102_p5 = por %p324_p2, %p323_p0  ;;  %p7106_p6 = por %p330_p4, %p329_p3 }
   0xe   : > { %8071 = sst [smem:[#allocation15_spill]] %s7100_s17  ;;  %p337_p8 = scmp.lt.s32.totalorder %s6981_s28, 3 }
   0xf   : > { %s8073_s19 = scalar_select %p7106_p6, 1, 0 }
  0x10   : > { %p8063_p9 = scmp.eq.s32.totalorder %s7085_s29, 0  ;;  %p7113_p10 = pnand %p5632_p7, %p337_p8 }
  0x11   : > { %8074 = sst [smem:[#allocation16_spill]] %s8073_s19  ;;  %s6983_s21 = smov [#allocation5]  }
  0x12   : > { %s377_s22 = sshll.u32 %s6983_s21, 4  ;;  %p6256_p11 = pneg %p7113_p10  ;;  %s378_s22 = int_to_ptr.vmem [resolvable:$true] %s377_s22 }
  0x13   : > { %s6984_s24 = smov [#allocation2]   ;;  %s6846_s15 = scalar_lea.vmem %s378_s22, 32768 }
  0x14   : > { %p7121_p12 = pnand %p8063_p9, %p6256_p11  ;;  %s361_s30 = sshll.u32 %s6984_s24, 4  ;;  %s362_s30 = int_to_ptr.vmem [resolvable:$true] %s361_s30 }
  0x15   : > { %p6847_p0 = scmp.ne.s32.totalorder %s378_s22, %s6846_s15  ;;  %p6854_p3 = scmp.lt.s32.totalorder %s378_s22, %s378_s22 }
  0x16   : > { %p6837_p13 = pneg %p7121_p12  ;;  %p6855_p4 = scmp.lt.s32.totalorder %s6846_s15, %s6846_s15 }
  0x18   : > { %p6849_p1 = pnand %p6847_p0, %p6837_p13  ;;  %p6856_p7 = por %p6855_p4, %p6854_p3 }
  0x1a   : > { %p6850_p2 = pneg %p6849_p1 }
  0x1c   : > { %p6857_p8 = pnand %p6856_p7, %p6850_p2 }
  0x1e   : > { %6860 = shalt.err (!%p6857_p8)
}
  0x1f   : > { %s6985_s16 = smov 256   ;;  %s6986_s21 = smov 16  }
  0x20   : > { %6262 = dma.hbm_to_vmem [thread:$0]  (!%p7121_p12), %s8055_s7, 32768, %s378_s22, [#allocation6], %s6985_s16, %s6985_s16, %s6986_s21  }
  0x21   : > { %s6872_s27 = scalar_lea.vmem %s362_s30, 8192  ;;  %p6880_p9 = scmp.lt.s32.totalorder %s362_s30, %s362_s30 }
  0x22   : > { %p6873_p11 = scmp.ne.s32.totalorder %s362_s30, %s6872_s27  ;;  %p6881_p6 = scmp.lt.s32.totalorder %s6872_s27, %s6872_s27 }
  0x24   : > { %p6875_p0 = pnand %p6873_p11, %p6837_p13  ;;  %p6882_p3 = por %p6881_p6, %p6880_p9 }
  0x26   : > { %p6876_p1 = pneg %p6875_p0 }
  0x28   : > { %p6883_p2 = pnand %p6882_p3, %p6876_p1 }
  0x2a   : > { %6886 = shalt.err (!%p6883_p2)
}
  0x2b   : > { %s6987_s15 = smov 512   ;;  %s6988_s14 = smov 32  }
  0x2c   : > { %6259 = dma.hbm_to_vmem [thread:$0]  (!%p7121_p12), %s8053_s5, 8192, %s362_s30, [#allocation3], %s6987_s15, %s6987_s15, %s6988_s14  }
  0x2d   : > { %s6989_s17 = smov [#allocation7]  }
  0x2e   : > { %s393_s22 = sshll.u32 %s6989_s17, 4  ;;  %s394_s22 = int_to_ptr.vmem [resolvable:$true] %s393_s22 }
  0x2f   : > { %s6898_s16 = scalar_lea.vmem %s394_s22, 8192  ;;  %p6906_p9 = scmp.lt.s32.totalorder %s394_s22, %s394_s22 }
  0x30   : > { %p6899_p4 = scmp.ne.s32.totalorder %s394_s22, %s6898_s16  ;;  %p6907_p8 = scmp.lt.s32.totalorder %s6898_s16, %s6898_s16 }
  0x32   : > { %p6901_p7 = pnand %p6899_p4, %p6837_p13  ;;  %p6908_p11 = por %p6907_p8, %p6906_p9 }
  0x34   : > { %p6902_p6 = pneg %p6901_p7 }
  0x36   : > { %p6909_p0 = pnand %p6908_p11, %p6902_p6 }
  0x38   : > { %6912 = shalt.err (!%p6909_p0)
}
  0x39   : > { %s6990_s27 = smov 128   ;;  %s6991_s21 = smov 8  }
  0x3a   : > { %6265 = dma.hbm_to_vmem [thread:$0]  (!%p7121_p12), %s8057_s9, 8192, %s394_s22, [#allocation6], %s6990_s27, %s6990_s27, %s6991_s21  }
  0x3b   : > { %428 = sbr.rel (%p7113_p10) target bundleno = 1702 (0x6a6), region = 72  ;;  %p8077_p1 = scmp.eq.s32.totalorder (!%p7113_p10), %s7085_s29, 0 }
  0x40   : > { %6956 = dma.done.wait (%p8077_p1), [#allocation3], 8192   ;;  %p8078_p13 = pmov %p8077_p1 }
  0x41   : > { %p8079_p3 = pmov %p8077_p1 }
  0x42   : > { %6958 = vsyncadd (%p8078_p13), [#allocation3], 4294959104 }
  0x43   : > { %6960 = dma.done.wait (%p8079_p3), [#allocation6], 40960   ;;  %p8080_p2 = pmov %p8077_p1 }
  0x44   : > { %s5642_s19 = sshll.u32 %s7085_s29, 1  ;;  %vm658_vm0 = vcmask 1043456   ;;  %vm609_vm1 = vcmask 64512   ;;  %v521_v0 = vld [vmem:[%s8049_s1] sm:$0xf]  ;;  %v6335_v12 = vld [vmem:[%s8051_s3 + $0x18] sm:$0xff]  }
  0x45   : > { %6962 = vsyncadd (%p8080_p2), [#allocation6], 4294926336  ;;  %p482_p4 = scmp.lt.s32.totalorder %s5642_s19, 3  ;;  %6240 = vmatprep.subr.msk.bf16.mxu0 %vm658_vm0, %v521_v0  ;;  %v660_v1 = vsel %vm658_vm0, %v521_v0, 0  ;;  %6241 = vmatprep.subr.msk.bf16.mxu1 %vm658_vm0, %v521_v0  ;;  %v6336_v19 = vld [vmem:[%s8051_s3 + $0x10] sm:$0xff]   ;;  %v6337_v20 = vld [vmem:[%s8051_s3 + $0x8] sm:$0xff]  }
  0x46   : > { %6165 = vmatpush3.bf16.msra.mxu0 %v660_v1  ;;  %6239 = vmatpush3.bf16.msra.mxu1 %v660_v1  ;;  %v6338_v21 = vld [vmem:[%s8051_s3] sm:$0xff]   ;;  %v7214_v22 = vld [vmem:[#allocation2 + $0x1c8] sm:$0xff]  ;;  %vm910_vm2 = vcmask 523264   ;;  %vm2958_vm3 = vcmask 1040384   ;;  %s478_s15 = sand.u32 1, %s6973_s26   ;;  %s6101_s27 = sshll.u32 %s7085_s29, 5 }
  0x47   : > { %s8090_s19 = smov (!%p482_p4, %s5642_s19), 3  ;;  %6198 = vmatprep.subr.bf16.mxu1 %v6335_v12  ;;  %v7216_v23 = vld [vmem:[#allocation2 + $0x1e8] sm:$0xff]  ;;  %v1224_v26 = vld [vmem:[#allocation2 + $0x1c0] sm:$0xff]  ;;  %s5641_s17 = sshll.u32 %s478_s15, 1 }
  0x48   : > { %s6104_s23 = sshll.u32 %s8090_s19, 6  ;;  %v5757_v24 = vcombine.low %v7214_v22, %v7216_v23  ;;  %v5758_v25 = vcombine.high %v7214_v22, %v7216_v23  ;;  %v1228_v27 = vld [vmem:[#allocation2 + $0x1e0] sm:$0xff]  ;;  %v1217_v63 = vld [vmem:[#allocation2 + $0x188] sm:$0xff]  ;;  %s480_s21 = scalar_lea.vmem [#allocation8], %s5641_s17 }
  0x49   : > { %s7165_s24 = scalar_lea.vmem %s8048_s0, %s6104_s23  ;;  %v5755_v28 = vcombine.low %v1224_v26, %v1228_v27  ;;  %v5756_v29 = vcombine.high %v1224_v26, %v1228_v27  ;;  %v1216_v30 = vld [vmem:[#allocation2 + $0x180] sm:$0xff]  ;;  %v1221_v0 = vld [vmem:[#allocation2 + $0x1a8] sm:$0xff]  ;;  %s5541_s25 = sshll.u32 %s480_s21, 4  ;;  %s5542_s25 = int_to_ptr.vmem [resolvable:$true] %s5541_s25 }
  0x4a   : > { %v6319_v2 = vld [vmem:[%s7165_s24] sm:$0xff]   ;;  %v6320_v3 = vld [vmem:[%s7165_s24 + $0x8] sm:$0xff]   ;;  %v6321_v4 = vld [vmem:[%s7165_s24 + $0x10] sm:$0xff]   ;;  %s8013_s23 = scalar_lea.hbm %s8061_s13, %s6101_s27  ;;  %s5528_s20 = scalar_lea.sflag [#allocation4], %s478_s15 }
  0x4b   : > { %6166 = vmatprep.mubr.msk.bf16.mxu0 %vm609_vm1, %v6319_v2  ;;  %v6322_v5 = vld [vmem:[%s7165_s24 + $0x18] sm:$0xff]   ;;  %v6323_v6 = vld [vmem:[%s7165_s24 + $0x20] sm:$0xff]   ;;  %v6332_v8 = vld [vmem:[%s7165_s24 + $0x68] sm:$0xff]   ;;  %1594 = vmatprep.subr.bf16.mxu0 %v5756_v29  ;;  %s6913_s30 = scalar_lea.vmem %s5542_s25, 32  ;;  %s6993_s29 = smov [#allocation8]  }
  0x4c   : > { %6167 = vmatmul.mubr.msk.bf16.vlgmr.msra.gmra.mxu0 %vm609_vm1, %v6320_v3  ;;  %v6331_v7 = vld [vmem:[%s7165_s24 + $0x60] sm:$0xff]   ;;  %v6324_v9 = vld [vmem:[%s7165_s24 + $0x28] sm:$0xff]   ;;  %v6333_v10 = vld [vmem:[%s7165_s24 + $0x70] sm:$0xff]   ;;  %p6914_p10 = scmp.ne.s32.totalorder %s5542_s25, %s6913_s30 }
  0x4d   : > { %6170 = vmatprep.mubr.msk.bf16.mxu0 %vm609_vm1, %v6321_v4  ;;  %6190 = vmatprep.mubr.msk.bf16.mxu1 %vm609_vm1, %v6331_v7  ;;  %v6325_v11 = vld [vmem:[%s7165_s24 + $0x30] sm:$0xff]   ;;  %v6334_v13 = vld [vmem:[%s7165_s24 + $0x78] sm:$0xff]   ;;  %v6327_v15 = vld [vmem:[%s7165_s24 + $0x40] sm:$0xff]  }
  0x4e   : > { %6191 = vmatmul.mubr.msk.bf16.vlgmr.msra.gmra.mxu1 %vm609_vm1, %v6332_v8  ;;  %v6326_v14 = vld [vmem:[%s7165_s24 + $0x38] sm:$0xff]   ;;  %v6328_v16 = vld [vmem:[%s7165_s24 + $0x48] sm:$0xff]   ;;  %v6329_v17 = vld [vmem:[%s7165_s24 + $0x50] sm:$0xff]   ;;  %1595 = vmatpush1.bf16.msra.mxu0 %v5755_v28  ;;  %v5750_v8 = vcombine.high %v1217_v63, %v1221_v0  ;;  %p6915_p12 = pnand %p6914_p10, %p7102_p5 }
  0x4f   : > { %6194 = vmatprep.mubr.msk.bf16.mxu1 %vm609_vm1, %v6333_v10  ;;  %6199 = vmatpush3.bf16.msra.mxu1 %v6335_v12  ;;  %v6330_v18 = vld [vmem:[%s7165_s24 + $0x58] sm:$0xff]   ;;  %v1220_v31 = vld [vmem:[#allocation2 + $0x1a0] sm:$0xff]  ;;  %v1209_v10 = vld [vmem:[#allocation2 + $0x148] sm:$0xff]  ;;  %s6917_s24 = sshll.u32 %s6993_s29, 4  ;;  %s6918_s24 = int_to_ptr.vmem [resolvable:$false] %s6917_s24 }
  0x50   : > { %6200 = vmatprep.subr.bf16.mxu1 %v6336_v19  ;;  %v5748_v32 = vcombine.high %v1216_v30, %v1220_v31  ;;  %v1208_v33 = vld [vmem:[#allocation2 + $0x140] sm:$0xff]  ;;  %v5747_v35 = vcombine.low %v1216_v30, %v1220_v31  ;;  %p6916_p7 = pneg %p6915_p12  ;;  %s6919_s17 = scalar_lea.vmem %s6918_s24, 64 }
  0x51   : > { %v1212_v34 = vld [vmem:[#allocation2 + $0x160] sm:$0xff]  ;;  %p6920_p6 = scmp.lt.s32.totalorder %s5542_s25, %s6918_s24  ;;  %p6921_p9 = scmp.lt.s32.totalorder %s6919_s17, %s6913_s30 }
  0x52   : > { %1596 = vmatprep.subr.bf16.mxu0 %v5748_v32  ;;  %v5740_v36 = vcombine.high %v1208_v33, %v1212_v34  ;;  %v1200_v37 = vld [vmem:[#allocation2 + $0x100] sm:$0xff]  ;;  %v5739_v39 = vcombine.low %v1208_v33, %v1212_v34  ;;  %v1197_v33 = vld [vmem:[#allocation2 + $0xe8] sm:$0xff] }
  0x53   : > { %6201 = vmatpush3.bf16.msra.mxu1 %v6336_v19  ;;  %v1204_v38 = vld [vmem:[#allocation2 + $0x120] sm:$0xff]  ;;  %1597 = vmatpush1.bf16.msra.mxu0 %v5747_v35  ;;  %p6922_p8 = por %p6921_p9, %p6920_p6 }
  0x54   : > { %6171 = vmatmul.mubr.msk.bf16.gmra.mxu0 %vm609_vm1, %v6322_v5  ;;  %6202 = vmatprep.subr.bf16.mxu1 %v6337_v20  ;;  %v5732_v40 = vcombine.high %v1200_v37, %v1204_v38  ;;  %v1192_v41 = vld [vmem:[#allocation2 + $0xc0] sm:$0xff]  ;;  %v5731_v43 = vcombine.low %v1200_v37, %v1204_v38 }
  0x55   : > { %6174 = vmatprep.mubr.msk.bf16.mxu0 %vm609_vm1, %v6323_v6  ;;  %1598 = vmatprep.subr.bf16.mxu0 %v5740_v36  ;;  %v1196_v42 = vld [vmem:[#allocation2 + $0xe0] sm:$0xff]  ;;  %p6923_p11 = pnand %p6922_p8, %p6916_p7 }
  0x56   : > { %6195 = vmatmul.mubr.msk.bf16.gmra.mxu1 %vm609_vm1, %v6334_v13  ;;  %v5724_v44 = vcombine.high %v1192_v41, %v1196_v42  ;;  %v1184_v45 = vld [vmem:[#allocation2 + $0x80] sm:$0xff]  ;;  %v5723_v47 = vcombine.low %v1192_v41, %v1196_v42 }
  0x57   : > { %6203 = vmatpush3.bf16.msra.mxu1 %v6337_v20  ;;  %1599 = vmatpush1.bf16.msra.mxu0 %v5739_v39  ;;  %v1188_v46 = vld [vmem:[#allocation2 + $0xa0] sm:$0xff] }
  0x58   : > { %6204 = vmatprep.subr.bf16.mxu1 %v6338_v21  ;;  %1600 = vmatprep.subr.bf16.mxu0 %v5732_v40  ;;  %v5716_v48 = vcombine.high %v1184_v45, %v1188_v46  ;;  %v5715_v49 = vcombine.low %v1184_v45, %v1188_v46  ;;  %v7225_v52 = vld [vmem:[%s8050_s2] ss:$0 sm:$0xff]  ;;  %v1189_v45 = vld [vmem:[#allocation2 + $0xa8] sm:$0xff] }
  0x5b   : > { %6205 = vmatpush3.bf16.msra.mxu1 %v6338_v21  ;;  %1601 = vmatpush1.bf16.msra.mxu0 %v5731_v43  ;;  %v1201_v21 = vld [vmem:[#allocation2 + $0x108] sm:$0xff] }
  0x5c   : > { %6175 = vmatmul.mubr.msk.bf16.gmra.mxu0 %vm609_vm1, %v6324_v9  ;;  %1787 = vmatprep.subr.bf16.mxu1 %v5758_v25  ;;  %v1205_v25 = vld [vmem:[#allocation2 + $0x128] sm:$0xff] }
  0x5d   : > { %6178 = vmatprep.mubr.msk.bf16.mxu0 %vm609_vm1, %v6325_v11  ;;  %1602 = vmatprep.subr.bf16.mxu0 %v5724_v44  ;;  %v1213_v11 = vld [vmem:[#allocation2 + $0x168] sm:$0xff]  ;;  %v5734_v22 = vcombine.high %v1201_v21, %v1205_v25  ;;  %v5733_v40 = vcombine.low %v1201_v21, %v1205_v25 }
  0x5e   : > { %v5742_v19 = vcombine.high %v1209_v10, %v1213_v11  ;;  %v5741_v31 = vcombine.low %v1209_v10, %v1213_v11  ;;  %v1185_v44 = vld [vmem:[#allocation2 + $0x88] sm:$0xff] }
  0x5f   : > { %1603 = vmatpush1.bf16.msra.mxu0 %v5723_v47 }
  0x60   : > { %1604 = vmatprep.subr.bf16.mxu0 %v5716_v48 }
  0x63   : > { %1605 = vmatpush1.bf16.msra.mxu0 %v5715_v49 }
  0x64   : > { %6179 = vmatmul.mubr.msk.bf16.gmra.mxu0 %vm609_vm1, %v6326_v14 }
  0x65   : > { %6182 = vmatprep.mubr.msk.bf16.mxu0 %vm609_vm1, %v6327_v15 }
  0x6c   : > { %6183 = vmatmul.mubr.msk.bf16.gmra.mxu0 %vm609_vm1, %v6328_v16 }
  0x6d   : > { %6186 = vmatprep.mubr.msk.bf16.mxu0 %vm609_vm1, %v6329_v17  ;;  %v5749_v17 = vcombine.low %v1217_v63, %v1221_v0 }
  0x74   : > { %6187 = vmatmul.mubr.msk.bf16.gmra.mxu0 %vm609_vm1, %v6330_v18 }
 0x10c   : > { %v6168_v50 = vpop.f32.mrf.mxu0 }
 0x10d   : > { %v705_v56 = vadd.f32 %v6168_v50, %v7225_v52 }
 0x10e   : > { %v696_v51 = vpop.f32.mrf.mxu0  ;;  %v7245_v36 = vpop.f32.mrf.mxu1 }
 0x10f   : > { %v697_v54 = vadd.f32 %v7225_v52, %v696_v51  ;;  %v825_v1 = vmax.f32 %v705_v56, 0.0 }
 0x110   : > { %v6169_v53 = vpop.f32.mrf.mxu0  ;;  %v792_v49 = vpop.f32.mrf.mxu1 }
 0x111   : > { %v708_v55 = vadd.f32 %v6169_v53, %v7225_v52  ;;  %v823_v61 = vmax.f32 %v697_v54, 0.0 }
 0x112   : > { %v699_v57 = vpop.f32.mrf.mxu0 }
 0x113   : > { %v700_v58 = vadd.f32 %v7225_v52, %v699_v57  ;;  %v826_v59 = vmax.f32 %v708_v55, 0.0  ;;  %v5718_v55 = vcombine.high %v1185_v44, %v1189_v45  ;;  %v1177_v57 = vld [vmem:[#allocation2 + $0x48] sm:$0xff] }
 0x114   : > { %v6172_v60 = vpop.f32.mrf.mxu0 }
 0x115   : > { %v824_v62 = vmax.f32 %v700_v58, 0.0  ;;  %v721_v2 = vadd.f32 %v6172_v60, %v7225_v52  ;;  %v856_v6 = vpack.c.bf16 %v826_v59, %v825_v1  ;;  %v1181_v58 = vld [vmem:[#allocation2 + $0x68] sm:$0xff]  ;;  %v5717_v1 = vcombine.low %v1185_v44, %v1189_v45 }
 0x116   : > { %v712_v3 = vpop.f32.mrf.mxu0  ;;  %v5709_v11 = vcombine.low %v1177_v57, %v1181_v58  ;;  %v801_v44 = vadd.f32 %v7245_v36, %v7225_v52 }
 0x117   : > { %v855_v4 = vpack.c.bf16 %v824_v62, %v823_v61  ;;  %v713_v5 = vadd.f32 %v7225_v52, %v712_v3  ;;  %v829_v12 = vmax.f32 %v721_v2, 0.0  ;;  %v6193_v61 = vpop.f32.mrf.mxu1  ;;  %v5710_v3 = vcombine.high %v1177_v57, %v1181_v58 }
 0x118   : > { %v6173_v7 = vpop.f32.mrf.mxu0  ;;  %v804_v45 = vadd.f32 %v6193_v61, %v7225_v52  ;;  %v1176_v61 = vld [vmem:[#allocation2 + $0x40] sm:$0xff] }
 0x119   : > { %v724_v9 = vadd.f32 %v6173_v7, %v7225_v52  ;;  %6206 = vmatprep.mubr.msk.bf16.mxu1 %vm910_vm2, %v855_v4  ;;  %v827_v14 = vmax.f32 %v713_v5, 0.0 }
 0x11a   : > { %v715_v13 = vpop.f32.mrf.mxu0  ;;  %6207 = vmatmul.mubr.msk.bf16.vlgmr.msra.gmra.mxu1 %vm910_vm2, %v856_v6 }
 0x11b   : > { %v830_v15 = vmax.f32 %v724_v9, 0.0  ;;  %v716_v16 = vadd.f32 %v7225_v52, %v715_v13  ;;  %1788 = vmatpush1.bf16.msra.mxu1 %v5757_v24  ;;  %v1193_v24 = vld [vmem:[#allocation2 + $0xc8] sm:$0xff] }
 0x11c   : > { %v6176_v18 = vpop.f32.mrf.mxu0  ;;  %1789 = vmatprep.subr.bf16.mxu1 %v5750_v8  ;;  %v5726_v42 = vcombine.high %v1193_v24, %v1197_v33  ;;  %v5725_v53 = vcombine.low %v1193_v24, %v1197_v33  ;;  %v795_v8 = vpop.f32.mrf.mxu1 }
 0x11d   : > { %v828_v20 = vmax.f32 %v716_v16, 0.0  ;;  %v858_v26 = vpack.c.bf16 %v830_v15, %v829_v12  ;;  %v737_v27 = vadd.f32 %v6176_v18, %v7225_v52 }
 0x11e   : > { %v728_v28 = vpop.f32.mrf.mxu0  ;;  %v6196_v13 = vpop.f32.mrf.mxu1 }
 0x11f   : > { %v857_v29 = vpack.c.bf16 %v828_v20, %v827_v14  ;;  %v729_v30 = vadd.f32 %v7225_v52, %v728_v28  ;;  %1790 = vmatpush1.bf16.msra.mxu1 %v5749_v17  ;;  %v833_v34 = vmax.f32 %v737_v27, 0.0  ;;  %v817_v36 = vadd.f32 %v6196_v13, %v7225_v52  ;;  %v1227_v13 = vld [vmem:[#allocation2 + $0x1d8] sm:$0xff] }
 0x120   : > { %v6177_v32 = vpop.f32.mrf.mxu0  ;;  %1791 = vmatprep.subr.bf16.mxu1 %v5742_v19  ;;  %v808_v21 = vpop.f32.mrf.mxu1 }
 0x121   : > { %6210 = vmatprep.mubr.msk.bf16.mxu1 %vm910_vm2, %v857_v29  ;;  %v740_v23 = vadd.f32 %v6177_v32, %v7225_v52  ;;  %v831_v37 = vmax.f32 %v729_v30, 0.0  ;;  %v793_v29 = vadd.f32 %v7225_v52, %v792_v49  ;;  %v796_v32 = vadd.f32 %v7225_v52, %v795_v8 }
 0x122   : > { %6211 = vmatmul.mubr.msk.bf16.gmra.mxu1 %vm910_vm2, %v858_v26  ;;  %v731_v35 = vpop.f32.mrf.mxu0  ;;  %v853_v58 = vmax.f32 %v817_v36, 0.0  ;;  %v6992_v8 = vmov 0  }
 0x123   : > { %v834_v38 = vmax.f32 %v740_v23, 0.0  ;;  %v732_v39 = vadd.f32 %v7225_v52, %v731_v35  ;;  %1792 = vmatpush1.bf16.msra.mxu1 %v5741_v31  ;;  %v6197_v23 = vpop.f32.mrf.mxu1  ;;  %v847_v35 = vmax.f32 %v793_v29, 0.0  ;;  %1626 = vmatprep.mubr.bf16.mxu0 %v6992_v8 }
 0x124   : > { %v6180_v41 = vpop.f32.mrf.mxu0  ;;  %1793 = vmatprep.subr.bf16.mxu1 %v5734_v22 }
 0x125   : > { %v832_v43 = vmax.f32 %v732_v39, 0.0  ;;  %v860_v46 = vpack.c.bf16 %v834_v38, %v833_v34  ;;  %v753_v47 = vadd.f32 %v6180_v41, %v7225_v52  ;;  %v811_v41 = vpop.f32.mrf.mxu1 }
 0x126   : > { %v744_v48 = vpop.f32.mrf.mxu0  ;;  %v812_v49 = vadd.f32 %v7225_v52, %v811_v41  ;;  %v1215_v41 = vld [vmem:[#allocation2 + $0x178] sm:$0xff] }
 0x127   : > { %v859_v50 = vpack.c.bf16 %v832_v43, %v831_v37  ;;  %v745_v51 = vadd.f32 %v7225_v52, %v744_v48  ;;  %1794 = vmatpush1.bf16.msra.mxu1 %v5733_v40  ;;  %v837_v59 = vmax.f32 %v753_v47, 0.0  ;;  %v848_v40 = vmax.f32 %v796_v32, 0.0  ;;  %v1219_v32 = vld [vmem:[#allocation2 + $0x198] sm:$0xff] }
 0x128   : > { %v6181_v54 = vpop.f32.mrf.mxu0  ;;  %1795 = vmatprep.subr.bf16.mxu1 %v5726_v42  ;;  %v809_v48 = vadd.f32 %v7225_v52, %v808_v21 }
 0x129   : > { %6214 = vmatprep.mubr.msk.bf16.mxu1 %vm910_vm2, %v859_v50  ;;  %v756_v56 = vadd.f32 %v6181_v54, %v7225_v52  ;;  %v835_v62 = vmax.f32 %v745_v51, 0.0  ;;  %v867_v47 = vpack.c.bf16 %v848_v40, %v847_v35  ;;  %v849_v50 = vmax.f32 %v801_v44, 0.0  ;;  %v1211_v40 = vld [vmem:[#allocation2 + $0x158] sm:$0xff] }
 0x12a   : > { %6215 = vmatmul.mubr.msk.bf16.gmra.mxu1 %vm910_vm2, %v860_v46  ;;  %v747_v60 = vpop.f32.mrf.mxu0  ;;  %v850_v51 = vmax.f32 %v804_v45, 0.0  ;;  %v852_v54 = vmax.f32 %v812_v49, 0.0  ;;  %v1202_v49 = vld [vmem:[#allocation2 + $0x110] sm:$0xff] }
 0x12b   : > { %v838_v63 = vmax.f32 %v756_v56, 0.0  ;;  %v748_v0 = vadd.f32 %v7225_v52, %v747_v60  ;;  %1796 = vmatpush1.bf16.msra.mxu1 %v5725_v53  ;;  %v851_v53 = vmax.f32 %v809_v48, 0.0  ;;  %v820_v56 = vadd.f32 %v6197_v23, %v7225_v52 }
 0x12c   : > { %v6184_v2 = vpop.f32.mrf.mxu0  ;;  %1797 = vmatprep.subr.bf16.mxu1 %v5718_v55  ;;  %v868_v55 = vpack.c.bf16 %v850_v51, %v849_v50  ;;  %v1206_v51 = vld [vmem:[#allocation2 + $0x130] sm:$0xff] }
 0x12d   : > { %v836_v4 = vmax.f32 %v748_v0, 0.0  ;;  %v862_v5 = vpack.c.bf16 %v838_v63, %v837_v59  ;;  %v769_v6 = vadd.f32 %v6184_v2, %v7225_v52  ;;  %v869_v57 = vpack.c.bf16 %v852_v54, %v851_v53  ;;  %v1172_v2 = vld [vmem:[#allocation2 + $0x20] sm:$0xff]  ;;  %v1203_v53 = vld [vmem:[#allocation2 + $0x118] sm:$0xff] }
 0x12e   : > { %v760_v7 = vpop.f32.mrf.mxu0  ;;  %v854_v59 = vmax.f32 %v820_v56, 0.0  ;;  %v1207_v54 = vld [vmem:[#allocation2 + $0x138] sm:$0xff] }
 0x12f   : > { %v861_v9 = vpack.c.bf16 %v836_v4, %v835_v62  ;;  %v761_v10 = vadd.f32 %v7225_v52, %v760_v7  ;;  %1798 = vmatpush1.bf16.msra.mxu1 %v5717_v1  ;;  %v841_v15 = vmax.f32 %v769_v6, 0.0  ;;  %v1180_v62 = vld [vmem:[#allocation2 + $0x60] sm:$0xff]  ;;  %v1173_v4 = vld [vmem:[#allocation2 + $0x28] sm:$0xff] }
 0x130   : > { %v6185_v12 = vpop.f32.mrf.mxu0  ;;  %1799 = vmatprep.subr.bf16.mxu1 %v5710_v3  ;;  %v870_v60 = vpack.c.bf16 %v854_v59, %v853_v58  ;;  %v5707_v63 = vcombine.low %v1176_v61, %v1180_v62  ;;  %v5708_v0 = vcombine.high %v1176_v61, %v1180_v62  ;;  %v1168_v1 = vld [vmem:[#allocation2] sm:$0xff]  ;;  %v1169_v3 = vld [vmem:[#allocation2 + $0x8] sm:$0xff]  ;;  %v5736_v59 = vcombine.high %v1202_v49, %v1206_v51  ;;  %v1194_v61 = vld [vmem:[#allocation2 + $0xd0] sm:$0xff] }
 0x131   : > { %6218 = vmatprep.mubr.msk.bf16.mxu1 %vm910_vm2, %v861_v9  ;;  %v772_v14 = vadd.f32 %v6185_v12, %v7225_v52  ;;  %v839_v17 = vmax.f32 %v761_v10, 0.0  ;;  %v5701_v6 = vcombine.low %v1169_v3, %v1173_v4  ;;  %v5702_v7 = vcombine.high %v1169_v3, %v1173_v4  ;;  %v1226_v9 = vld [vmem:[#allocation2 + $0x1d0] sm:$0xff] }
 0x132   : > { %6219 = vmatmul.mubr.msk.bf16.gmra.mxu1 %vm910_vm2, %v862_v5  ;;  %v763_v16 = vpop.f32.mrf.mxu0  ;;  %1606 = vmatprep.subr.bf16.mxu0 %v5708_v0  ;;  %v5699_v5 = vcombine.low %v1168_v1, %v1172_v2  ;;  %v1230_v10 = vld [vmem:[#allocation2 + $0x1f0] sm:$0xff]  ;;  %v1195_v0 = vld [vmem:[#allocation2 + $0xd8] sm:$0xff]  ;;  %v5735_v3 = vcombine.low %v1202_v49, %v1206_v51 }
 0x133   : > { %v842_v18 = vmax.f32 %v772_v14, 0.0  ;;  %v764_v19 = vadd.f32 %v7225_v52, %v763_v16  ;;  %1800 = vmatpush1.bf16.msra.mxu1 %v5709_v11  ;;  %1607 = vmatpush1.bf16.msra.mxu0 %v5707_v63  ;;  %v5759_v11 = vcombine.low %v1226_v9, %v1230_v10  ;;  %v5760_v12 = vcombine.high %v1226_v9, %v1230_v10  ;;  %v1231_v14 = vld [vmem:[#allocation2 + $0x1f8] sm:$0xff]  ;;  %v1198_v63 = vld [vmem:[#allocation2 + $0xf0] sm:$0xff] }
 0x134   : > { %v6188_v20 = vpop.f32.mrf.mxu0  ;;  %1801 = vmatprep.subr.bf16.mxu1 %v5702_v7  ;;  %v5762_v16 = vcombine.high %v1227_v13, %v1231_v14  ;;  %v1186_v7 = vld [vmem:[#allocation2 + $0x90] sm:$0xff] }
 0x135   : > { %v840_v25 = vmax.f32 %v764_v19, 0.0  ;;  %v864_v26 = vpack.c.bf16 %v842_v18, %v841_v15  ;;  %v785_v27 = vadd.f32 %v6188_v20, %v7225_v52  ;;  %v5761_v15 = vcombine.low %v1227_v13, %v1231_v14  ;;  %v7286_v19 = vld [vmem:[%s8052_s4] ss:$0 sm:$0xff]  ;;  %v1190_v10 = vld [vmem:[#allocation2 + $0xb0] sm:$0xff] }
 0x136   : > { %v776_v28 = vpop.f32.mrf.mxu0  ;;  %v5727_v13 = vcombine.low %v1194_v61, %v1198_v63 }
 0x137   : > { %v863_v30 = vpack.c.bf16 %v840_v25, %v839_v17  ;;  %v777_v31 = vadd.f32 %v7225_v52, %v776_v28  ;;  %v845_v33 = vmax.f32 %v785_v27, 0.0  ;;  %1802 = vmatpush1.bf16.msra.mxu1 %v5701_v6  ;;  %v1218_v28 = vld [vmem:[#allocation2 + $0x190] sm:$0xff] }
 0x138   : > { %v6189_v22 = vpop.f32.mrf.mxu0  ;;  %2173 = vmatprep.subr.bf16.mxu1 %v5762_v16 }
 0x139   : > { %6222 = vmatprep.mubr.msk.bf16.mxu1 %vm910_vm2, %v863_v30  ;;  %v788_v24 = vadd.f32 %v6189_v22, %v7225_v52  ;;  %v843_v37 = vmax.f32 %v777_v31, 0.0  ;;  %v1222_v31 = vld [vmem:[#allocation2 + $0x1b0] sm:$0xff]  ;;  %v1223_v22 = vld [vmem:[#allocation2 + $0x1b8] sm:$0xff] }
 0x13a   : > { %6223 = vmatmul.mubr.msk.bf16.gmra.mxu1 %vm910_vm2, %v864_v26  ;;  %v779_v34 = vpop.f32.mrf.mxu0  ;;  %v5753_v44 = vcombine.low %v1219_v32, %v1223_v22 }
 0x13b   : > { %v846_v38 = vmax.f32 %v788_v24, 0.0  ;;  %v780_v39 = vadd.f32 %v7225_v52, %v779_v34  ;;  %v5700_v52 = vcombine.high %v1168_v1, %v1172_v2  ;;  %v1210_v34 = vld [vmem:[#allocation2 + $0x150] sm:$0xff]  ;;  %v1199_v1 = vld [vmem:[#allocation2 + $0xf8] sm:$0xff] }
 0x13c   : > { %v5730_v6 = vcombine.high %v1195_v0, %v1199_v1  ;;  %v5729_v16 = vcombine.low %v1195_v0, %v1199_v1 }
 0x13d   : > { %v844_v42 = vmax.f32 %v780_v39, 0.0  ;;  %v866_v43 = vpack.c.bf16 %v846_v38, %v845_v33  ;;  %1608 = vmatprep.subr.bf16.mxu0 %v5700_v52  ;;  %v5754_v38 = vcombine.high %v1219_v32, %v1223_v22  ;;  %v1214_v39 = vld [vmem:[#allocation2 + $0x170] sm:$0xff]  ;;  %v5737_v52 = vcombine.low %v1203_v53, %v1207_v54 }
 0x13e   : > { %1609 = vmatpush1.bf16.msra.mxu0 %v5699_v5  ;;  %v5728_v5 = vcombine.high %v1194_v61, %v1198_v63 }
 0x13f   : > { %v865_v46 = vpack.c.bf16 %v844_v42, %v843_v37  ;;  %1980 = vmatprep.subr.bf16.mxu0 %v5760_v12  ;;  %v5752_v37 = vcombine.high %v1218_v28, %v1222_v31  ;;  %v1191_v12 = vld [vmem:[#allocation2 + $0xb8] sm:$0xff] }
 0x141   : > { %6226 = vmatprep.mubr.msk.bf16.mxu1 %vm910_vm2, %v865_v46  ;;  %v5744_v46 = vcombine.high %v1210_v34, %v1214_v39 }
 0x142   : > { %6227 = vmatmul.mubr.msk.bf16.gmra.mxu1 %vm910_vm2, %v866_v43  ;;  %v5751_v43 = vcombine.low %v1218_v28, %v1222_v31  ;;  %v1179_v28 = vld [vmem:[#allocation2 + $0x58] sm:$0xff]  ;;  %v5719_v31 = vcombine.low %v1186_v7, %v1190_v10 }
 0x143   : > { %6230 = vmatprep.mubr.msk.bf16.mxu1 %vm910_vm2, %v867_v47  ;;  %v5746_v47 = vcombine.high %v1211_v40, %v1215_v41 }
 0x14a   : > { %6231 = vmatmul.mubr.msk.bf16.gmra.mxu1 %vm910_vm2, %v868_v55  ;;  %v5743_v55 = vcombine.low %v1210_v34, %v1214_v39 }
 0x14b   : > { %6234 = vmatprep.mubr.msk.bf16.mxu1 %vm910_vm2, %v869_v57  ;;  %v5745_v57 = vcombine.low %v1211_v40, %v1215_v41 }
 0x152   : > { %6235 = vmatmul.mubr.msk.bf16.gmra.mxu1 %vm910_vm2, %v870_v60  ;;  %v5738_v60 = vcombine.high %v1203_v53, %v1207_v54 }
 0x153   : > { %1819 = vmatprep.mubr.bf16.mxu1 %v6992_v8 }
 0x1da   : > { %v6208_v17 = vpop.f32.mrf.mxu1 }
 0x1db   : > { %v1002_v42 = vadd.f32 %v6208_v17, %v7286_v19 }
 0x1dc   : > { %v993_v18 = vpop.f32.mrf.mxu1 }
 0x1dd   : > { %v994_v21 = vadd.f32 %v7286_v19, %v993_v18  ;;  %v1122_v50 = vmax.f32 %v1002_v42, 0.0  ;;  %v5720_v18 = vcombine.high %v1186_v7, %v1190_v10 }
 0x1de   : > { %v6209_v20 = vpop.f32.mrf.mxu1 }
 0x1df   : > { %v1120_v29 = vmax.f32 %v994_v21, 0.0  ;;  %v1005_v24 = vadd.f32 %v6209_v20, %v7286_v19  ;;  %v1178_v21 = vld [vmem:[#allocation2 + $0x50] sm:$0xff] }
 0x1e0   : > { %v996_v25 = vpop.f32.mrf.mxu1 }
 0x1e1   : > { %v997_v26 = vadd.f32 %v7286_v19, %v996_v25  ;;  %v1123_v45 = vmax.f32 %v1005_v24, 0.0  ;;  %v1170_v24 = vld [vmem:[#allocation2 + $0x10] sm:$0xff] }
 0x1e2   : > { %v7290_v27 = vpop.f32.mrf.mxu1 }
 0x1e3   : > { %v1121_v30 = vmax.f32 %v997_v26, 0.0  ;;  %v7300_v36 = vpack.c.bf16 %v1123_v45, %v1122_v50  ;;  %v1018_v25 = vadd.f32 %v7290_v27, %v7286_v19  ;;  %v1182_v26 = vld [vmem:[#allocation2 + $0x70] sm:$0xff] }
 0x1e4   : > { %v1009_v23 = vpop.f32.mrf.mxu1  ;;  %v5712_v27 = vcombine.high %v1178_v21, %v1182_v26  ;;  %v5711_v39 = vcombine.low %v1178_v21, %v1182_v26 }
 0x1e5   : > { %v7293_v33 = vpack.c.bf16 %v1121_v30, %v1120_v29  ;;  %v1010_v62 = vadd.f32 %v7286_v19, %v1009_v23  ;;  %v1183_v29 = vld [vmem:[#allocation2 + $0x78] sm:$0xff]  ;;  %v1126_v34 = vmax.f32 %v1018_v25, 0.0 }
 0x1e6   : > { %v6213_v35 = vpop.f32.mrf.mxu1  ;;  %v5714_v23 = vcombine.high %v1179_v28, %v1183_v29  ;;  %v5713_v40 = vcombine.low %v1179_v28, %v1183_v29 }
 0x1e7   : > { %1627 = vmatmul.mubr.bf16.vlgmr.msra.gmra.mxu0 %v7293_v33  ;;  %1820 = vmatmul.mubr.bf16.vlgmr.msra.gmra.mxu1 %v7293_v33  ;;  %v1124_v9 = vmax.f32 %v1010_v62, 0.0  ;;  %v1021_v14 = vadd.f32 %v6213_v35, %v7286_v19  ;;  %v1174_v35 = vld [vmem:[#allocation2 + $0x30] sm:$0xff] }
 0x1e8   : > { %1981 = vmatpush1.bf16.msra.mxu0 %v5759_v11  ;;  %2174 = vmatpush1.bf16.msra.mxu1 %v5761_v15  ;;  %v1012_v48 = vpop.f32.mrf.mxu1  ;;  %v1187_v11 = vld [vmem:[#allocation2 + $0x98] sm:$0xff]  ;;  %v5704_v45 = vcombine.high %v1170_v24, %v1174_v35  ;;  %v5703_v49 = vcombine.low %v1170_v24, %v1174_v35 }
 0x1e9   : > { %1636 = vmatprep.mubr.bf16.mxu0 %v6992_v8  ;;  %1829 = vmatprep.mubr.bf16.mxu1 %v6992_v8  ;;  %v1013_v56 = vadd.f32 %v7286_v19, %v1012_v48  ;;  %v5722_v20 = vcombine.high %v1187_v11, %v1191_v12  ;;  %v1127_v30 = vmax.f32 %v1021_v14, 0.0  ;;  %v5721_v32 = vcombine.low %v1187_v11, %v1191_v12 }
 0x1ea   : > { %1982 = vmatprep.subr.bf16.mxu0 %v5752_v37  ;;  %2175 = vmatprep.subr.bf16.mxu1 %v5754_v38  ;;  %v7303_v58 = vpop.f32.mrf.mxu1  ;;  %v1171_v37 = vld [vmem:[#allocation2 + $0x18] sm:$0xff] }
 0x1eb   : > { %v1125_v2 = vmax.f32 %v1013_v56, 0.0  ;;  %v1175_v38 = vld [vmem:[#allocation2 + $0x38] sm:$0xff]  ;;  %v7319_v41 = vpack.c.bf16 %v1127_v30, %v1126_v34  ;;  %v1034_v53 = vadd.f32 %v7303_v58, %v7286_v19 }
 0x1ec   : > { %1983 = vmatpush1.bf16.msra.mxu0 %v5751_v43  ;;  %2176 = vmatpush1.bf16.msra.mxu1 %v5753_v44  ;;  %v1025_v4 = vpop.f32.mrf.mxu1  ;;  %v5705_v50 = vcombine.low %v1171_v37, %v1175_v38 }
 0x1ed   : > { %1984 = vmatprep.subr.bf16.mxu0 %v5744_v46  ;;  %2177 = vmatprep.subr.bf16.mxu1 %v5746_v47  ;;  %v7311_v15 = vpack.c.bf16 %v1125_v2, %v1124_v9  ;;  %v1026_v42 = vadd.f32 %v7286_v19, %v1025_v4  ;;  %v5706_v46 = vcombine.high %v1171_v37, %v1175_v38 }
 0x1ee   : > { %v6217_v17 = vpop.f32.mrf.mxu1 }
 0x1ef   : > { %1637 = vmatmul.mubr.bf16.gmra.mxu0 %v7300_v36  ;;  %1830 = vmatmul.mubr.bf16.gmra.mxu1 %v7300_v36  ;;  %v1128_v47 = vmax.f32 %v1026_v42, 0.0  ;;  %v1037_v54 = vadd.f32 %v6217_v17, %v7286_v19 }
 0x1f0   : > { %1646 = vmatprep.mubr.bf16.mxu0 %v6992_v8  ;;  %1839 = vmatprep.mubr.bf16.mxu1 %v6992_v8  ;;  %v1028_v22 = vpop.f32.mrf.mxu1 }
 0x1f1   : > { %1985 = vmatpush1.bf16.msra.mxu0 %v5743_v55  ;;  %2178 = vmatpush1.bf16.msra.mxu1 %v5745_v57  ;;  %v1029_v43 = vadd.f32 %v7286_v19, %v1028_v22  ;;  %v1130_v57 = vmax.f32 %v1034_v53, 0.0 }
 0x1f2   : > { %1986 = vmatprep.subr.bf16.mxu0 %v5736_v59  ;;  %2179 = vmatprep.subr.bf16.mxu1 %v5738_v60  ;;  %v6220_v44 = vpop.f32.mrf.mxu1  ;;  %v1131_v59 = vmax.f32 %v1037_v54, 0.0 }
 0x1f3   : > { %v1129_v48 = vmax.f32 %v1029_v43, 0.0 }
 0x1f4   : > { %v1041_v51 = vpop.f32.mrf.mxu1  ;;  %v7336_v61 = vpack.c.bf16 %v1131_v59, %v1130_v57 }
 0x1f5   : > { %1987 = vmatpush1.bf16.msra.mxu0 %v5735_v3  ;;  %2180 = vmatpush1.bf16.msra.mxu1 %v5737_v52  ;;  %v7330_v55 = vpack.c.bf16 %v1129_v48, %v1128_v47  ;;  %v1042_v58 = vadd.f32 %v7286_v19, %v1041_v51  ;;  %v1050_v3 = vadd.f32 %v6220_v44, %v7286_v19 }
 0x1f6   : > { %1988 = vmatprep.subr.bf16.mxu0 %v5728_v5  ;;  %2181 = vmatprep.subr.bf16.mxu1 %v5730_v6  ;;  %v6221_v56 = vpop.f32.mrf.mxu1 }
 0x1f7   : > { %1647 = vmatmul.mubr.bf16.gmra.mxu0 %v7311_v15  ;;  %1840 = vmatmul.mubr.bf16.gmra.mxu1 %v7311_v15  ;;  %v1132_v0 = vmax.f32 %v1042_v58, 0.0  ;;  %v1053_v52 = vadd.f32 %v6221_v56, %v7286_v19  ;;  %v1134_v6 = vmax.f32 %v1050_v3, 0.0 }
 0x1f8   : > { %1656 = vmatprep.mubr.bf16.mxu0 %v6992_v8  ;;  %1849 = vmatprep.mubr.bf16.mxu1 %v6992_v8  ;;  %v1044_v60 = vpop.f32.mrf.mxu1 }
 0x1f9   : > { %1989 = vmatpush1.bf16.msra.mxu0 %v5727_v13  ;;  %2182 = vmatpush1.bf16.msra.mxu1 %v5729_v16  ;;  %v1045_v62 = vadd.f32 %v7286_v19, %v1044_v60  ;;  %v1135_v7 = vmax.f32 %v1053_v52, 0.0 }
 0x1fa   : > { %1990 = vmatprep.subr.bf16.mxu0 %v5720_v18  ;;  %2183 = vmatprep.subr.bf16.mxu1 %v5722_v20  ;;  %v6224_v63 = vpop.f32.mrf.mxu1 }
 0x1fb   : > { %v1133_v1 = vmax.f32 %v1045_v62, 0.0  ;;  %v7352_v10 = vpack.c.bf16 %v1135_v7, %v1134_v6  ;;  %v1066_v18 = vadd.f32 %v6224_v63, %v7286_v19  ;;  %v6339_v7 = vld [vmem:[#allocation5 + $0xe0] ss:$16 sps:$4 sm:$0xff]  }
 0x1fc   : > { %v1057_v2 = vpop.f32.mrf.mxu1 }
 0x1fd   : > { %1991 = vmatpush1.bf16.msra.mxu0 %v5719_v31  ;;  %2184 = vmatpush1.bf16.msra.mxu1 %v5721_v32  ;;  %v7346_v4 = vpack.c.bf16 %v1133_v1, %v1132_v0  ;;  %v1058_v11 = vadd.f32 %v7286_v19, %v1057_v2  ;;  %v1138_v26 = vmax.f32 %v1066_v18, 0.0  ;;  %v6362_v18 = vld [vmem:[#allocation5 + $0x284] ss:$16 sps:$4 sm:$0xff]  }
 0x1fe   : > { %1992 = vmatprep.subr.bf16.mxu0 %v5712_v27  ;;  %2185 = vmatprep.subr.bf16.mxu1 %v5714_v23  ;;  %v6225_v5 = vpop.f32.mrf.mxu1 }
 0x1ff   : > { %1657 = vmatmul.mubr.bf16.gmra.mxu0 %v7319_v41  ;;  %1850 = vmatmul.mubr.bf16.gmra.mxu1 %v7319_v41  ;;  %v1136_v14 = vmax.f32 %v1058_v11, 0.0  ;;  %v1069_v20 = vadd.f32 %v6225_v5, %v7286_v19  ;;  %v6345_v11 = vld [vmem:[#allocation5 + $0xc0] ss:$16 sps:$4 sm:$0xff]  }
 0x200   : > { %1666 = vmatprep.mubr.bf16.mxu0 %v6992_v8  ;;  %1859 = vmatprep.mubr.bf16.mxu1 %v6992_v8  ;;  %v1060_v9 = vpop.f32.mrf.mxu1 }
 0x201   : > { %1993 = vmatpush1.bf16.msra.mxu0 %v5711_v39  ;;  %2186 = vmatpush1.bf16.msra.mxu1 %v5713_v40  ;;  %v1061_v12 = vadd.f32 %v7286_v19, %v1060_v9  ;;  %v1139_v28 = vmax.f32 %v1069_v20, 0.0  ;;  %v6342_v9 = vld [vmem:[#allocation5 + $0x2e0] ss:$16 sps:$4 sm:$0xff]  }
 0x202   : > { %1994 = vmatprep.subr.bf16.mxu0 %v5704_v45  ;;  %2187 = vmatprep.subr.bf16.mxu1 %v5706_v46  ;;  %v6228_v13 = vpop.f32.mrf.mxu1  ;;  %v6357_v20 = vld [vmem:[#allocation5 + $0x80] ss:$16 sps:$4 sm:$0xff]  }
 0x203   : > { %v1137_v16 = vmax.f32 %v1061_v12, 0.0  ;;  %v7368_v30 = vpack.c.bf16 %v1139_v28, %v1138_v26  ;;  %v1082_v34 = vadd.f32 %v6228_v13, %v7286_v19  ;;  %v6348_v12 = vld [vmem:[#allocation5 + $0x2c0] ss:$16 sps:$4 sm:$0xff]   ;;  %v6353_v13 = vld [vmem:[#allocation5 + $0xa4] ss:$16 sps:$4 sm:$0xff]  }
 0x204   : > { %v1073_v17 = vpop.f32.mrf.mxu1  ;;  %v6365_v26 = vld [vmem:[#allocation5 + $0x64] ss:$16 sps:$4 sm:$0xff]  }
 0x205   : > { %1995 = vmatpush1.bf16.msra.mxu0 %v5703_v49  ;;  %2188 = vmatpush1.bf16.msra.mxu1 %v5705_v50  ;;  %v7362_v21 = vpack.c.bf16 %v1137_v16, %v1136_v14  ;;  %v1074_v31 = vadd.f32 %v7286_v19, %v1073_v17  ;;  %v1142_v39 = vmax.f32 %v1082_v34, 0.0  ;;  %v6356_v14 = vld [vmem:[#allocation5 + $0x2a4] ss:$16 sps:$4 sm:$0xff]   ;;  %v6351_v16 = vld [vmem:[#allocation5 + $0xa0] ss:$16 sps:$4 sm:$0xff]  }
 0x206   : > { %v6229_v25 = vpop.f32.mrf.mxu1  ;;  %v6359_v17 = vld [vmem:[#allocation5 + $0x84] ss:$16 sps:$4 sm:$0xff]   ;;  %v6375_v34 = vld [vmem:[#allocation5 + $0x20] ss:$16 sps:$4 sm:$0xff]  }
 0x207   : > { %1667 = vmatmul.mubr.bf16.gmra.mxu0 %v7330_v55  ;;  %1860 = vmatmul.mubr.bf16.gmra.mxu1 %v7330_v55  ;;  %v1140_v27 = vmax.f32 %v1074_v31, 0.0  ;;  %v1085_v35 = vadd.f32 %v6229_v25, %v7286_v19  ;;  %v6360_v25 = vld [vmem:[#allocation5 + $0x280] ss:$16 sps:$4 sm:$0xff]   ;;  %v6368_v28 = vld [vmem:[#allocation5 + $0x264] ss:$16 sps:$4 sm:$0xff]  }
 0x208   : > { %1676 = vmatprep.mubr.bf16.mxu0 %v6992_v8  ;;  %1869 = vmatprep.mubr.bf16.mxu1 %v6992_v8  ;;  %v1076_v29 = vpop.f32.mrf.mxu1  ;;  %v6371_v31 = vld [vmem:[#allocation5 + $0x44] ss:$16 sps:$4 sm:$0xff]  }
 0x209   : > { %v1077_v32 = vadd.f32 %v7286_v19, %v1076_v29  ;;  %v1143_v40 = vmax.f32 %v1085_v35, 0.0  ;;  %v6363_v29 = vld [vmem:[#allocation5 + $0x60] ss:$16 sps:$4 sm:$0xff]   ;;  %v1234_v35 = vlaneseq }
 0x20a   : > { %v6232_v22 = vpop.f32.mrf.mxu1 }
 0x20b   : > { %v1141_v23 = vmax.f32 %v1077_v32, 0.0  ;;  %v7384_v43 = vpack.c.bf16 %v1143_v40, %v1142_v39  ;;  %v1098_v50 = vadd.f32 %v6232_v22, %v7286_v19  ;;  %v6374_v32 = vld [vmem:[#allocation5 + $0x244] ss:$16 sps:$4 sm:$0xff]   ;;  %v6369_v22 = vld [vmem:[#allocation5 + $0x40] ss:$16 sps:$4 sm:$0xff]  }
 0x20c   : > { %v1089_v24 = vpop.f32.mrf.mxu1  ;;  %v6386_v39 = vld [vmem:[#allocation5 + $0x204] ss:$16 sps:$4 sm:$0xff]   ;;  %v6381_v40 = vld [vmem:[#allocation5] ss:$16 sps:$4 sm:$0xff]  }
 0x20d   : > { %v7378_v37 = vpack.c.bf16 %v1141_v23, %v1140_v27  ;;  %v1090_v44 = vadd.f32 %v7286_v19, %v1089_v24  ;;  %v1146_v56 = vmax.f32 %v1098_v50, 0.0  ;;  %v6372_v27 = vld [vmem:[#allocation5 + $0x240] ss:$16 sps:$4 sm:$0xff]   ;;  %v6377_v23 = vld [vmem:[#allocation5 + $0x24] ss:$16 sps:$4 sm:$0xff]  }
 0x20e   : > { %v6233_v38 = vpop.f32.mrf.mxu1  ;;  %v6380_v24 = vld [vmem:[#allocation5 + $0x224] ss:$16 sps:$4 sm:$0xff]  }
 0x20f   : > { %1677 = vmatmul.mubr.bf16.gmra.mxu0 %v7336_v61  ;;  %1870 = vmatmul.mubr.bf16.gmra.mxu1 %v7336_v61  ;;  %v1144_v47 = vmax.f32 %v1090_v44, 0.0  ;;  %v1101_v51 = vadd.f32 %v6233_v38, %v7286_v19  ;;  %v6383_v38 = vld [vmem:[#allocation5 + $0x4] ss:$16 sps:$4 sm:$0xff]   ;;  %v7450_v44 = vshrl.u32 %v1234_v35, 7 }
 0x210   : > { %1686 = vmatprep.mubr.bf16.mxu0 %v6992_v8  ;;  %1879 = vmatprep.mubr.bf16.mxu1 %v6992_v8  ;;  %v1092_v42 = vpop.f32.mrf.mxu1  ;;  %v6395_v50 = vld [vmem:[#allocation5 + $0x1c4] ss:$16 sps:$4 sm:$0xff]  }
 0x211   : > { %v1093_v45 = vadd.f32 %v7286_v19, %v1092_v42  ;;  %v1147_v57 = vmax.f32 %v1101_v51, 0.0  ;;  %v6384_v42 = vld [vmem:[#allocation5 + $0x200] ss:$16 sps:$4 sm:$0xff]   ;;  %v6398_v51 = vld [vmem:[#allocation5 + $0x3c4] ss:$16 sps:$4 sm:$0xff]  }
 0x212   : > { %v6236_v46 = vpop.f32.mrf.mxu1 }
 0x213   : > { %v1145_v48 = vmax.f32 %v1093_v45, 0.0  ;;  %v7400_v60 = vpack.c.bf16 %v1147_v57, %v1146_v56  ;;  %v1114_v1 = vadd.f32 %v6236_v46, %v7286_v19  ;;  %v6389_v45 = vld [vmem:[#allocation5 + $0x1e4] ss:$16 sps:$4 sm:$0xff]   ;;  %v6396_v56 = vld [vmem:[#allocation5 + $0x3c0] ss:$16 sps:$4 sm:$0xff]   ;;  %v7466_v57 = vsub.s32 1, %v7450_v44 }
 0x214   : > { %v1105_v49 = vpop.f32.mrf.mxu1  ;;  %v6392_v46 = vld [vmem:[#allocation5 + $0x3e4] ss:$16 sps:$4 sm:$0xff]  }
 0x215   : > { %v7394_v53 = vpack.c.bf16 %v1145_v48, %v1144_v47  ;;  %v1106_v58 = vadd.f32 %v7286_v19, %v1105_v49  ;;  %v1150_v52 = vmax.f32 %v1114_v1, 0.0  ;;  %v6390_v47 = vld [vmem:[#allocation5 + $0x3e0] ss:$16 sps:$4 sm:$0xff]   ;;  %v7457_v48 = vsub.s32 0, %v7450_v44 }
 0x216   : > { %v6237_v54 = vpop.f32.mrf.mxu1  ;;  %v1244_v49 = vsub.s32 2, %v7450_v44  ;;  %v6399_v1 = vld [vmem:[#allocation5 + $0x1a0] ss:$16 sps:$4 sm:$0xff]  }
 0x217   : > { %1687 = vmatmul.mubr.bf16.gmra.mxu0 %v7346_v4  ;;  %1880 = vmatmul.mubr.bf16.gmra.mxu1 %v7346_v4  ;;  %v1148_v63 = vmax.f32 %v1106_v58, 0.0  ;;  %v1117_v2 = vadd.f32 %v6237_v54, %v7286_v19  ;;  %v7463_v54 = vld [vmem:[%s8054_s6] sm:$0xff] }
 0x218   : > { %1696 = vmatprep.mubr.bf16.mxu0 %v6992_v8  ;;  %1889 = vmatprep.mubr.bf16.mxu1 %v6992_v8  ;;  %v1108_v59 = vpop.f32.mrf.mxu1  ;;  %v7471_v58 = vrot.slane %v7463_v54, %v7457_v48 }
 0x219   : > { %v1109_v62 = vadd.f32 %v7286_v19, %v1108_v59  ;;  %v1151_v5 = vmax.f32 %v1117_v2, 0.0  ;;  %v6341_v19 = vld [vmem:[#allocation5 + $0xe4] ss:$16 sps:$4 sm:$0xff]   ;;  %v1248_v59 = vsub.s32 3, %v7450_v44  ;;  %v6402_v2 = vld [vmem:[#allocation5 + $0x3a0] ss:$16 sps:$4 sm:$0xff]  }
 0x21a   : > { %4533 = vmatprep.subr.bf16.mxu0 %v6341_v19  ;;  %v7482_v19 = vrot.slane %v7463_v54, %v7466_v57 }
 0x21b   : > { %v1149_v0 = vmax.f32 %v1109_v62, 0.0  ;;  %v7416_v6 = vpack.c.bf16 %v1151_v5, %v1150_v52  ;;  %v7476_v62 = vrot.slane %v7463_v54, %v1244_v49 }
 0x21d   : > { %v7410_v3 = vpack.c.bf16 %v1149_v0, %v1148_v63  ;;  %v6401_v63 = vld [vmem:[#allocation5 + $0x1a4] ss:$16 sps:$4 sm:$0xff]  }
 0x21e   : > { %v6404_v0 = vld [vmem:[#allocation5 + $0x3a4] ss:$16 sps:$4 sm:$0xff]  }
 0x21f   : > { %1697 = vmatmul.mubr.bf16.gmra.mxu0 %v7352_v10  ;;  %1890 = vmatmul.mubr.bf16.gmra.mxu1 %v7352_v10 }
 0x220   : > { %1706 = vmatprep.mubr.bf16.mxu0 %v6992_v8  ;;  %1899 = vmatprep.mubr.bf16.mxu1 %v6992_v8 }
 0x227   : > { %1707 = vmatmul.mubr.bf16.gmra.mxu0 %v7362_v21  ;;  %1900 = vmatmul.mubr.bf16.gmra.mxu1 %v7362_v21 }
 0x228   : > { %1716 = vmatprep.mubr.bf16.mxu0 %v6992_v8  ;;  %1909 = vmatprep.mubr.bf16.mxu1 %v6992_v8 }
 0x22f   : > { %1717 = vmatmul.mubr.bf16.gmra.mxu0 %v7368_v30  ;;  %1910 = vmatmul.mubr.bf16.gmra.mxu1 %v7368_v30 }
 0x230   : > { %1726 = vmatprep.mubr.bf16.mxu0 %v6992_v8  ;;  %1919 = vmatprep.mubr.bf16.mxu1 %v6992_v8 }
 0x237   : > { %1727 = vmatmul.mubr.bf16.gmra.mxu0 %v7378_v37  ;;  %1920 = vmatmul.mubr.bf16.gmra.mxu1 %v7378_v37 }
 0x238   : > { %1736 = vmatprep.mubr.bf16.mxu0 %v6992_v8  ;;  %1929 = vmatprep.mubr.bf16.mxu1 %v6992_v8 }
 0x23f   : > { %1737 = vmatmul.mubr.bf16.gmra.mxu0 %v7384_v43  ;;  %1930 = vmatmul.mubr.bf16.gmra.mxu1 %v7384_v43 }
 0x240   : > { %1746 = vmatprep.mubr.bf16.mxu0 %v6992_v8  ;;  %1939 = vmatprep.mubr.bf16.mxu1 %v6992_v8 }
 0x247   : > { %1747 = vmatmul.mubr.bf16.gmra.mxu0 %v7394_v53  ;;  %1940 = vmatmul.mubr.bf16.gmra.mxu1 %v7394_v53 }
 0x248   : > { %1756 = vmatprep.mubr.bf16.mxu0 %v6992_v8  ;;  %1949 = vmatprep.mubr.bf16.mxu1 %v6992_v8 }
 0x24f   : > { %1757 = vmatmul.mubr.bf16.gmra.mxu0 %v7400_v60  ;;  %1950 = vmatmul.mubr.bf16.gmra.mxu1 %v7400_v60 }
 0x250   : > { %1766 = vmatprep.mubr.bf16.mxu0 %v6992_v8  ;;  %1959 = vmatprep.mubr.bf16.mxu1 %v6992_v8 }
 0x257   : > { %1767 = vmatmul.mubr.bf16.gmra.mxu0 %v7410_v3  ;;  %1960 = vmatmul.mubr.bf16.gmra.mxu1 %v7410_v3 }
 0x258   : > { %1776 = vmatprep.mubr.bf16.mxu0 %v6992_v8  ;;  %1969 = vmatprep.mubr.bf16.mxu1 %v6992_v8 }
 0x25f   : > { %1777 = vmatmul.mubr.bf16.gmra.mxu0 %v7416_v6  ;;  %1970 = vmatmul.mubr.bf16.gmra.mxu1 %v7416_v6 }
 0x260   : > { %2012 = vmatprep.mubr.bf16.mxu0 %v6992_v8  ;;  %2205 = vmatprep.mubr.bf16.mxu1 %v6992_v8 }
 0x267   : > { %2013 = vmatmul.mubr.bf16.vlgmr.msra.gmra.mxu0 %v7293_v33  ;;  %2206 = vmatmul.mubr.bf16.vlgmr.msra.gmra.mxu1 %v7293_v33  ;;  %v6344_v33 = vld [vmem:[#allocation5 + $0x2e4] ss:$16 sps:$4 sm:$0xff]  }
 0x268   : > { %2022 = vmatprep.mubr.bf16.mxu0 %v6992_v8  ;;  %2215 = vmatprep.mubr.bf16.mxu1 %v6992_v8 }
 0x269   : > { %4574 = vmatprep.subr.bf16.mxu1 %v6344_v33  ;;  %4534 = vmatpush1.bf16.msra.mxu0 %v6339_v7  ;;  %v7487_v33 = vrot.slane %v7463_v54, %v1248_v59 }
 0x26a   : > { %4575 = vmatpush1.bf16.msra.mxu1 %v6342_v9 }
 0x26f   : > { %2023 = vmatmul.mubr.bf16.gmra.mxu0 %v7300_v36  ;;  %2216 = vmatmul.mubr.bf16.gmra.mxu1 %v7300_v36  ;;  %v6347_v36 = vld [vmem:[#allocation5 + $0xc4] ss:$16 sps:$4 sm:$0xff]  }
 0x270   : > { %2032 = vmatprep.mubr.bf16.mxu0 %v6992_v8  ;;  %2225 = vmatprep.mubr.bf16.mxu1 %v6992_v8 }
 0x271   : > { %4535 = vmatprep.subr.bf16.mxu0 %v6347_v36 }
 0x272   : > { %4536 = vmatpush1.bf16.msra.mxu0 %v6345_v11  ;;  %v6410_v11 = vld [vmem:[#allocation5 + $0x384] ss:$16 sps:$4 sm:$0xff]  }
 0x273   : > { %4537 = vmatprep.subr.bf16.mxu0 %v6353_v13  ;;  %v6408_v13 = vld [vmem:[#allocation5 + $0x380] ss:$16 sps:$4 sm:$0xff]  }
 0x276   : > { %4538 = vmatpush1.bf16.msra.mxu0 %v6351_v16 }
 0x277   : > { %2033 = vmatmul.mubr.bf16.gmra.mxu0 %v7311_v15  ;;  %2226 = vmatmul.mubr.bf16.gmra.mxu1 %v7311_v15  ;;  %v6350_v15 = vld [vmem:[#allocation5 + $0x2c4] ss:$16 sps:$4 sm:$0xff]  }
 0x278   : > { %2042 = vmatprep.mubr.bf16.mxu0 %v6992_v8  ;;  %2235 = vmatprep.mubr.bf16.mxu1 %v6992_v8 }
 0x279   : > { %4576 = vmatprep.subr.bf16.mxu1 %v6350_v15  ;;  %4539 = vmatprep.subr.bf16.mxu0 %v6359_v17 }
 0x27a   : > { %4577 = vmatpush1.bf16.msra.mxu1 %v6348_v12  ;;  %4540 = vmatpush1.bf16.msra.mxu0 %v6357_v20  ;;  %v6405_v12 = vld [vmem:[#allocation5 + $0x180] ss:$16 sps:$4 sm:$0xff]  }
 0x27b   : > { %4578 = vmatprep.subr.bf16.mxu1 %v6356_v14  ;;  %4541 = vmatprep.subr.bf16.mxu0 %v6365_v26 }
 0x27e   : > { %4542 = vmatpush1.bf16.msra.mxu0 %v6363_v29 }
 0x27f   : > { %2043 = vmatmul.mubr.bf16.gmra.mxu0 %v7319_v41  ;;  %2236 = vmatmul.mubr.bf16.gmra.mxu1 %v7319_v41  ;;  %v6354_v41 = vld [vmem:[#allocation5 + $0x2a0] ss:$16 sps:$4 sm:$0xff]  }
 0x280   : > { %2052 = vmatprep.mubr.bf16.mxu0 %v6992_v8  ;;  %2245 = vmatprep.mubr.bf16.mxu1 %v6992_v8 }
 0x281   : > { %4579 = vmatpush1.bf16.msra.mxu1 %v6354_v41  ;;  %4543 = vmatprep.subr.bf16.mxu0 %v6371_v31  ;;  %v6416_v31 = vld [vmem:[#allocation5 + $0x364] ss:$16 sps:$4 sm:$0xff]  }
 0x282   : > { %4580 = vmatprep.subr.bf16.mxu1 %v6362_v18  ;;  %4544 = vmatpush1.bf16.msra.mxu0 %v6369_v22 }
 0x283   : > { %4545 = vmatprep.subr.bf16.mxu0 %v6377_v23 }
 0x285   : > { %4581 = vmatpush1.bf16.msra.mxu1 %v6360_v25 }
 0x286   : > { %4582 = vmatprep.subr.bf16.mxu1 %v6368_v28  ;;  %4546 = vmatpush1.bf16.msra.mxu0 %v6375_v34 }
 0x287   : > { %2053 = vmatmul.mubr.bf16.gmra.mxu0 %v7330_v55  ;;  %2246 = vmatmul.mubr.bf16.gmra.mxu1 %v7330_v55  ;;  %v6366_v55 = vld [vmem:[#allocation5 + $0x260] ss:$16 sps:$4 sm:$0xff]  }
 0x288   : > { %2062 = vmatprep.mubr.bf16.mxu0 %v6992_v8  ;;  %2255 = vmatprep.mubr.bf16.mxu1 %v6992_v8 }
 0x289   : > { %4583 = vmatpush1.bf16.msra.mxu1 %v6366_v55  ;;  %4547 = vmatprep.subr.bf16.mxu0 %v6383_v38  ;;  %v6413_v55 = vld [vmem:[#allocation5 + $0x164] ss:$16 sps:$4 sm:$0xff]  }
 0x28a   : > { %4584 = vmatprep.subr.bf16.mxu1 %v6374_v32  ;;  %4548 = vmatpush1.bf16.msra.mxu0 %v6381_v40 }
 0x28b   : > { %4549 = vmatprep.subr.bf16.mxu0 %v6389_v45 }
 0x28d   : > { %4585 = vmatpush1.bf16.msra.mxu1 %v6372_v27 }
 0x28e   : > { %4586 = vmatprep.subr.bf16.mxu1 %v6380_v24  ;;  %v6411_v24 = vld [vmem:[#allocation5 + $0x160] ss:$16 sps:$4 sm:$0xff]  }
 0x28f   : > { %2063 = vmatmul.mubr.bf16.gmra.mxu0 %v7336_v61  ;;  %2256 = vmatmul.mubr.bf16.gmra.mxu1 %v7336_v61  ;;  %v6378_v61 = vld [vmem:[#allocation5 + $0x220] ss:$16 sps:$4 sm:$0xff]  }
 0x290   : > { %2072 = vmatprep.mubr.bf16.mxu0 %v6992_v8  ;;  %2265 = vmatprep.mubr.bf16.mxu1 %v6992_v8 }
 0x291   : > { %4587 = vmatpush1.bf16.msra.mxu1 %v6378_v61 }
 0x292   : > { %4588 = vmatprep.subr.bf16.mxu1 %v6386_v39  ;;  %v6414_v39 = vld [vmem:[#allocation5 + $0x360] ss:$16 sps:$4 sm:$0xff]  }
 0x295   : > { %4589 = vmatpush1.bf16.msra.mxu1 %v6384_v42 }
 0x296   : > { %4590 = vmatprep.subr.bf16.mxu1 %v6392_v46 }
 0x297   : > { %2073 = vmatmul.mubr.bf16.gmra.mxu0 %v7346_v4  ;;  %2266 = vmatmul.mubr.bf16.gmra.mxu1 %v7346_v4  ;;  %v6387_v4 = vld [vmem:[#allocation5 + $0x1e0] ss:$16 sps:$4 sm:$0xff]  }
 0x298   : > { %2082 = vmatprep.mubr.bf16.mxu0 %v6992_v8  ;;  %2275 = vmatprep.mubr.bf16.mxu1 %v6992_v8 }
 0x299   : > { %4550 = vmatpush2.bf16.msra.mxu0 %v6387_v4  ;;  %4591 = vmatpush2.bf16.msra.mxu1 %v6390_v47 }
 0x29a   : > { %4551 = vmatprep.subr.bf16.mxu0 %v6395_v50  ;;  %4592 = vmatprep.subr.bf16.mxu1 %v6398_v51 }
 0x29d   : > { %4593 = vmatpush2.bf16.msra.mxu1 %v6396_v56  ;;  %v6422_v56 = vld [vmem:[#allocation5 + $0x344] ss:$16 sps:$4 sm:$0xff]  }
 0x29e   : > { %4594 = vmatprep.subr.bf16.mxu1 %v6404_v0 }
 0x29f   : > { %2083 = vmatmul.mubr.bf16.gmra.mxu0 %v7352_v10  ;;  %2276 = vmatmul.mubr.bf16.gmra.mxu1 %v7352_v10  ;;  %v6393_v10 = vld [vmem:[#allocation5 + $0x1c0] ss:$16 sps:$4 sm:$0xff]  }
 0x2a0   : > { %2092 = vmatprep.mubr.bf16.mxu0 %v6992_v8  ;;  %2285 = vmatprep.mubr.bf16.mxu1 %v6992_v8 }
 0x2a1   : > { %4552 = vmatpush2.bf16.msra.mxu0 %v6393_v10  ;;  %4595 = vmatpush2.bf16.msra.mxu1 %v6402_v2  ;;  %v6419_v10 = vld [vmem:[#allocation5 + $0x144] ss:$16 sps:$4 sm:$0xff]   ;;  %v6417_v2 = vld [vmem:[#allocation5 + $0x140] ss:$16 sps:$4 sm:$0xff]  }
 0x2a2   : > { %4553 = vmatprep.subr.bf16.mxu0 %v6401_v63  ;;  %4596 = vmatprep.subr.bf16.mxu1 %v6410_v11 }
 0x2a5   : > { %4554 = vmatpush2.bf16.msra.mxu0 %v6399_v1  ;;  %4597 = vmatpush2.bf16.msra.mxu1 %v6408_v13 }
 0x2a6   : > { %4598 = vmatprep.subr.bf16.mxu1 %v6416_v31 }
 0x2a7   : > { %v1628_v52 = vpop.f32.mrf.mxu0  ;;  %v1821_v5 = vpop.f32.mrf.mxu1  ;;  %2093 = vmatmul.mubr.bf16.gmra.mxu0 %v7362_v21  ;;  %2286 = vmatmul.mubr.bf16.gmra.mxu1 %v7362_v21  ;;  %v6407_v21 = vld [vmem:[#allocation5 + $0x184] ss:$16 sps:$4 sm:$0xff]  }
 0x2a8   : > { %2102 = vmatprep.mubr.bf16.mxu0 %v6992_v8  ;;  %2295 = vmatprep.mubr.bf16.mxu1 %v6992_v8  ;;  %v1629_v7 = vadd.f32 %v1628_v52, %v7471_v58  ;;  %v1822_v9 = vadd.f32 %v1821_v5, %v7476_v62 }
 0x2a9   : > { %v1630_v36 = vpop.f32.mrf.mxu0  ;;  %v1823_v15 = vpop.f32.mrf.mxu1  ;;  %4555 = vmatprep.subr.bf16.mxu0 %v6407_v21  ;;  %4599 = vmatpush2.bf16.msra.mxu1 %v6414_v39 }
 0x2aa   : > { %v1631_v14 = vadd.f32 %v1630_v36, %v7482_v19  ;;  %v1824_v16 = vadd.f32 %v1823_v15, %v7487_v33  ;;  %v2366_v25 = vmax.f32 %v1629_v7, 0.0  ;;  %v2368_v26 = vmax.f32 %v1822_v9, 0.0  ;;  %4556 = vmatpush2.bf16.msra.mxu0 %v6405_v12  ;;  %4600 = vmatprep.subr.bf16.mxu1 %v6422_v56 }
 0x2ab   : > { %v1632_v41 = vpop.f32.mrf.mxu0  ;;  %v1825_v17 = vpop.f32.mrf.mxu1  ;;  %4557 = vmatprep.subr.bf16.mxu0 %v6413_v55 }
 0x2ac   : > { %v1633_v18 = vadd.f32 %v1632_v41, %v7471_v58  ;;  %v1826_v20 = vadd.f32 %v1825_v17, %v7476_v62  ;;  %v2367_v34 = vmax.f32 %v1631_v14, 0.0  ;;  %v2369_v61 = vmax.f32 %v1824_v16, 0.0  ;;  %v6420_v41 = vld [vmem:[#allocation5 + $0x340] ss:$16 sps:$4 sm:$0xff]  }
 0x2ad   : > { %v1634_v28 = vpop.f32.mrf.mxu0  ;;  %v1827_v29 = vpop.f32.mrf.mxu1  ;;  %4601 = vmatpush2.bf16.msra.mxu1 %v6420_v41 }
 0x2ae   : > { %v2374_v32 = vmax.f32 %v1633_v18, 0.0  ;;  %v2376_v22 = vmax.f32 %v1826_v20, 0.0  ;;  %v1635_v27 = vadd.f32 %v1634_v28, %v7482_v19  ;;  %v1828_v23 = vadd.f32 %v1827_v29, %v7487_v33  ;;  %4558 = vmatpush2.bf16.msra.mxu0 %v6411_v24  ;;  %v6428_v28 = vld [vmem:[#allocation5 + $0x324] ss:$16 sps:$4 sm:$0xff]  }
 0x2af   : > { %v1638_v35 = vpop.f32.mrf.mxu0  ;;  %v1831_v38 = vpop.f32.mrf.mxu1  ;;  %2103 = vmatmul.mubr.bf16.gmra.mxu0 %v7368_v30  ;;  %2296 = vmatmul.mubr.bf16.gmra.mxu1 %v7368_v30 }
 0x2b0   : > { %v2622_v40 = vmax.f32 %v2366_v25, %v2374_v32  ;;  %v2664_v42 = vmax.f32 %v2368_v26, %v2376_v22  ;;  %v2375_v45 = vmax.f32 %v1635_v27, 0.0  ;;  %v2377_v46 = vmax.f32 %v1828_v23, 0.0  ;;  %2112 = vmatprep.mubr.bf16.mxu0 %v6992_v8  ;;  %2305 = vmatprep.mubr.bf16.mxu1 %v6992_v8  ;;  %v6425_v26 = vld [vmem:[#allocation5 + $0x124] ss:$16 sps:$4 sm:$0xff]   ;;  %v6423_v22 = vld [vmem:[#allocation5 + $0x120] ss:$16 sps:$4 sm:$0xff]  }
 0x2b1   : > { %v1639_v4 = vadd.f32 %v1638_v35, %v7471_v58  ;;  %v1832_v47 = vadd.f32 %v1831_v38, %v7476_v62  ;;  %v1640_v50 = vpop.f32.mrf.mxu0  ;;  %v1833_v51 = vpop.f32.mrf.mxu1  ;;  %4559 = vmatprep.subr.bf16.mxu0 %v6419_v10  ;;  %4602 = vmatprep.subr.bf16.mxu1 %v6428_v28 }
 0x2b2   : > { %v2643_v30 = vmax.f32 %v2367_v34, %v2375_v45  ;;  %v2685_v63 = vmax.f32 %v2369_v61, %v2377_v46  ;;  %v1641_v0 = vadd.f32 %v1640_v50, %v7482_v19  ;;  %v1834_v1 = vadd.f32 %v1833_v51, %v7487_v33  ;;  %4560 = vmatpush2.bf16.msra.mxu0 %v6417_v2 }
 0x2b3   : > { %v2382_v52 = vmax.f32 %v1639_v4, 0.0  ;;  %v2384_v5 = vmax.f32 %v1832_v47, 0.0  ;;  %v1642_v7 = vpop.f32.mrf.mxu0  ;;  %v1835_v9 = vpop.f32.mrf.mxu1  ;;  %4561 = vmatprep.subr.bf16.mxu0 %v6425_v26  ;;  %v6434_v47 = vld [vmem:[#allocation5 + $0x304] ss:$16 sps:$4 sm:$0xff]  }
 0x2b4   : > { %v2383_v36 = vmax.f32 %v1641_v0, 0.0  ;;  %v2385_v15 = vmax.f32 %v1834_v1, 0.0  ;;  %v1643_v21 = vadd.f32 %v1642_v7, %v7471_v58  ;;  %v1836_v11 = vadd.f32 %v1835_v9, %v7476_v62  ;;  %v6429_v9 = vld [vmem:[#allocation5 + $0x100] ss:$16 sps:$4 sm:$0xff]  }
 0x2b5   : > { %v2623_v12 = vmax.f32 %v2622_v40, %v2382_v52  ;;  %v2665_v13 = vmax.f32 %v2664_v42, %v2384_v5  ;;  %v1644_v14 = vpop.f32.mrf.mxu0  ;;  %v1837_v16 = vpop.f32.mrf.mxu1  ;;  %v6426_v40 = vld [vmem:[#allocation5 + $0x320] ss:$16 sps:$4 sm:$0xff]   ;;  %v6431_v42 = vld [vmem:[#allocation5 + $0x104] ss:$16 sps:$4 sm:$0xff]  }
 0x2b6   : > { %v2644_v17 = vmax.f32 %v2643_v30, %v2383_v36  ;;  %v2686_v18 = vmax.f32 %v2685_v63, %v2385_v15  ;;  %v2390_v20 = vmax.f32 %v1643_v21, 0.0  ;;  %v2392_v25 = vmax.f32 %v1836_v11, 0.0  ;;  %4562 = vmatpush2.bf16.msra.mxu0 %v6423_v22  ;;  %4603 = vmatpush2.bf16.msra.mxu1 %v6426_v40  ;;  %v6432_v36 = vld [vmem:[#allocation5 + $0x300] ss:$16 sps:$4 sm:$0xff]  }
 0x2b7   : > { %v1645_v29 = vadd.f32 %v1644_v14, %v7482_v19  ;;  %v1838_v55 = vadd.f32 %v1837_v16, %v7487_v33  ;;  %v1648_v31 = vpop.f32.mrf.mxu0  ;;  %v1841_v32 = vpop.f32.mrf.mxu1  ;;  %2113 = vmatmul.mubr.bf16.gmra.mxu0 %v7378_v37  ;;  %2306 = vmatmul.mubr.bf16.gmra.mxu1 %v7378_v37 }
 0x2b8   : > { %v2624_v27 = vmax.f32 %v2623_v12, %v2390_v20  ;;  %v2666_v23 = vmax.f32 %v2665_v13, %v2392_v25  ;;  %v1649_v24 = vadd.f32 %v1648_v31, %v7471_v58  ;;  %v1842_v34 = vadd.f32 %v1841_v32, %v7476_v62  ;;  %2122 = vmatprep.mubr.bf16.mxu0 %v6992_v8 }
 0x2b9   : > { %v2391_v61 = vmax.f32 %v1645_v29, 0.0  ;;  %v2393_v35 = vmax.f32 %v1838_v55, 0.0  ;;  %v1650_v38 = vpop.f32.mrf.mxu0  ;;  %v1843_v39 = vpop.f32.mrf.mxu1  ;;  %2315 = vmatprep.mubr.bf16.mxu1 %v6992_v8  ;;  %4563 = vmatprep.subr.bf16.mxu0 %v6431_v42 }
 0x2ba   : > { %v2398_v45 = vmax.f32 %v1649_v24, 0.0  ;;  %v2400_v37 = vmax.f32 %v1842_v34, 0.0  ;;  %v1651_v46 = vadd.f32 %v1650_v38, %v7482_v19  ;;  %v1844_v4 = vadd.f32 %v1843_v39, %v7487_v33  ;;  %4604 = vmatprep.subr.bf16.mxu1 %v6434_v47  ;;  %4564 = vmatpush2.bf16.msra.mxu0 %v6429_v9 }
 0x2bb   : > { %v2645_v50 = vmax.f32 %v2644_v17, %v2391_v61  ;;  %v2687_v51 = vmax.f32 %v2686_v18, %v2393_v35  ;;  %v1652_v10 = vpop.f32.mrf.mxu0  ;;  %v1845_v56 = vpop.f32.mrf.mxu1  ;;  %4605 = vmatpush2.bf16.msra.mxu1 %v6432_v36 }
 0x2bc   : > { %v2625_v30 = vmax.f32 %v2624_v27, %v2398_v45  ;;  %v2667_v63 = vmax.f32 %v2666_v23, %v2400_v37  ;;  %v2399_v0 = vmax.f32 %v1651_v46, 0.0  ;;  %v2401_v1 = vmax.f32 %v1844_v4, 0.0 }
 0x2bd   : > { %v1653_v2 = vadd.f32 %v1652_v10, %v7471_v58  ;;  %v1846_v52 = vadd.f32 %v1845_v56, %v7476_v62  ;;  %v1654_v5 = vpop.f32.mrf.mxu0  ;;  %v1847_v7 = vpop.f32.mrf.mxu1 }
 0x2be   : > { %v2646_v15 = vmax.f32 %v2645_v50, %v2399_v0  ;;  %v2688_v21 = vmax.f32 %v2687_v51, %v2401_v1  ;;  %v1655_v11 = vadd.f32 %v1654_v5, %v7482_v19  ;;  %v1848_v12 = vadd.f32 %v1847_v7, %v7487_v33 }
 0x2bf   : > { %v2406_v13 = vmax.f32 %v1653_v2, 0.0  ;;  %v2408_v14 = vmax.f32 %v1846_v52, 0.0  ;;  %v1658_v16 = vpop.f32.mrf.mxu0  ;;  %v1851_v41 = vpop.f32.mrf.mxu1  ;;  %2123 = vmatmul.mubr.bf16.gmra.mxu0 %v7384_v43  ;;  %2316 = vmatmul.mubr.bf16.gmra.mxu1 %v7384_v43 }
 0x2c0   : > { %v2407_v17 = vmax.f32 %v1655_v11, 0.0  ;;  %v2409_v18 = vmax.f32 %v1848_v12, 0.0  ;;  %v1659_v20 = vadd.f32 %v1658_v16, %v7471_v58  ;;  %v1852_v25 = vadd.f32 %v1851_v41, %v7476_v62  ;;  %2132 = vmatprep.mubr.bf16.mxu0 %v6992_v8  ;;  %2325 = vmatprep.mubr.bf16.mxu1 %v6992_v8 }
 0x2c1   : > { %v2626_v26 = vmax.f32 %v2625_v30, %v2406_v13  ;;  %v2668_v28 = vmax.f32 %v2667_v63, %v2408_v14  ;;  %v1660_v29 = vpop.f32.mrf.mxu0  ;;  %v1853_v55 = vpop.f32.mrf.mxu1 }
 0x2c2   : > { %v2647_v31 = vmax.f32 %v2646_v15, %v2407_v17  ;;  %v2689_v32 = vmax.f32 %v2688_v21, %v2409_v18  ;;  %v2414_v22 = vmax.f32 %v1659_v20, 0.0  ;;  %v2416_v43 = vmax.f32 %v1852_v25, 0.0 }
 0x2c3   : > { %v1661_v27 = vadd.f32 %v1660_v29, %v7482_v19  ;;  %v1854_v23 = vadd.f32 %v1853_v55, %v7487_v33  ;;  %v1662_v24 = vpop.f32.mrf.mxu0  ;;  %v1855_v34 = vpop.f32.mrf.mxu1 }
 0x2c4   : > { %v2627_v61 = vmax.f32 %v2626_v26, %v2414_v22  ;;  %v2669_v35 = vmax.f32 %v2668_v28, %v2416_v43  ;;  %v1663_v38 = vadd.f32 %v1662_v24, %v7471_v58  ;;  %v1856_v39 = vadd.f32 %v1855_v34, %v7476_v62 }
 0x2c5   : > { %v2415_v40 = vmax.f32 %v1661_v27, 0.0  ;;  %v2417_v42 = vmax.f32 %v1854_v23, 0.0  ;;  %v1664_v45 = vpop.f32.mrf.mxu0  ;;  %v1857_v37 = vpop.f32.mrf.mxu1 }
 0x2c6   : > { %v2422_v46 = vmax.f32 %v1663_v38, 0.0  ;;  %v2424_v4 = vmax.f32 %v1856_v39, 0.0  ;;  %v1665_v47 = vadd.f32 %v1664_v45, %v7482_v19  ;;  %v1858_v50 = vadd.f32 %v1857_v37, %v7487_v33 }
 0x2c7   : > { %v2648_v51 = vmax.f32 %v2647_v31, %v2415_v40  ;;  %v2690_v10 = vmax.f32 %v2689_v32, %v2417_v42  ;;  %v1668_v56 = vpop.f32.mrf.mxu0  ;;  %v1861_v30 = vpop.f32.mrf.mxu1  ;;  %2133 = vmatmul.mubr.bf16.gmra.mxu0 %v7394_v53  ;;  %2326 = vmatmul.mubr.bf16.gmra.mxu1 %v7394_v53 }
 0x2c8   : > { %v2628_v63 = vmax.f32 %v2627_v61, %v2422_v46  ;;  %v2670_v0 = vmax.f32 %v2669_v35, %v2424_v4  ;;  %v2423_v1 = vmax.f32 %v1665_v47, 0.0  ;;  %v2425_v2 = vmax.f32 %v1858_v50, 0.0  ;;  %2142 = vmatprep.mubr.bf16.mxu0 %v6992_v8  ;;  %2335 = vmatprep.mubr.bf16.mxu1 %v6992_v8 }
 0x2c9   : > { %v1669_v52 = vadd.f32 %v1668_v56, %v7471_v58  ;;  %v1862_v5 = vadd.f32 %v1861_v30, %v7476_v62  ;;  %v1670_v7 = vpop.f32.mrf.mxu0  ;;  %v1863_v9 = vpop.f32.mrf.mxu1 }
 0x2ca   : > { %v2649_v36 = vmax.f32 %v2648_v51, %v2423_v1  ;;  %v2691_v15 = vmax.f32 %v2690_v10, %v2425_v2  ;;  %v1671_v21 = vadd.f32 %v1670_v7, %v7482_v19  ;;  %v1864_v53 = vadd.f32 %v1863_v9, %v7487_v33 }
 0x2cb   : > { %v2430_v11 = vmax.f32 %v1669_v52, 0.0  ;;  %v2432_v12 = vmax.f32 %v1862_v5, 0.0  ;;  %v1672_v13 = vpop.f32.mrf.mxu0  ;;  %v1865_v14 = vpop.f32.mrf.mxu1 }
 0x2cc   : > { %v2431_v16 = vmax.f32 %v1671_v21, 0.0  ;;  %v2433_v41 = vmax.f32 %v1864_v53, 0.0  ;;  %v1673_v17 = vadd.f32 %v1672_v13, %v7471_v58  ;;  %v1866_v18 = vadd.f32 %v1865_v14, %v7476_v62 }
 0x2cd   : > { %v2629_v20 = vmax.f32 %v2628_v63, %v2430_v11  ;;  %v2671_v25 = vmax.f32 %v2670_v0, %v2432_v12  ;;  %v1674_v26 = vpop.f32.mrf.mxu0  ;;  %v1867_v28 = vpop.f32.mrf.mxu1 }
 0x2ce   : > { %v2650_v29 = vmax.f32 %v2649_v36, %v2431_v16  ;;  %v2692_v55 = vmax.f32 %v2691_v15, %v2433_v41  ;;  %v2438_v31 = vmax.f32 %v1673_v17, 0.0  ;;  %v2440_v32 = vmax.f32 %v1866_v18, 0.0 }
 0x2cf   : > { %v1675_v22 = vadd.f32 %v1674_v26, %v7482_v19  ;;  %v1868_v43 = vadd.f32 %v1867_v28, %v7487_v33  ;;  %v1678_v27 = vpop.f32.mrf.mxu0  ;;  %v1871_v23 = vpop.f32.mrf.mxu1  ;;  %2143 = vmatmul.mubr.bf16.gmra.mxu0 %v7400_v60  ;;  %2336 = vmatmul.mubr.bf16.gmra.mxu1 %v7400_v60 }
 0x2d0   : > { %v2630_v24 = vmax.f32 %v2629_v20, %v2438_v31  ;;  %v2672_v34 = vmax.f32 %v2671_v25, %v2440_v32  ;;  %v1679_v61 = vadd.f32 %v1678_v27, %v7471_v58  ;;  %v1872_v35 = vadd.f32 %v1871_v23, %v7476_v62  ;;  %2152 = vmatprep.mubr.bf16.mxu0 %v6992_v8 }
 0x2d1   : > { %v2439_v38 = vmax.f32 %v1675_v22, 0.0  ;;  %v2441_v39 = vmax.f32 %v1868_v43, 0.0  ;;  %v1680_v40 = vpop.f32.mrf.mxu0  ;;  %v1873_v42 = vpop.f32.mrf.mxu1  ;;  %2345 = vmatprep.mubr.bf16.mxu1 %v6992_v8 }
 0x2d2   : > { %v2446_v45 = vmax.f32 %v1679_v61, 0.0  ;;  %v2448_v37 = vmax.f32 %v1872_v35, 0.0  ;;  %v1681_v46 = vadd.f32 %v1680_v40, %v7482_v19  ;;  %v1874_v60 = vadd.f32 %v1873_v42, %v7487_v33 }
 0x2d3   : > { %v2651_v4 = vmax.f32 %v2650_v29, %v2439_v38  ;;  %v2693_v47 = vmax.f32 %v2692_v55, %v2441_v39  ;;  %v1682_v50 = vpop.f32.mrf.mxu0  ;;  %v1875_v51 = vpop.f32.mrf.mxu1 }
 0x2d4   : > { %v2631_v10 = vmax.f32 %v2630_v24, %v2446_v45  ;;  %v2673_v56 = vmax.f32 %v2672_v34, %v2448_v37  ;;  %v2447_v30 = vmax.f32 %v1681_v46, 0.0  ;;  %v2449_v63 = vmax.f32 %v1874_v60, 0.0 }
 0x2d5   : > { %v1683_v0 = vadd.f32 %v1682_v50, %v7471_v58  ;;  %v1876_v1 = vadd.f32 %v1875_v51, %v7476_v62  ;;  %v1684_v2 = vpop.f32.mrf.mxu0  ;;  %v1877_v52 = vpop.f32.mrf.mxu1 }
 0x2d6   : > { %v2652_v5 = vmax.f32 %v2651_v4, %v2447_v30  ;;  %v2694_v7 = vmax.f32 %v2693_v47, %v2449_v63  ;;  %v1685_v9 = vadd.f32 %v1684_v2, %v7482_v19  ;;  %v1878_v36 = vadd.f32 %v1877_v52, %v7487_v33 }
 0x2d7   : > { %v2454_v15 = vmax.f32 %v1683_v0, 0.0  ;;  %v2456_v21 = vmax.f32 %v1876_v1, 0.0  ;;  %v1688_v53 = vpop.f32.mrf.mxu0  ;;  %v1881_v11 = vpop.f32.mrf.mxu1  ;;  %2153 = vmatmul.mubr.bf16.gmra.mxu0 %v7410_v3  ;;  %2346 = vmatmul.mubr.bf16.gmra.mxu1 %v7410_v3 }
 0x2d8   : > { %v1689_v12 = vadd.f32 %v1688_v53, %v7471_v58  ;;  %v1882_v13 = vadd.f32 %v1881_v11, %v7476_v62  ;;  %2162 = vmatprep.mubr.bf16.mxu0 %v6992_v8  ;;  %2355 = vmatprep.mubr.bf16.mxu1 %v6992_v8  ;;  %v2455_v41 = vmax.f32 %v1685_v9, 0.0  ;;  %v2457_v17 = vmax.f32 %v1878_v36, 0.0 }
 0x2d9   : > { %v2632_v14 = vmax.f32 %v2631_v10, %v2454_v15  ;;  %v2674_v16 = vmax.f32 %v2673_v56, %v2456_v21  ;;  %v1690_v18 = vpop.f32.mrf.mxu0  ;;  %v1883_v20 = vpop.f32.mrf.mxu1 }
 0x2da   : > { %v2462_v25 = vmax.f32 %v1689_v12, 0.0  ;;  %v2464_v26 = vmax.f32 %v1882_v13, 0.0  ;;  %v1691_v28 = vadd.f32 %v1690_v18, %v7482_v19  ;;  %v1884_v3 = vadd.f32 %v1883_v20, %v7487_v33 }
 0x2db   : > { %v1692_v29 = vpop.f32.mrf.mxu0  ;;  %v1885_v55 = vpop.f32.mrf.mxu1  ;;  %v2653_v43 = vmax.f32 %v2652_v5, %v2455_v41  ;;  %v2695_v27 = vmax.f32 %v2694_v7, %v2457_v17 }
 0x2dc   : > { %v2633_v31 = vmax.f32 %v2632_v14, %v2462_v25  ;;  %v2675_v32 = vmax.f32 %v2674_v16, %v2464_v26  ;;  %v1693_v22 = vadd.f32 %v1692_v29, %v7471_v58  ;;  %v1886_v8 = vadd.f32 %v1885_v55, %v7476_v62 }
 0x2dd   : > { %v2463_v23 = vmax.f32 %v1691_v28, 0.0  ;;  %v2465_v24 = vmax.f32 %v1884_v3, 0.0  ;;  %v1694_v34 = vpop.f32.mrf.mxu0  ;;  %v1887_v61 = vpop.f32.mrf.mxu1 }
 0x2de   : > { %v2470_v35 = vmax.f32 %v1693_v22, 0.0  ;;  %v2472_v38 = vmax.f32 %v1886_v8, 0.0  ;;  %v1695_v39 = vadd.f32 %v1694_v34, %v7482_v19  ;;  %v1888_v40 = vadd.f32 %v1887_v61, %v7487_v33 }
 0x2df   : > { %v2654_v42 = vmax.f32 %v2653_v43, %v2463_v23  ;;  %v2696_v45 = vmax.f32 %v2695_v27, %v2465_v24  ;;  %v1698_v37 = vpop.f32.mrf.mxu0  ;;  %v1891_v46 = vpop.f32.mrf.mxu1  ;;  %2163 = vmatmul.mubr.bf16.gmra.mxu0 %v7416_v6  ;;  %2356 = vmatmul.mubr.bf16.gmra.mxu1 %v7416_v6 }
 0x2e0   : > { %v2634_v60 = vmax.f32 %v2633_v31, %v2470_v35  ;;  %v2676_v4 = vmax.f32 %v2675_v32, %v2472_v38  ;;  %v2471_v47 = vmax.f32 %v1695_v39, 0.0  ;;  %v2473_v50 = vmax.f32 %v1888_v40, 0.0 }
 0x2e1   : > { %v1699_v51 = vadd.f32 %v1698_v37, %v7471_v58  ;;  %v1892_v10 = vadd.f32 %v1891_v46, %v7476_v62  ;;  %v1700_v56 = vpop.f32.mrf.mxu0  ;;  %v1893_v30 = vpop.f32.mrf.mxu1 }
 0x2e2   : > { %v1701_v63 = vadd.f32 %v1700_v56, %v7482_v19  ;;  %v1894_v0 = vadd.f32 %v1893_v30, %v7487_v33  ;;  %v2655_v1 = vmax.f32 %v2654_v42, %v2471_v47  ;;  %v2697_v2 = vmax.f32 %v2696_v45, %v2473_v50 }
 0x2e3   : > { %v2478_v52 = vmax.f32 %v1699_v51, 0.0  ;;  %v2480_v5 = vmax.f32 %v1892_v10, 0.0  ;;  %v1702_v7 = vpop.f32.mrf.mxu0  ;;  %v1895_v6 = vpop.f32.mrf.mxu1  ;;  %v1256_v51 = vsub.s32 5, %v7450_v44  ;;  %v1264_v10 = vsub.s32 7, %v7450_v44 }
 0x2e4   : > { %v2479_v9 = vmax.f32 %v1701_v63, 0.0  ;;  %v2481_v36 = vmax.f32 %v1894_v0, 0.0  ;;  %v1703_v15 = vadd.f32 %v1702_v7, %v7471_v58  ;;  %v1896_v21 = vadd.f32 %v1895_v6, %v7476_v62 }
 0x2e5   : > { %v2635_v53 = vmax.f32 %v2634_v60, %v2478_v52  ;;  %v2677_v11 = vmax.f32 %v2676_v4, %v2480_v5  ;;  %v1704_v12 = vpop.f32.mrf.mxu0  ;;  %v1897_v13 = vpop.f32.mrf.mxu1  ;;  %v1252_v60 = vsub.s32 4, %v7450_v44  ;;  %v1260_v4 = vsub.s32 6, %v7450_v44 }
 0x2e6   : > { %v2656_v14 = vmax.f32 %v2655_v1, %v2479_v9  ;;  %v2698_v16 = vmax.f32 %v2697_v2, %v2481_v36  ;;  %v2486_v41 = vmax.f32 %v1703_v15, 0.0  ;;  %v2488_v17 = vmax.f32 %v1896_v21, 0.0 }
 0x2e7   : > { %v1708_v18 = vpop.f32.mrf.mxu0  ;;  %v1901_v20 = vpop.f32.mrf.mxu1  ;;  %v1705_v28 = vadd.f32 %v1704_v12, %v7482_v19  ;;  %v1898_v3 = vadd.f32 %v1897_v13, %v7487_v33  ;;  %v7592_v15 = vrot.slane %v7463_v54, %v1252_v60  ;;  %v7595_v21 = vrot.slane %v7463_v54, %v1260_v4 }
 0x2e8   : > { %v2636_v25 = vmax.f32 %v2635_v53, %v2486_v41  ;;  %v2678_v26 = vmax.f32 %v2677_v11, %v2488_v17  ;;  %v1709_v1 = vadd.f32 %v1708_v18, %v7471_v58  ;;  %v1902_v2 = vadd.f32 %v1901_v20, %v7476_v62 }
 0x2e9   : > { %v1710_v29 = vpop.f32.mrf.mxu0  ;;  %v1903_v55 = vpop.f32.mrf.mxu1  ;;  %v2487_v22 = vmax.f32 %v1705_v28, 0.0  ;;  %v2489_v8 = vmax.f32 %v1898_v3, 0.0  ;;  %v7598_v12 = vrot.slane %v7463_v54, %v1256_v51  ;;  %v7601_v13 = vrot.slane %v7463_v54, %v1264_v10 }
 0x2ea   : > { %v2637_v23 = vrot.slane %v2636_v25, 4  ;;  %v2679_v24 = vrot.slane %v2678_v26, 4  ;;  %v1711_v52 = vadd.f32 %v1710_v29, %v7482_v19  ;;  %v1904_v5 = vadd.f32 %v1903_v55, %v7487_v33 }
 0x2eb   : > { %v1712_v31 = vpop.f32.mrf.mxu0  ;;  %v1905_v32 = vpop.f32.mrf.mxu1  ;;  %v2657_v35 = vmax.f32 %v2656_v14, %v2487_v22  ;;  %v2699_v38 = vmax.f32 %v2698_v16, %v2489_v8 }
 0x2ec   : > { %v2638_v42 = vmax.f32 %v2636_v25, %v2637_v23  ;;  %v2680_v45 = vmax.f32 %v2678_v26, %v2679_v24  ;;  %v1713_v56 = vadd.f32 %v1712_v31, %v7471_v58  ;;  %v1906_v30 = vadd.f32 %v1905_v32, %v7476_v62 }
 0x2ed   : > { %v1714_v43 = vpop.f32.mrf.mxu0  ;;  %v1907_v27 = vpop.f32.mrf.mxu1  ;;  %v2658_v47 = vrot.slane %v2657_v35, 4  ;;  %v2700_v50 = vrot.slane %v2699_v38, 4  ;;  %v2494_v25 = vmax.f32 %v1709_v1, 0.0  ;;  %v2496_v26 = vmax.f32 %v1902_v2, 0.0 }
 0x2ee   : > { %v2639_v7 = vrot.slane %v2638_v42, 2  ;;  %v2681_v6 = vrot.slane %v2680_v45, 2  ;;  %v2502_v14 = vmax.f32 %v1713_v56, 0.0  ;;  %v2504_v16 = vmax.f32 %v1906_v30, 0.0 }
 0x2ef   : > { %v1718_v34 = vpop.f32.mrf.mxu0  ;;  %v1911_v61 = vpop.f32.mrf.mxu1  ;;  %v2659_v53 = vmax.f32 %v2657_v35, %v2658_v47  ;;  %v2701_v11 = vmax.f32 %v2699_v38, %v2700_v50  ;;  %v1715_v41 = vadd.f32 %v1714_v43, %v7482_v19  ;;  %v1908_v17 = vadd.f32 %v1907_v27, %v7487_v33 }
 0x2f0   : > { %v2495_v28 = vmax.f32 %v1711_v52, 0.0  ;;  %v2497_v3 = vmax.f32 %v1904_v5, 0.0  ;;  %v7605_v29 = vmax.f32 %v2638_v42, %v2639_v7  ;;  %v7607_v55 = vmax.f32 %v2680_v45, %v2681_v6  ;;  %v6437_v52 = vld [vmem:[#allocation5 + $0x4e4] ss:$16 sps:$4 sm:$0xff]  }
 0x2f1   : > { %v1720_v39 = vpop.f32.mrf.mxu0  ;;  %v1913_v40 = vpop.f32.mrf.mxu1  ;;  %v1719_v31 = vadd.f32 %v1718_v34, %v7471_v58  ;;  %v1912_v54 = vadd.f32 %v1911_v61, %v7476_v62  ;;  %v2660_v8 = vrot.slane %v2659_v53, 2  ;;  %v2702_v43 = vrot.slane %v2701_v11, 2  ;;  %4615 = vmatprep.subr.bf16.mxu0 %v6437_v52 }
 0x2f2   : > { %v1721_v27 = vadd.f32 %v1720_v39, %v7482_v19  ;;  %v1914_v23 = vadd.f32 %v1913_v40, %v7487_v33  ;;  %v2790_v24 = vmax.f32 %v2494_v25, %v2502_v14  ;;  %v2832_v35 = vmax.f32 %v2496_v26, %v2504_v16  ;;  %v6440_v14 = vld [vmem:[#allocation5 + $0x6e4] ss:$16 sps:$4 sm:$0xff]  }
 0x2f3   : > { %v1722_v37 = vpop.f32.mrf.mxu0  ;;  %v1915_v46 = vpop.f32.mrf.mxu1  ;;  %v2503_v38 = vmax.f32 %v1715_v41, 0.0  ;;  %v2505_v60 = vmax.f32 %v1908_v17, 0.0  ;;  %v2641_v50 = vrot.slane %v7605_v29, 1  ;;  %v2683_v39 = vrot.slane %v7607_v55, 1  ;;  %4656 = vmatprep.subr.bf16.mxu1 %v6440_v14 }
 0x2f4   : > { %v1723_v45 = vadd.f32 %v1722_v37, %v7471_v58  ;;  %v1916_v34 = vadd.f32 %v1915_v46, %v7476_v62  ;;  %v2510_v51 = vmax.f32 %v1719_v31, 0.0  ;;  %v2512_v40 = vmax.f32 %v1912_v54, 0.0 }
 0x2f5   : > { %v1724_v63 = vpop.f32.mrf.mxu0  ;;  %v1917_v0 = vpop.f32.mrf.mxu1  ;;  %v7619_v30 = vmax.f32 %v2659_v53, %v2660_v8  ;;  %v7621_v1 = vmax.f32 %v2701_v11, %v2702_v43  ;;  %v2511_v2 = vmax.f32 %v1721_v27, 0.0  ;;  %v2513_v37 = vmax.f32 %v1914_v23, 0.0 }
 0x2f6   : > { %v1725_v61 = vadd.f32 %v1724_v63, %v7482_v19  ;;  %v1918_v47 = vadd.f32 %v1917_v0, %v7487_v33  ;;  %v2811_v46 = vmax.f32 %v2495_v28, %v2503_v38  ;;  %v2853_v5 = vmax.f32 %v2497_v3, %v2505_v60 }
 0x2f7   : > { %v1728_v9 = vpop.f32.mrf.mxu0  ;;  %v1921_v36 = vpop.f32.mrf.mxu1  ;;  %v2518_v16 = vmax.f32 %v1723_v45, 0.0  ;;  %v2520_v41 = vmax.f32 %v1916_v34, 0.0  ;;  %v2791_v53 = vmax.f32 %v2790_v24, %v2510_v51  ;;  %v2833_v11 = vmax.f32 %v2832_v35, %v2512_v40 }
 0x2f8   : > { %v1729_v63 = vadd.f32 %v1728_v9, %v7471_v58  ;;  %v1922_v0 = vadd.f32 %v1921_v36, %v7476_v62  ;;  %v2519_v17 = vmax.f32 %v1725_v61, 0.0  ;;  %v2521_v25 = vmax.f32 %v1918_v47, 0.0 }
 0x2f9   : > { %v1730_v18 = vpop.f32.mrf.mxu0  ;;  %v1923_v20 = vpop.f32.mrf.mxu1  ;;  %v2812_v9 = vmax.f32 %v2811_v46, %v2511_v2  ;;  %v2854_v54 = vmax.f32 %v2853_v5, %v2513_v37  ;;  %v2834_v60 = vmax.f32 %v2833_v11, %v2520_v41 }
 0x2fa   : > { %v1731_v26 = vadd.f32 %v1730_v18, %v7482_v19  ;;  %v1924_v31 = vadd.f32 %v1923_v20, %v7487_v33  ;;  %v2526_v43 = vmax.f32 %v1729_v63, 0.0  ;;  %v2528_v27 = vmax.f32 %v1922_v0, 0.0 }
 0x2fb   : > { %v1732_v32 = vpop.f32.mrf.mxu0  ;;  %v1925_v22 = vpop.f32.mrf.mxu1  ;;  %v2792_v18 = vmax.f32 %v2791_v53, %v2518_v16  ;;  %v2813_v20 = vmax.f32 %v2812_v9, %v2519_v17  ;;  %v2855_v45 = vmax.f32 %v2854_v54, %v2521_v25 }
 0x2fc   : > { %v1733_v36 = vadd.f32 %v1732_v32, %v7471_v58  ;;  %v1926_v8 = vadd.f32 %v1925_v22, %v7476_v62  ;;  %v2527_v34 = vmax.f32 %v1731_v26, 0.0  ;;  %v2529_v61 = vmax.f32 %v1924_v31, 0.0 }
 0x2fd   : > { %v1734_v42 = vpop.f32.mrf.mxu0  ;;  %v1927_v4 = vpop.f32.mrf.mxu1  ;;  %v2793_v37 = vmax.f32 %v2792_v18, %v2526_v43  ;;  %v2835_v52 = vmax.f32 %v2834_v60, %v2528_v27 }
 0x2fe   : > { %v1735_v23 = vadd.f32 %v1734_v42, %v7482_v19  ;;  %v1928_v24 = vadd.f32 %v1927_v4, %v7487_v33  ;;  %v2534_v40 = vmax.f32 %v1733_v36, 0.0  ;;  %v2536_v2 = vmax.f32 %v1926_v8, 0.0 }
 0x2ff   : > { %v1738_v10 = vpop.f32.mrf.mxu0  ;;  %v1931_v56 = vpop.f32.mrf.mxu1  ;;  %v2814_v41 = vmax.f32 %v2813_v20, %v2527_v34  ;;  %v2856_v17 = vmax.f32 %v2855_v45, %v2529_v61 }
 0x300   : > { %v1739_v47 = vadd.f32 %v1738_v10, %v7471_v58  ;;  %v1932_v32 = vadd.f32 %v1931_v56, %v7476_v62  ;;  %v2535_v46 = vmax.f32 %v1735_v23, 0.0  ;;  %v2537_v5 = vmax.f32 %v1928_v24, 0.0 }
 0x301   : > { %v1740_v7 = vpop.f32.mrf.mxu0  ;;  %v1933_v6 = vpop.f32.mrf.mxu1  ;;  %v2794_v11 = vmax.f32 %v2793_v37, %v2534_v40  ;;  %v2836_v26 = vmax.f32 %v2835_v52, %v2536_v2 }
 0x302   : > { %v1741_v42 = vadd.f32 %v1740_v7, %v7482_v19  ;;  %v1934_v4 = vadd.f32 %v1933_v6, %v7487_v33  ;;  %v2542_v25 = vmax.f32 %v1739_v47, 0.0  ;;  %v2544_v7 = vmax.f32 %v1932_v32, 0.0 }
 0x303   : > { %v1742_v28 = vpop.f32.mrf.mxu0  ;;  %v1935_v3 = vpop.f32.mrf.mxu1  ;;  %v2815_v54 = vmax.f32 %v2814_v41, %v2535_v46  ;;  %v2857_v36 = vmax.f32 %v2856_v17, %v2537_v5 }
 0x304   : > { %v1743_v14 = vadd.f32 %v1742_v28, %v7471_v58  ;;  %v1936_v10 = vadd.f32 %v1935_v3, %v7476_v62  ;;  %v2543_v31 = vmax.f32 %v1741_v42, 0.0  ;;  %v2545_v9 = vmax.f32 %v1934_v4, 0.0 }
 0x305   : > { %v1744_v35 = vpop.f32.mrf.mxu0  ;;  %v1937_v38 = vpop.f32.mrf.mxu1  ;;  %v2837_v18 = vmax.f32 %v2836_v26, %v2544_v7 }
 0x306   : > { %v1745_v56 = vadd.f32 %v1744_v35, %v7482_v19  ;;  %v1938_v16 = vadd.f32 %v1937_v38, %v7487_v33  ;;  %v2550_v27 = vmax.f32 %v1743_v14, 0.0  ;;  %v2552_v23 = vmax.f32 %v1936_v10, 0.0 }
 0x307   : > { %v1748_v51 = vpop.f32.mrf.mxu0  ;;  %v1941_v22 = vpop.f32.mrf.mxu1  ;;  %v2795_v38 = vmax.f32 %v2794_v11, %v2542_v25  ;;  %v2816_v61 = vmax.f32 %v2815_v54, %v2543_v31  ;;  %v2858_v47 = vmax.f32 %v2857_v36, %v2545_v9 }
 0x308   : > { %v1749_v28 = vadd.f32 %v1748_v51, %v7471_v58  ;;  %v1942_v3 = vadd.f32 %v1941_v22, %v7476_v62  ;;  %v2551_v24 = vmax.f32 %v1745_v56, 0.0  ;;  %v2553_v35 = vmax.f32 %v1938_v16, 0.0 }
 0x309   : > { %v1750_v63 = vpop.f32.mrf.mxu0  ;;  %v1943_v0 = vpop.f32.mrf.mxu1  ;;  %v2796_v52 = vmax.f32 %v2795_v38, %v2550_v27  ;;  %v2838_v46 = vmax.f32 %v2837_v18, %v2552_v23 }
 0x30a   : > { %v1751_v60 = vadd.f32 %v1750_v63, %v7482_v19  ;;  %v1944_v20 = vadd.f32 %v1943_v0, %v7487_v33  ;;  %v2558_v22 = vmax.f32 %v1749_v28, 0.0  ;;  %v2560_v40 = vmax.f32 %v1942_v3, 0.0 }
 0x30b   : > { %v1752_v53 = vpop.f32.mrf.mxu0  ;;  %v1945_v6 = vpop.f32.mrf.mxu1  ;;  %v2817_v5 = vmax.f32 %v2816_v61, %v2551_v24  ;;  %v2859_v63 = vmax.f32 %v2858_v47, %v2553_v35 }
 0x30c   : > { %v1753_v32 = vadd.f32 %v1752_v53, %v7471_v58  ;;  %v1946_v51 = vadd.f32 %v1945_v6, %v7476_v62  ;;  %v2559_v0 = vmax.f32 %v1751_v60, 0.0  ;;  %v2561_v14 = vmax.f32 %v1944_v20, 0.0 }
 0x30d   : > { %v1754_v8 = vpop.f32.mrf.mxu0  ;;  %v1947_v43 = vpop.f32.mrf.mxu1  ;;  %v2797_v6 = vmax.f32 %v2796_v52, %v2558_v22  ;;  %v2839_v11 = vmax.f32 %v2838_v46, %v2560_v40 }
 0x30e   : > { %v1755_v2 = vadd.f32 %v1754_v8, %v7482_v19  ;;  %v1948_v42 = vadd.f32 %v1947_v43, %v7487_v33  ;;  %v2566_v17 = vmax.f32 %v1753_v32, 0.0  ;;  %v2568_v25 = vmax.f32 %v1946_v51, 0.0 }
 0x30f   : > { %v1758_v45 = vpop.f32.mrf.mxu0  ;;  %v1951_v34 = vpop.f32.mrf.mxu1  ;;  %v2818_v43 = vmax.f32 %v2817_v5, %v2559_v0  ;;  %v2860_v27 = vmax.f32 %v2859_v63, %v2561_v14 }
 0x310   : > { %v1759_v10 = vadd.f32 %v1758_v45, %v7471_v58  ;;  %v1952_v56 = vadd.f32 %v1951_v34, %v7476_v62  ;;  %v2567_v26 = vmax.f32 %v1755_v2, 0.0  ;;  %v2569_v31 = vmax.f32 %v1948_v42, 0.0 }
 0x311   : > { %v1760_v4 = vpop.f32.mrf.mxu0  ;;  %v1953_v37 = vpop.f32.mrf.mxu1  ;;  %v2798_v18 = vmax.f32 %v2797_v6, %v2566_v17  ;;  %v2840_v60 = vmax.f32 %v2839_v11, %v2568_v25  ;;  %v7669_v17 = vmax.f32 %v7607_v55, %v2683_v39 }
 0x312   : > { %v1761_v7 = vadd.f32 %v1760_v4, %v7482_v19  ;;  %v1954_v53 = vadd.f32 %v1953_v37, %v7487_v33  ;;  %v2574_v23 = vmax.f32 %v1759_v10, 0.0  ;;  %v2576_v24 = vmax.f32 %v1952_v56, 0.0 }
 0x313   : > { %v1762_v16 = vpop.f32.mrf.mxu0  ;;  %v1955_v41 = vpop.f32.mrf.mxu1  ;;  %v2819_v34 = vmax.f32 %v2818_v43, %v2567_v26  ;;  %v2861_v61 = vmax.f32 %v2860_v27, %v2569_v31 }
 0x314   : > { %v1763_v36 = vadd.f32 %v1762_v16, %v7471_v58  ;;  %v1956_v28 = vadd.f32 %v1955_v41, %v7476_v62  ;;  %v2575_v20 = vmax.f32 %v1761_v7, 0.0  ;;  %v2577_v45 = vmax.f32 %v1954_v53, 0.0 }
 0x315   : > { %v1764_v9 = vpop.f32.mrf.mxu0  ;;  %v1957_v54 = vpop.f32.mrf.mxu1  ;;  %v2799_v37 = vmax.f32 %v2798_v18, %v2574_v23  ;;  %v2841_v52 = vmax.f32 %v2840_v60, %v2576_v24  ;;  %v7664_v41 = vmax.f32 %v7605_v29, %v2641_v50 }
 0x316   : > { %v1765_v3 = vadd.f32 %v1764_v9, %v7482_v19  ;;  %v1958_v8 = vadd.f32 %v1957_v54, %v7487_v33  ;;  %v2582_v40 = vmax.f32 %v1763_v36, 0.0  ;;  %v2584_v2 = vmax.f32 %v1956_v28, 0.0 }
 0x317   : > { %v1768_v35 = vpop.f32.mrf.mxu0  ;;  %v1961_v38 = vpop.f32.mrf.mxu1  ;;  %v2820_v14 = vmax.f32 %v2819_v34, %v2575_v20  ;;  %v2862_v10 = vmax.f32 %v2861_v61, %v2577_v45  ;;  %v2662_v61 = vrot.slane %v7619_v30, 1 }
 0x318   : > { %v1769_v47 = vadd.f32 %v1768_v35, %v7471_v58  ;;  %v1962_v32 = vadd.f32 %v1961_v38, %v7476_v62  ;;  %v2583_v42 = vmax.f32 %v1765_v3, 0.0  ;;  %v2585_v4 = vmax.f32 %v1958_v8, 0.0 }
 0x319   : > { %v1770_v51 = vpop.f32.mrf.mxu0  ;;  %v1963_v22 = vpop.f32.mrf.mxu1  ;;  %v2800_v11 = vmax.f32 %v2799_v37, %v2582_v40  ;;  %v2842_v26 = vmax.f32 %v2841_v52, %v2584_v2 }
 0x31a   : > { %v1771_v46 = vadd.f32 %v1770_v51, %v7482_v19  ;;  %v1964_v5 = vadd.f32 %v1963_v22, %v7487_v33  ;;  %v2590_v25 = vmax.f32 %v1769_v47, 0.0  ;;  %v2592_v7 = vmax.f32 %v1962_v32, 0.0 }
 0x31b   : > { %v1772_v63 = vpop.f32.mrf.mxu0  ;;  %v1965_v0 = vpop.f32.mrf.mxu1  ;;  %v2821_v31 = vmax.f32 %v2820_v14, %v2583_v42  ;;  %v2863_v9 = vmax.f32 %v2862_v10, %v2585_v4  ;;  %v2704_v47 = vrot.slane %v7621_v1, 1 }
 0x31c   : > { %v1773_v56 = vadd.f32 %v1772_v63, %v7471_v58  ;;  %v1966_v16 = vadd.f32 %v1965_v0, %v7476_v62  ;;  %v2591_v54 = vmax.f32 %v1771_v46, 0.0  ;;  %v2593_v36 = vmax.f32 %v1964_v5, 0.0 }
 0x31d   : > { %v1774_v53 = vpop.f32.mrf.mxu0  ;;  %v1967_v6 = vpop.f32.mrf.mxu1  ;;  %v2801_v27 = vmax.f32 %v2800_v11, %v2590_v25  ;;  %v2843_v23 = vmax.f32 %v2842_v26, %v2592_v7 }
 0x31e   : > { %v1775_v28 = vadd.f32 %v1774_v53, %v7482_v19  ;;  %v1968_v29 = vadd.f32 %v1967_v6, %v7487_v33  ;;  %v2598_v8 = vmax.f32 %v1773_v56, 0.0  ;;  %v2600_v43 = vmax.f32 %v1966_v16, 0.0 }
 0x31f   : > { %v1778_v50 = vpop.f32.mrf.mxu0  ;;  %v1971_v3 = vpop.f32.mrf.mxu1  ;;  %v2822_v32 = vmax.f32 %v2821_v31, %v2591_v54  ;;  %v2864_v51 = vmax.f32 %v2863_v9, %v2593_v36 }
 0x320   : > { %v1779_v55 = vadd.f32 %v1778_v50, %v7471_v58  ;;  %v1972_v39 = vadd.f32 %v1971_v3, %v7476_v62  ;;  %v2599_v24 = vmax.f32 %v1775_v28, 0.0  ;;  %v2601_v35 = vmax.f32 %v1968_v29, 0.0 }
 0x321   : > { %v1780_v38 = vpop.f32.mrf.mxu0  ;;  %v1973_v18 = vpop.f32.mrf.mxu1  ;;  %v2802_v2 = vmax.f32 %v2801_v27, %v2598_v8  ;;  %v2844_v42 = vmax.f32 %v2843_v23, %v2600_v43 }
 0x322   : > { %v2606_v60 = vmax.f32 %v1779_v55, 0.0  ;;  %v2608_v20 = vmax.f32 %v1972_v39, 0.0  ;;  %v1781_v45 = vadd.f32 %v1780_v38, %v7482_v19  ;;  %v1974_v34 = vadd.f32 %v1973_v18, %v7487_v33 }
 0x323   : > { %v1782_v22 = vpop.f32.mrf.mxu0  ;;  %v1975_v40 = vpop.f32.mrf.mxu1  ;;  %v2823_v52 = vmax.f32 %v2822_v32, %v2599_v24  ;;  %v2865_v46 = vmax.f32 %v2864_v51, %v2601_v35 }
 0x324   : > { %v2607_v4 = vmax.f32 %v1781_v45, 0.0  ;;  %v2609_v37 = vmax.f32 %v1974_v34, 0.0  ;;  %v1783_v5 = vadd.f32 %v1782_v22, %v7471_v58  ;;  %v1976_v63 = vadd.f32 %v1975_v40, %v7476_v62 }
 0x325   : > { %v1784_v0 = vpop.f32.mrf.mxu0  ;;  %v1977_v14 = vpop.f32.mrf.mxu1  ;;  %v2803_v10 = vmax.f32 %v2802_v2, %v2606_v60  ;;  %v2845_v56 = vmax.f32 %v2844_v42, %v2608_v20 }
 0x326   : > { %v1785_v16 = vadd.f32 %v1784_v0, %v7482_v19  ;;  %v1978_v25 = vadd.f32 %v1977_v14, %v7487_v33  ;;  %v2824_v7 = vmax.f32 %v2823_v52, %v2607_v4  ;;  %v2866_v53 = vmax.f32 %v2865_v46, %v2609_v37 }
 0x327   : > { %v2614_v6 = vmax.f32 %v1783_v5, 0.0  ;;  %v2616_v11 = vmax.f32 %v1976_v63, 0.0  ;;  %v2014_v26 = vpop.f32.mrf.mxu0  ;;  %v2207_v31 = vpop.f32.mrf.mxu1  ;;  %v7686_v19 = vmax.f32 %v7619_v30, %v2662_v61  ;;  %v7689_v33 = vmax.f32 %v7621_v1, %v2704_v47 }
 0x328   : > { %v2615_v9 = vmax.f32 %v1785_v16, 0.0  ;;  %v2617_v54 = vmax.f32 %v1978_v25, 0.0  ;;  %v2015_v58 = vadd.f32 %v2014_v26, %v7592_v15  ;;  %v2208_v62 = vadd.f32 %v2207_v31, %v7595_v21 }
 0x329   : > { %v2804_v36 = vmax.f32 %v2803_v10, %v2614_v6  ;;  %v2846_v28 = vmax.f32 %v2845_v56, %v2616_v11  ;;  %v2016_v29 = vpop.f32.mrf.mxu0  ;;  %v2209_v50 = vpop.f32.mrf.mxu1 }
 0x32a   : > { %v2825_v3 = vmax.f32 %v2824_v7, %v2615_v9  ;;  %v2867_v8 = vmax.f32 %v2866_v53, %v2617_v54  ;;  %v2370_v43 = vmax.f32 %v2015_v58, 0.0  ;;  %v2372_v55 = vmax.f32 %v2208_v62, 0.0 }
 0x32b   : > { %v2805_v39 = vrot.slane %v2804_v36, 4  ;;  %v2847_v27 = vrot.slane %v2846_v28, 4  ;;  %v2017_v23 = vadd.f32 %v2016_v29, %v7598_v12  ;;  %v2210_v24 = vadd.f32 %v2209_v50, %v7601_v13  ;;  %v2018_v35 = vpop.f32.mrf.mxu0  ;;  %v2211_v38 = vpop.f32.mrf.mxu1 }
 0x32c   : > { %v2826_v18 = vrot.slane %v2825_v3, 4  ;;  %v2868_v60 = vrot.slane %v2867_v8, 4  ;;  %v2019_v30 = vadd.f32 %v2018_v35, %v7592_v15  ;;  %v2212_v1 = vadd.f32 %v2211_v38, %v7595_v21 }
 0x32d   : > { %v2806_v20 = vmax.f32 %v2804_v36, %v2805_v39  ;;  %v2848_v45 = vmax.f32 %v2846_v28, %v2847_v27  ;;  %v2371_v34 = vmax.f32 %v2017_v23, 0.0  ;;  %v2373_v61 = vmax.f32 %v2210_v24, 0.0  ;;  %v2020_v47 = vpop.f32.mrf.mxu0  ;;  %v2213_v32 = vpop.f32.mrf.mxu1 }
 0x32e   : > { %v2827_v51 = vmax.f32 %v2825_v3, %v2826_v18  ;;  %v2869_v22 = vmax.f32 %v2867_v8, %v2868_v60  ;;  %v2378_v40 = vmax.f32 %v2019_v30, 0.0  ;;  %v2380_v2 = vmax.f32 %v2212_v1, 0.0 }
 0x32f   : > { %v2807_v42 = vrot.slane %v2806_v20, 2  ;;  %v2849_v4 = vrot.slane %v2848_v45, 2  ;;  %v2021_v37 = vadd.f32 %v2020_v47, %v7598_v12  ;;  %v2214_v52 = vadd.f32 %v2213_v32, %v7601_v13  ;;  %v2024_v46 = vpop.f32.mrf.mxu0  ;;  %v2217_v5 = vpop.f32.mrf.mxu1 }
 0x330   : > { %v2828_v63 = vrot.slane %v2827_v51, 2  ;;  %v2870_v0 = vrot.slane %v2869_v22, 2  ;;  %v2706_v14 = vmax.f32 %v2370_v43, %v2378_v40  ;;  %v2748_v10 = vmax.f32 %v2372_v55, %v2380_v2 }
 0x331   : > { %v2808_v56 = vmax.f32 %v2806_v20, %v2807_v42  ;;  %v2850_v16 = vmax.f32 %v2848_v45, %v2849_v4  ;;  %v2379_v25 = vmax.f32 %v2021_v37, 0.0  ;;  %v2381_v7 = vmax.f32 %v2214_v52, 0.0  ;;  %v2026_v53 = vpop.f32.mrf.mxu0  ;;  %v2219_v6 = vpop.f32.mrf.mxu1 }
 0x332   : > { %v7697_v11 = vmax.f32 %v2827_v51, %v2828_v63  ;;  %v7699_v26 = vmax.f32 %v2869_v22, %v2870_v0  ;;  %v2025_v31 = vadd.f32 %v2024_v46, %v7592_v15  ;;  %v2218_v9 = vadd.f32 %v2217_v5, %v7595_v21 }
 0x333   : > { %v2809_v54 = vrot.slane %v2808_v56, 1  ;;  %v2851_v58 = vrot.slane %v2850_v16, 1  ;;  %v2727_v62 = vmax.f32 %v2371_v34, %v2379_v25  ;;  %v2769_v36 = vmax.f32 %v2373_v61, %v2381_v7  ;;  %v2028_v28 = vpop.f32.mrf.mxu0  ;;  %v2221_v29 = vpop.f32.mrf.mxu1 }
 0x334   : > { %v2830_v50 = vrot.slane %v7697_v11, 1  ;;  %v2872_v3 = vrot.slane %v7699_v26, 1  ;;  %v2386_v8 = vmax.f32 %v2025_v31, 0.0  ;;  %v2388_v43 = vmax.f32 %v2218_v9, 0.0 }
 0x335   : > { %v2810_v55 = vmax.f32 %v2808_v56, %v2809_v54  ;;  %v2852_v39 = vmax.f32 %v2850_v16, %v2851_v58  ;;  %v2027_v27 = vadd.f32 %v2026_v53, %v7598_v12  ;;  %v2220_v23 = vadd.f32 %v2219_v6, %v7601_v13  ;;  %v2030_v24 = vpop.f32.mrf.mxu0  ;;  %v2223_v35 = vpop.f32.mrf.mxu1 }
 0x336   : > { %v2707_v38 = vmax.f32 %v2706_v14, %v2386_v8  ;;  %v2749_v18 = vmax.f32 %v2748_v10, %v2388_v43  ;;  %v2029_v60 = vadd.f32 %v2028_v28, %v7592_v15  ;;  %v2222_v30 = vadd.f32 %v2221_v29, %v7595_v21 }
 0x337   : > { %v2959_v1 = vsel %vm2958_vm3, %v7664_v41, %v2810_v55  ;;  %v2961_v20 = vsel %vm2958_vm3, %v7669_v17, %v2852_v39  ;;  %v2387_v45 = vmax.f32 %v2027_v27, 0.0  ;;  %v2389_v34 = vmax.f32 %v2220_v23, 0.0  ;;  %v2034_v61 = vpop.f32.mrf.mxu0  ;;  %v2227_v47 = vpop.f32.mrf.mxu1 }
 0x338   : > { %v7713_v32 = vpack.c.bf16 %v2959_v1, %v2959_v1  ;;  %v7715_v51 = vpack.c.bf16 %v2961_v20, %v2961_v20  ;;  %v2394_v22 = vmax.f32 %v2029_v60, 0.0  ;;  %v2396_v40 = vmax.f32 %v2222_v30, 0.0 }
 0x339   : > { %v2728_v2 = vmax.f32 %v2727_v62, %v2387_v45  ;;  %v2770_v42 = vmax.f32 %v2769_v36, %v2389_v34  ;;  %v2031_v4 = vadd.f32 %v2030_v24, %v7598_v12  ;;  %v2224_v37 = vadd.f32 %v2223_v35, %v7601_v13  ;;  %v2036_v41 = vpop.f32.mrf.mxu0  ;;  %v2229_v52 = vpop.f32.mrf.mxu1 }
 0x33a   : > { %v2708_v46 = vmax.f32 %v2707_v38, %v2394_v22  ;;  %v2750_v17 = vmax.f32 %v2749_v18, %v2396_v40  ;;  %v2035_v5 = vadd.f32 %v2034_v61, %v7592_v15  ;;  %v2228_v63 = vadd.f32 %v2227_v47, %v7595_v21  ;;  %v6435_v40 = vld [vmem:[#allocation5 + $0x4e0] ss:$16 sps:$4 sm:$0xff]  }
 0x33b   : > { %v2395_v0 = vmax.f32 %v2031_v4, 0.0  ;;  %v2397_v14 = vmax.f32 %v2224_v37, 0.0  ;;  %v2037_v10 = vadd.f32 %v2036_v41, %v7598_v12  ;;  %v2230_v56 = vadd.f32 %v2229_v52, %v7601_v13  ;;  %v2038_v16 = vpop.f32.mrf.mxu0  ;;  %v2231_v25 = vpop.f32.mrf.mxu1  ;;  %v6443_v52 = vld [vmem:[#allocation5 + $0x4c4] ss:$16 sps:$4 sm:$0xff]  }
 0x33c   : > { %v2402_v7 = vmax.f32 %v2035_v5, 0.0  ;;  %v2404_v53 = vmax.f32 %v2228_v63, 0.0  ;;  %v2039_v6 = vadd.f32 %v2038_v16, %v7592_v15  ;;  %v2232_v31 = vadd.f32 %v2231_v25, %v7595_v21 }
 0x33d   : > { %v2729_v9 = vmax.f32 %v2728_v2, %v2395_v0  ;;  %v2771_v54 = vmax.f32 %v2770_v42, %v2397_v14  ;;  %v2403_v58 = vmax.f32 %v2037_v10, 0.0  ;;  %v2405_v62 = vmax.f32 %v2230_v56, 0.0  ;;  %v2040_v36 = vpop.f32.mrf.mxu0  ;;  %v2233_v28 = vpop.f32.mrf.mxu1  ;;  %v6438_v2 = vld [vmem:[#allocation5 + $0x6e0] ss:$16 sps:$4 sm:$0xff]  }
 0x33e   : > { %v2709_v29 = vmax.f32 %v2708_v46, %v2402_v7  ;;  %v2751_v8 = vmax.f32 %v2750_v17, %v2404_v53  ;;  %v2410_v43 = vmax.f32 %v2039_v6, 0.0  ;;  %v2412_v55 = vmax.f32 %v2232_v31, 0.0  ;;  %v6446_v46 = vld [vmem:[#allocation5 + $0x6c4] ss:$16 sps:$4 sm:$0xff]  }
 0x33f   : > { %v2730_v39 = vmax.f32 %v2729_v9, %v2403_v58  ;;  %v2772_v27 = vmax.f32 %v2771_v54, %v2405_v62  ;;  %v2831_v23 = vmax.f32 %v7697_v11, %v2830_v50  ;;  %v2873_v24 = vmax.f32 %v7699_v26, %v2872_v3  ;;  %v2044_v35 = vpop.f32.mrf.mxu0  ;;  %v2237_v38 = vpop.f32.mrf.mxu1  ;;  %v6441_v9 = vld [vmem:[#allocation5 + $0x4c0] ss:$16 sps:$4 sm:$0xff]  }
 0x340   : > { %v2710_v18 = vmax.f32 %v2709_v29, %v2410_v43  ;;  %v2752_v60 = vmax.f32 %v2751_v8, %v2412_v55  ;;  %v2041_v30 = vadd.f32 %v2040_v36, %v7598_v12  ;;  %v2234_v1 = vadd.f32 %v2233_v28, %v7601_v13  ;;  %v6444_v28 = vld [vmem:[#allocation5 + $0x6c0] ss:$16 sps:$4 sm:$0xff]   ;;  %v6449_v29 = vld [vmem:[#allocation5 + $0x4a4] ss:$16 sps:$4 sm:$0xff]  }
 0x341   : > { %v2960_v20 = vsel %vm2958_vm3, %v7686_v19, %v2831_v23  ;;  %v2962_v45 = vsel %vm2958_vm3, %v7689_v33, %v2873_v24  ;;  %v2045_v34 = vadd.f32 %v2044_v35, %v7592_v15  ;;  %v2238_v11 = vadd.f32 %v2237_v38, %v7595_v21  ;;  %v2046_v50 = vpop.f32.mrf.mxu0  ;;  %v2239_v26 = vpop.f32.mrf.mxu1 }
 0x342   : > { %v7735_v3 = vpack.c.bf16 %v2960_v20, %v2960_v20  ;;  %v7737_v61 = vpack.c.bf16 %v2962_v45, %v2962_v45  ;;  %v2411_v47 = vmax.f32 %v2041_v30, 0.0  ;;  %v2413_v22 = vmax.f32 %v2234_v1, 0.0  ;;  %v6447_v20 = vld [vmem:[#allocation5 + $0x4a0] ss:$16 sps:$4 sm:$0xff]  }
 0x343   : > { %v2418_v42 = vmax.f32 %v2045_v34, 0.0  ;;  %v2420_v4 = vmax.f32 %v2238_v11, 0.0  ;;  %v2047_v19 = vadd.f32 %v2046_v50, %v7598_v12  ;;  %v2240_v33 = vadd.f32 %v2239_v26, %v7601_v13  ;;  %v2048_v37 = vpop.f32.mrf.mxu0  ;;  %v2241_v41 = vpop.f32.mrf.mxu1 }
 0x344   : > { %4565 = vmatprep.mubr.bf16.mxu0 %v7735_v3  ;;  %4606 = vmatprep.mubr.bf16.mxu1 %v7737_v61  ;;  %v2731_v17 = vmax.f32 %v2730_v39, %v2411_v47  ;;  %v2773_v5 = vmax.f32 %v2772_v27, %v2413_v22  ;;  %v2049_v63 = vadd.f32 %v2048_v37, %v7592_v15  ;;  %v6452_v27 = vld [vmem:[#allocation5 + $0x6a4] ss:$16 sps:$4 sm:$0xff]   ;;  %v6450_v47 = vld [vmem:[#allocation5 + $0x6a0] ss:$16 sps:$4 sm:$0xff]  }
 0x345   : > { %4566 = vmatmul.mubr.bf16.vlgmr.msra.gmra.mxu0 %v7713_v32  ;;  %4607 = vmatmul.mubr.bf16.vlgmr.msra.gmra.mxu1 %v7715_v51  ;;  %v2711_v0 = vmax.f32 %v2710_v18, %v2418_v42  ;;  %v2753_v14 = vmax.f32 %v2752_v60, %v2420_v4  ;;  %v2419_v10 = vmax.f32 %v2047_v19, 0.0  ;;  %v2421_v56 = vmax.f32 %v2240_v33, 0.0  ;;  %v2050_v16 = vpop.f32.mrf.mxu0  ;;  %v2243_v25 = vpop.f32.mrf.mxu1  ;;  %v6455_v22 = vld [vmem:[#allocation5 + $0x484] ss:$16 sps:$4 sm:$0xff]  }
 0x346   : > { %v2426_v7 = vmax.f32 %v2049_v63, 0.0  ;;  %v2242_v53 = vadd.f32 %v2241_v41, %v7595_v21  ;;  %v2051_v6 = vadd.f32 %v2050_v16, %v7598_v12  ;;  %v2244_v31 = vadd.f32 %v2243_v25, %v7601_v13  ;;  %4616 = vmatpush1.bf16.msra.mxu0 %v6435_v40  ;;  %4657 = vmatpush1.bf16.msra.mxu1 %v6438_v2  ;;  %v6458_v4 = vld [vmem:[#allocation5 + $0x684] ss:$16 sps:$4 sm:$0xff]   ;;  %v6456_v25 = vld [vmem:[#allocation5 + $0x680] ss:$16 sps:$4 sm:$0xff]  }
 0x347   : > { %v2732_v54 = vmax.f32 %v2731_v17, %v2419_v10  ;;  %v2774_v58 = vmax.f32 %v2773_v5, %v2421_v56  ;;  %v2054_v62 = vpop.f32.mrf.mxu0  ;;  %v2247_v36 = vpop.f32.mrf.mxu1  ;;  %4617 = vmatprep.subr.bf16.mxu0 %v6443_v52  ;;  %4658 = vmatprep.subr.bf16.mxu1 %v6446_v46 }
 0x348   : > { %v2712_v8 = vmax.f32 %v2711_v0, %v2426_v7  ;;  %v2428_v43 = vmax.f32 %v2242_v53, 0.0  ;;  %v2427_v55 = vmax.f32 %v2051_v6, 0.0  ;;  %v2429_v39 = vmax.f32 %v2244_v31, 0.0  ;;  %v6453_v0 = vld [vmem:[#allocation5 + $0x480] ss:$16 sps:$4 sm:$0xff]  }
 0x349   : > { %v2055_v23 = vadd.f32 %v2054_v62, %v7592_v15  ;;  %v2248_v24 = vadd.f32 %v2247_v36, %v7595_v21  ;;  %v2056_v35 = vpop.f32.mrf.mxu0  ;;  %v2249_v38 = vpop.f32.mrf.mxu1  ;;  %v6461_v7 = vld [vmem:[#allocation5 + $0x464] ss:$16 sps:$4 sm:$0xff]  }
 0x34a   : > { %v2754_v18 = vmax.f32 %v2753_v14, %v2428_v43  ;;  %v2733_v60 = vmax.f32 %v2732_v54, %v2427_v55  ;;  %v2775_v30 = vmax.f32 %v2774_v58, %v2429_v39  ;;  %v2057_v1 = vadd.f32 %v2056_v35, %v7598_v12  ;;  %4618 = vmatpush1.bf16.msra.mxu0 %v6441_v9  ;;  %v6464_v54 = vld [vmem:[#allocation5 + $0x664] ss:$16 sps:$4 sm:$0xff]   ;;  %v6459_v39 = vld [vmem:[#allocation5 + $0x460] ss:$16 sps:$4 sm:$0xff]  }
 0x34b   : > { %v2434_v45 = vmax.f32 %v2055_v23, 0.0  ;;  %v2436_v34 = vmax.f32 %v2248_v24, 0.0  ;;  %v2250_v11 = vadd.f32 %v2249_v38, %v7601_v13  ;;  %v2058_v50 = vpop.f32.mrf.mxu0  ;;  %v2251_v26 = vpop.f32.mrf.mxu1  ;;  %4659 = vmatpush1.bf16.msra.mxu1 %v6444_v28  ;;  %4619 = vmatprep.subr.bf16.mxu0 %v6449_v29  ;;  %v6462_v38 = vld [vmem:[#allocation5 + $0x660] ss:$16 sps:$4 sm:$0xff]  }
 0x34c   : > { %v2435_v40 = vmax.f32 %v2057_v1, 0.0  ;;  %v2059_v2 = vadd.f32 %v2058_v50, %v7592_v15  ;;  %v2252_v42 = vadd.f32 %v2251_v26, %v7595_v21  ;;  %4660 = vmatprep.subr.bf16.mxu1 %v6452_v27 }
 0x34d   : > { %v2713_v19 = vmax.f32 %v2712_v8, %v2434_v45  ;;  %v2755_v33 = vmax.f32 %v2754_v18, %v2436_v34  ;;  %v2437_v37 = vmax.f32 %v2250_v11, 0.0  ;;  %v2060_v41 = vpop.f32.mrf.mxu0  ;;  %v2253_v52 = vpop.f32.mrf.mxu1  ;;  %v6467_v18 = vld [vmem:[#allocation5 + $0x444] ss:$16 sps:$4 sm:$0xff]  }
 0x34e   : > { %v2734_v46 = vmax.f32 %v2733_v60, %v2435_v40  ;;  %v2442_v17 = vmax.f32 %v2059_v2, 0.0  ;;  %v2444_v5 = vmax.f32 %v2252_v42, 0.0  ;;  %v2061_v63 = vadd.f32 %v2060_v41, %v7598_v12  ;;  %4620 = vmatpush1.bf16.msra.mxu0 %v6447_v20  ;;  %v6470_v45 = vld [vmem:[#allocation5 + $0x644] ss:$16 sps:$4 sm:$0xff]   ;;  %v6465_v42 = vld [vmem:[#allocation5 + $0x440] ss:$16 sps:$4 sm:$0xff]  }
 0x34f   : > { %v2776_v14 = vmax.f32 %v2775_v30, %v2437_v37  ;;  %v2254_v10 = vadd.f32 %v2253_v52, %v7601_v13  ;;  %v2064_v56 = vpop.f32.mrf.mxu0  ;;  %v2257_v16 = vpop.f32.mrf.mxu1  ;;  %4661 = vmatpush1.bf16.msra.mxu1 %v6450_v47  ;;  %4621 = vmatprep.subr.bf16.mxu0 %v6455_v22  ;;  %v6468_v41 = vld [vmem:[#allocation5 + $0x640] ss:$16 sps:$4 sm:$0xff]   ;;  %v6473_v52 = vld [vmem:[#allocation5 + $0x424] ss:$16 sps:$4 sm:$0xff]  }
 0x350   : > { %v2714_v53 = vmax.f32 %v2713_v19, %v2442_v17  ;;  %v2756_v6 = vmax.f32 %v2755_v33, %v2444_v5  ;;  %v2443_v31 = vmax.f32 %v2061_v63, 0.0  ;;  %v2065_v9 = vadd.f32 %v2064_v56, %v7592_v15  ;;  %4662 = vmatprep.subr.bf16.mxu1 %v6458_v4 }
 0x351   : > { %v2445_v58 = vmax.f32 %v2254_v10, 0.0  ;;  %v2258_v62 = vadd.f32 %v2257_v16, %v7595_v21  ;;  %v2066_v36 = vpop.f32.mrf.mxu0  ;;  %v2259_v28 = vpop.f32.mrf.mxu1 }
 0x352   : > { %v2735_v29 = vmax.f32 %v2734_v46, %v2443_v31  ;;  %v2450_v8 = vmax.f32 %v2065_v9, 0.0  ;;  %v2067_v43 = vadd.f32 %v2066_v36, %v7598_v12  ;;  %v2260_v55 = vadd.f32 %v2259_v28, %v7601_v13  ;;  %4622 = vmatpush1.bf16.msra.mxu0 %v6453_v0  ;;  %v6476_v0 = vld [vmem:[#allocation5 + $0x624] ss:$16 sps:$4 sm:$0xff]   ;;  %v6471_v31 = vld [vmem:[#allocation5 + $0x420] ss:$16 sps:$4 sm:$0xff]  }
 0x353   : > { %v2777_v27 = vmax.f32 %v2776_v14, %v2445_v58  ;;  %v2452_v23 = vmax.f32 %v2258_v62, 0.0  ;;  %v2068_v24 = vpop.f32.mrf.mxu0  ;;  %v2261_v35 = vpop.f32.mrf.mxu1  ;;  %4663 = vmatpush1.bf16.msra.mxu1 %v6456_v25  ;;  %4623 = vmatprep.subr.bf16.mxu0 %v6461_v7  ;;  %v6474_v36 = vld [vmem:[#allocation5 + $0x620] ss:$16 sps:$4 sm:$0xff]   ;;  %v6479_v28 = vld [vmem:[#allocation5 + $0x404] ss:$16 sps:$4 sm:$0xff]  }
 0x354   : > { %v2715_v60 = vmax.f32 %v2714_v53, %v2450_v8  ;;  %v2451_v30 = vmax.f32 %v2067_v43, 0.0  ;;  %v2453_v1 = vmax.f32 %v2260_v55, 0.0  ;;  %v2069_v20 = vadd.f32 %v2068_v24, %v7592_v15  ;;  %4664 = vmatprep.subr.bf16.mxu1 %v6464_v54 }
 0x355   : > { %v2757_v34 = vmax.f32 %v2756_v6, %v2452_v23  ;;  %v2262_v11 = vadd.f32 %v2261_v35, %v7595_v21  ;;  %v2070_v50 = vpop.f32.mrf.mxu0  ;;  %v2263_v26 = vpop.f32.mrf.mxu1 }
 0x356   : > { %v2736_v47 = vmax.f32 %v2735_v29, %v2451_v30  ;;  %v2778_v22 = vmax.f32 %v2777_v27, %v2453_v1  ;;  %v2458_v40 = vmax.f32 %v2069_v20, 0.0  ;;  %v2071_v2 = vadd.f32 %v2070_v50, %v7598_v12  ;;  %4624 = vmatpush1.bf16.msra.mxu0 %v6459_v39  ;;  %v6482_v39 = vld [vmem:[#allocation5 + $0x604] ss:$16 sps:$4 sm:$0xff]   ;;  %v6477_v1 = vld [vmem:[#allocation5 + $0x400] ss:$16 sps:$4 sm:$0xff]  }
 0x357   : > { %v2460_v4 = vmax.f32 %v2262_v11, 0.0  ;;  %v2264_v19 = vadd.f32 %v2263_v26, %v7601_v13  ;;  %v2074_v33 = vpop.f32.mrf.mxu0  ;;  %v2267_v37 = vpop.f32.mrf.mxu1  ;;  %4665 = vmatpush1.bf16.msra.mxu1 %v6462_v38  ;;  %4625 = vmatprep.subr.bf16.mxu0 %v6467_v18  ;;  %v6480_v50 = vld [vmem:[#allocation5 + $0x600] ss:$16 sps:$4 sm:$0xff]   ;;  %v6485_v26 = vld [vmem:[#allocation5 + $0x5e4] ss:$16 sps:$4 sm:$0xff]  }
 0x358   : > { %v2716_v46 = vmax.f32 %v2715_v60, %v2458_v40  ;;  %v2459_v17 = vmax.f32 %v2071_v2, 0.0  ;;  %v2075_v5 = vadd.f32 %v2074_v33, %v7592_v15  ;;  %v2268_v63 = vadd.f32 %v2267_v37, %v7595_v21  ;;  %4666 = vmatprep.subr.bf16.mxu1 %v6470_v45 }
 0x359   : > { %v2758_v14 = vmax.f32 %v2757_v34, %v2460_v4  ;;  %v2461_v10 = vmax.f32 %v2264_v19, 0.0  ;;  %v2076_v56 = vpop.f32.mrf.mxu0  ;;  %v2269_v16 = vpop.f32.mrf.mxu1 }
 0x35a   : > { %v2737_v25 = vmax.f32 %v2736_v47, %v2459_v17  ;;  %v2466_v7 = vmax.f32 %v2075_v5, 0.0  ;;  %v2468_v53 = vmax.f32 %v2268_v63, 0.0  ;;  %v2077_v6 = vadd.f32 %v2076_v56, %v7598_v12  ;;  %4626 = vmatpush1.bf16.msra.mxu0 %v6465_v42  ;;  %v6488_v42 = vld [vmem:[#allocation5 + $0x7e4] ss:$16 sps:$4 sm:$0xff]   ;;  %v6483_v5 = vld [vmem:[#allocation5 + $0x5e0] ss:$16 sps:$4 sm:$0xff]  }
 0x35b   : > { %v2779_v9 = vmax.f32 %v2778_v22, %v2461_v10  ;;  %v2270_v54 = vadd.f32 %v2269_v16, %v7601_v13  ;;  %v2078_v58 = vpop.f32.mrf.mxu0  ;;  %v2271_v62 = vpop.f32.mrf.mxu1  ;;  %4667 = vmatpush1.bf16.msra.mxu1 %v6468_v41  ;;  %4627 = vmatprep.subr.bf16.mxu0 %v6473_v52  ;;  %v6486_v56 = vld [vmem:[#allocation5 + $0x7e0] ss:$16 sps:$4 sm:$0xff]   ;;  %v6491_v16 = vld [vmem:[#allocation5 + $0x5c4] ss:$16 sps:$4 sm:$0xff]  }
 0x35c   : > { %v2717_v29 = vmax.f32 %v2716_v46, %v2466_v7  ;;  %v2759_v8 = vmax.f32 %v2758_v14, %v2468_v53  ;;  %v2467_v43 = vmax.f32 %v2077_v6, 0.0  ;;  %v2079_v55 = vadd.f32 %v2078_v58, %v7592_v15  ;;  %4668 = vmatprep.subr.bf16.mxu1 %v6476_v0 }
 0x35d   : > { %v2469_v27 = vmax.f32 %v2270_v54, 0.0  ;;  %v2272_v23 = vadd.f32 %v2271_v62, %v7595_v21  ;;  %v2080_v24 = vpop.f32.mrf.mxu0  ;;  %v2273_v35 = vpop.f32.mrf.mxu1 }
 0x35e   : > { %v2738_v38 = vmax.f32 %v2737_v25, %v2467_v43  ;;  %v2474_v18 = vmax.f32 %v2079_v55, 0.0  ;;  %v2081_v60 = vadd.f32 %v2080_v24, %v7598_v12  ;;  %v2274_v30 = vadd.f32 %v2273_v35, %v7601_v13  ;;  %4628 = vmatpush1.bf16.msra.mxu0 %v6471_v31  ;;  %v6494_v31 = vld [vmem:[#allocation5 + $0x7c4] ss:$16 sps:$4 sm:$0xff]   ;;  %v6489_v43 = vld [vmem:[#allocation5 + $0x5c0] ss:$16 sps:$4 sm:$0xff]  }
 0x35f   : > { %v2780_v20 = vmax.f32 %v2779_v9, %v2469_v27  ;;  %v2476_v45 = vmax.f32 %v2272_v23, 0.0  ;;  %v2084_v34 = vpop.f32.mrf.mxu0  ;;  %v2277_v11 = vpop.f32.mrf.mxu1  ;;  %4669 = vmatpush1.bf16.msra.mxu1 %v6474_v36  ;;  %4629 = vmatprep.subr.bf16.mxu0 %v6479_v28  ;;  %v6492_v24 = vld [vmem:[#allocation5 + $0x7c0] ss:$16 sps:$4 sm:$0xff]   ;;  %v6497_v35 = vld [vmem:[#allocation5 + $0x5a4] ss:$16 sps:$4 sm:$0xff]  }
 0x360   : > { %v2718_v47 = vmax.f32 %v2717_v29, %v2474_v18  ;;  %v2475_v22 = vmax.f32 %v2081_v60, 0.0  ;;  %v2477_v40 = vmax.f32 %v2274_v30, 0.0  ;;  %v2085_v2 = vadd.f32 %v2084_v34, %v7592_v15  ;;  %4670 = vmatprep.subr.bf16.mxu1 %v6482_v39  ;;  %v6500_v30 = vld [vmem:[#allocation5 + $0x7a4] ss:$16 sps:$4 sm:$0xff]  }
 0x361   : > { %v2760_v4 = vmax.f32 %v2759_v8, %v2476_v45  ;;  %v2278_v19 = vadd.f32 %v2277_v11, %v7595_v21  ;;  %v2086_v33 = vpop.f32.mrf.mxu0  ;;  %v2279_v37 = vpop.f32.mrf.mxu1  ;;  %v6495_v11 = vld [vmem:[#allocation5 + $0x5a0] ss:$16 sps:$4 sm:$0xff]  }
 0x362   : > { %v2739_v41 = vmax.f32 %v2738_v38, %v2475_v22  ;;  %v2781_v52 = vmax.f32 %v2780_v20, %v2477_v40  ;;  %v2482_v46 = vmax.f32 %v2085_v2, 0.0  ;;  %v2087_v17 = vadd.f32 %v2086_v33, %v7598_v12  ;;  %4630 = vmatpush1.bf16.msra.mxu0 %v6477_v1  ;;  %v6498_v22 = vld [vmem:[#allocation5 + $0x7a0] ss:$16 sps:$4 sm:$0xff]   ;;  %v6503_v40 = vld [vmem:[#allocation5 + $0x584] ss:$16 sps:$4 sm:$0xff]  }
 0x363   : > { %v2484_v63 = vmax.f32 %v2278_v19, 0.0  ;;  %v2280_v0 = vadd.f32 %v2279_v37, %v7601_v13  ;;  %v2088_v14 = vpop.f32.mrf.mxu0  ;;  %v2281_v10 = vpop.f32.mrf.mxu1  ;;  %4671 = vmatpush1.bf16.msra.mxu1 %v6480_v50  ;;  %4631 = vmatprep.subr.bf16.mxu0 %v6485_v26  ;;  %v6506_v2 = vld [vmem:[#allocation5 + $0x784] ss:$16 sps:$4 sm:$0xff]   ;;  %v6501_v19 = vld [vmem:[#allocation5 + $0x580] ss:$16 sps:$4 sm:$0xff]  }
 0x364   : > { %v2719_v25 = vmax.f32 %v2718_v47, %v2482_v46  ;;  %v2483_v7 = vmax.f32 %v2087_v17, 0.0  ;;  %v2089_v53 = vadd.f32 %v2088_v14, %v7592_v15  ;;  %v2282_v6 = vadd.f32 %v2281_v10, %v7595_v21  ;;  %4672 = vmatprep.subr.bf16.mxu1 %v6488_v42  ;;  %v6512_v46 = vld [vmem:[#allocation5 + $0x764] ss:$16 sps:$4 sm:$0xff]   ;;  %v6510_v10 = vld [vmem:[#allocation5 + $0x760] ss:$16 sps:$4 sm:$0xff]  }
 0x365   : > { %v2761_v9 = vmax.f32 %v2760_v4, %v2484_v63  ;;  %v2485_v54 = vmax.f32 %v2280_v0, 0.0  ;;  %v2090_v58 = vpop.f32.mrf.mxu0  ;;  %v2283_v62 = vpop.f32.mrf.mxu1  ;;  %v6507_v63 = vld [vmem:[#allocation5 + $0x560] ss:$16 sps:$4 sm:$0xff]  }
 0x366   : > { %v2740_v36 = vmax.f32 %v2739_v41, %v2483_v7  ;;  %v2490_v28 = vmax.f32 %v2089_v53, 0.0  ;;  %v2492_v29 = vmax.f32 %v2282_v6, 0.0  ;;  %v2091_v8 = vadd.f32 %v2090_v58, %v7598_v12  ;;  %4632 = vmatpush2.bf16.msra.mxu0 %v6483_v5  ;;  %v6504_v41 = vld [vmem:[#allocation5 + $0x780] ss:$16 sps:$4 sm:$0xff]  }
 0x367   : > { %v2782_v55 = vmax.f32 %v2781_v52, %v2485_v54  ;;  %v2284_v39 = vadd.f32 %v2283_v62, %v7601_v13  ;;  %v2094_v27 = vpop.f32.mrf.mxu0  ;;  %v2287_v23 = vpop.f32.mrf.mxu1  ;;  %4673 = vmatpush2.bf16.msra.mxu1 %v6486_v56  ;;  %4633 = vmatprep.subr.bf16.mxu0 %v6491_v16  ;;  %v6509_v52 = vld [vmem:[#allocation5 + $0x564] ss:$16 sps:$4 sm:$0xff]   ;;  %v6513_v6 = vld [vmem:[#allocation5 + $0x540] ss:$16 sps:$4 sm:$0xff]  }
 0x368   : > { %v7781_v38 = vmax.f32 %v2719_v25, %v2490_v28  ;;  %v7783_v18 = vmax.f32 %v2761_v9, %v2492_v29  ;;  %v2491_v60 = vmax.f32 %v2091_v8, 0.0  ;;  %4674 = vmatprep.subr.bf16.mxu1 %v6494_v31  ;;  %v6515_v56 = vld [vmem:[#allocation5 + $0x544] ss:$16 sps:$4 sm:$0xff]   ;;  %v7796_v53 = vadd.f32 %v2094_v27, %v7592_v15  ;;  %v6516_v58 = vld [vmem:[#allocation5 + $0x740] ss:$16 sps:$4 sm:$0xff]  }
 0x369   : > { %v2493_v1 = vmax.f32 %v2284_v39, 0.0  ;;  %v2096_v20 = vpop.f32.mrf.mxu0  ;;  %v2289_v45 = vpop.f32.mrf.mxu1  ;;  %v6518_v16 = vld [vmem:[#allocation5 + $0x744] ss:$16 sps:$4 sm:$0xff]   ;;  %v7799_v31 = vadd.f32 %v2287_v23, %v7595_v21 }
 0x36a   : > { %v7785_v34 = vmax.f32 %v2740_v36, %v2491_v60  ;;  %4634 = vmatpush2.bf16.msra.mxu0 %v6489_v43  ;;  %v6521_v62 = vld [vmem:[#allocation5 + $0x524] ss:$16 sps:$4 sm:$0xff]   ;;  %v2721_v36 = vrot.slane %v7781_v38, 4  ;;  %v2763_v8 = vrot.slane %v7783_v18, 4  ;;  %v2498_v27 = vmax.f32 %v7796_v53, 0.0 }
 0x36b   : > { %v7787_v50 = vmax.f32 %v2782_v55, %v2493_v1  ;;  %v2098_v26 = vpop.f32.mrf.mxu0  ;;  %v2291_v47 = vpop.f32.mrf.mxu1  ;;  %4675 = vmatpush2.bf16.msra.mxu1 %v6492_v24  ;;  %4635 = vmatprep.subr.bf16.mxu0 %v6497_v35  ;;  %v6524_v29 = vld [vmem:[#allocation5 + $0x724] ss:$16 sps:$4 sm:$0xff]   ;;  %v2097_v23 = vadd.f32 %v2096_v20, %v7598_v12  ;;  %v2290_v24 = vadd.f32 %v2289_v45, %v7601_v13  ;;  %v6519_v60 = vld [vmem:[#allocation5 + $0x520] ss:$16 sps:$4 sm:$0xff]  }
 0x36c   : > { %4676 = vmatprep.subr.bf16.mxu1 %v6500_v30  ;;  %v2099_v28 = vadd.f32 %v2098_v26, %v7592_v15  ;;  %v2292_v43 = vadd.f32 %v2291_v47, %v7595_v21  ;;  %v6522_v30 = vld [vmem:[#allocation5 + $0x720] ss:$16 sps:$4 sm:$0xff]   ;;  %v2742_v1 = vrot.slane %v7785_v34, 4  ;;  %v2500_v26 = vmax.f32 %v7799_v31, 0.0  ;;  %v6527_v20 = vld [vmem:[#allocation5 + $0x504] ss:$16 sps:$4 sm:$0xff]  }
 0x36d   : > { %v2100_v42 = vpop.f32.mrf.mxu0  ;;  %v2293_v4 = vpop.f32.mrf.mxu1  ;;  %v7824_v45 = vmax.f32 %v7781_v38, %v2721_v36  ;;  %v2501_v38 = vmax.f32 %v2290_v24, 0.0  ;;  %v6533_v36 = vld [vmem:[#allocation5 + $0xec] ss:$16 sps:$4 sm:$0xff]  }
 0x36e   : > { %4636 = vmatpush2.bf16.msra.mxu0 %v6495_v11  ;;  %v2101_v35 = vadd.f32 %v2100_v42, %v7598_v12  ;;  %v2784_v11 = vrot.slane %v7787_v50, 4  ;;  %v2294_v47 = vadd.f32 %v2293_v4, %v7601_v13  ;;  %v2508_v4 = vmax.f32 %v2292_v43, 0.0 }
 0x36f   : > { %v2104_v33 = vpop.f32.mrf.mxu0  ;;  %v2297_v37 = vpop.f32.mrf.mxu1  ;;  %4677 = vmatpush2.bf16.msra.mxu1 %v6498_v22  ;;  %4637 = vmatprep.subr.bf16.mxu0 %v6503_v40 }
 0x370   : > { %4678 = vmatprep.subr.bf16.mxu1 %v6506_v2  ;;  %v2506_v2 = vmax.f32 %v2099_v28, 0.0  ;;  %v2105_v42 = vadd.f32 %v2104_v33, %v7592_v15  ;;  %v2507_v53 = vmax.f32 %v2101_v35, 0.0  ;;  %v6525_v33 = vld [vmem:[#allocation5 + $0x500] ss:$16 sps:$4 sm:$0xff]   ;;  %v2509_v31 = vmax.f32 %v2294_v47, 0.0 }
 0x371   : > { %v2106_v17 = vpop.f32.mrf.mxu0  ;;  %v2299_v5 = vpop.f32.mrf.mxu1 }
 0x372   : > { %4638 = vmatpush2.bf16.msra.mxu0 %v6501_v19  ;;  %v2298_v19 = vadd.f32 %v2297_v37, %v7595_v21  ;;  %v7835_v37 = vmax.f32 %v7785_v34, %v2742_v1  ;;  %v2874_v28 = vmax.f32 %v2498_v27, %v2506_v2 }
 0x373   : > { %v2108_v0 = vpop.f32.mrf.mxu0  ;;  %v7789_v14 = vpop.f32.mrf.mxu1  ;;  %4679 = vmatpush2.bf16.msra.mxu1 %v6504_v41  ;;  %4639 = vmatprep.subr.bf16.mxu0 %v6509_v52  ;;  %v6530_v41 = vld [vmem:[#allocation5 + $0x704] ss:$16 sps:$4 sm:$0xff]   ;;  %v7829_v52 = vmax.f32 %v7783_v18, %v2763_v8  ;;  %v7838_v18 = vmax.f32 %v7787_v50, %v2784_v11  ;;  %v6536_v8 = vld [vmem:[#allocation5 + $0x2ec] ss:$16 sps:$4 sm:$0xff]   ;;  %v2916_v50 = vmax.f32 %v2500_v26, %v2508_v4 }
 0x374   : > { %4680 = vmatprep.subr.bf16.mxu1 %v6512_v46  ;;  %v2107_v46 = vadd.f32 %v2106_v17, %v7598_v12  ;;  %v2302_v17 = vadd.f32 %v7789_v14, %v7595_v21 }
 0x375   : > { %v7791_v25 = vpop.f32.mrf.mxu0  ;;  %v7793_v7 = vpop.f32.mrf.mxu1 }
 0x376   : > { %4640 = vmatpush2.bf16.msra.mxu0 %v6507_v63  ;;  %v2300_v63 = vadd.f32 %v2299_v5, %v7601_v13  ;;  %v2111_v34 = vadd.f32 %v7791_v25, %v7598_v12  ;;  %v2515_v43 = vmax.f32 %v2107_v46, 0.0  ;;  %v2304_v14 = vadd.f32 %v7793_v7, %v7601_v13 }
 0x377   : > { %v7801_v9 = vpop.f32.mrf.mxu0  ;;  %v7803_v54 = vpop.f32.mrf.mxu1  ;;  %4681 = vmatpush2.bf16.msra.mxu1 %v6510_v10  ;;  %4641 = vmatprep.subr.bf16.mxu0 %v6515_v56  ;;  %v2937_v25 = vmax.f32 %v2501_v38, %v2509_v31  ;;  %v2524_v11 = vmax.f32 %v2302_v17, 0.0 }
 0x378   : > { %4682 = vmatprep.subr.bf16.mxu1 %v6518_v16  ;;  %v2499_v16 = vmax.f32 %v2097_v23, 0.0  ;;  %v2517_v23 = vmax.f32 %v2300_v63, 0.0  ;;  %v2115_v27 = vadd.f32 %v7801_v9, %v7592_v15  ;;  %v2308_v1 = vadd.f32 %v7803_v54, %v7595_v21 }
 0x379   : > { %v7809_v55 = vpop.f32.mrf.mxu0  ;;  %v7811_v39 = vpop.f32.mrf.mxu1  ;;  %v2525_v4 = vmax.f32 %v2304_v14, 0.0 }
 0x37a   : > { %4642 = vmatpush2.bf16.msra.mxu0 %v6513_v6  ;;  %v2109_v6 = vadd.f32 %v2108_v0, %v7592_v15  ;;  %v2514_v0 = vmax.f32 %v2105_v42, 0.0  ;;  %v2117_v26 = vadd.f32 %v7809_v55, %v7598_v12  ;;  %v2310_v47 = vadd.f32 %v7811_v39, %v7601_v13 }
 0x37b   : > { %v2118_v22 = vpop.f32.mrf.mxu0  ;;  %v7821_v40 = vpop.f32.mrf.mxu1  ;;  %4683 = vmatpush2.bf16.msra.mxu1 %v6516_v58  ;;  %4643 = vmatprep.subr.bf16.mxu0 %v6521_v62  ;;  %v6528_v62 = vld [vmem:[#allocation5 + $0x700] ss:$16 sps:$4 sm:$0xff]   ;;  %v2530_v39 = vmax.f32 %v2115_v27, 0.0  ;;  %v2532_v38 = vmax.f32 %v2308_v1, 0.0 }
 0x37c   : > { %4684 = vmatprep.subr.bf16.mxu1 %v6524_v29  ;;  %v2516_v29 = vmax.f32 %v2298_v19, 0.0  ;;  %v2875_v2 = vmax.f32 %v2874_v28, %v2514_v0  ;;  %v2523_v19 = vmax.f32 %v2111_v34, 0.0  ;;  %v2119_v9 = vadd.f32 %v2118_v22, %v7592_v15 }
 0x37d   : > { %v2120_v10 = vpop.f32.mrf.mxu0  ;;  %v2313_v56 = vpop.f32.mrf.mxu1  ;;  %v2312_v46 = vadd.f32 %v7821_v40, %v7595_v21  ;;  %v2533_v31 = vmax.f32 %v2310_v47, 0.0 }
 0x37e   : > { %4644 = vmatpush2.bf16.msra.mxu0 %v6519_v60  ;;  %v2895_v60 = vmax.f32 %v2499_v16, %v2507_v53  ;;  %v2917_v42 = vmax.f32 %v2916_v50, %v2516_v29  ;;  %v2121_v53 = vadd.f32 %v2120_v10, %v7598_v12  ;;  %v2314_v17 = vadd.f32 %v2313_v56, %v7601_v13 }
 0x37f   : > { %v2124_v5 = vpop.f32.mrf.mxu0  ;;  %v2317_v58 = vpop.f32.mrf.mxu1  ;;  %4685 = vmatpush2.bf16.msra.mxu1 %v6522_v30  ;;  %4645 = vmatprep.subr.bf16.mxu0 %v6527_v20  ;;  %v2522_v30 = vmax.f32 %v2109_v6, 0.0 }
 0x380   : > { %4686 = vmatprep.subr.bf16.mxu1 %v6530_v41  ;;  %v2896_v54 = vmax.f32 %v2895_v60, %v2515_v43  ;;  %v2938_v41 = vmax.f32 %v2937_v25, %v2517_v23  ;;  %v2918_v6 = vmax.f32 %v2917_v42, %v2524_v11  ;;  %v2125_v28 = vadd.f32 %v2124_v5, %v7592_v15 }
 0x381   : > { %v2126_v24 = vpop.f32.mrf.mxu0  ;;  %v2319_v35 = vpop.f32.mrf.mxu1  ;;  %v2876_v16 = vmax.f32 %v2875_v2, %v2522_v30  ;;  %v2318_v0 = vadd.f32 %v2317_v58, %v7595_v21  ;;  %v2539_v60 = vmax.f32 %v2121_v53, 0.0  ;;  %v2541_v1 = vmax.f32 %v2314_v17, 0.0 }
 0x382   : > { %4646 = vmatpush2.bf16.msra.mxu0 %v6525_v33  ;;  %v2531_v33 = vmax.f32 %v2117_v26, 0.0  ;;  %v2127_v40 = vadd.f32 %v2126_v24, %v7598_v12  ;;  %v2897_v29 = vmax.f32 %v2896_v54, %v2523_v19  ;;  %v2939_v34 = vmax.f32 %v2938_v41, %v2525_v4 }
 0x383   : > { %v2128_v7 = vpop.f32.mrf.mxu0  ;;  %v2321_v20 = vpop.f32.mrf.mxu1  ;;  %4687 = vmatpush2.bf16.msra.mxu1 %v6528_v62  ;;  %4697 = vmatprep.subr.bf16.mxu0 %v6533_v36  ;;  %v2538_v36 = vmax.f32 %v2119_v9, 0.0  ;;  %v2320_v50 = vadd.f32 %v2319_v35, %v7601_v13  ;;  %v2877_v23 = vmax.f32 %v2876_v16, %v2530_v39  ;;  %v2919_v14 = vmax.f32 %v2918_v6, %v2532_v38 }
 0x384   : > { %4738 = vmatprep.subr.bf16.mxu1 %v6536_v8  ;;  %v2540_v8 = vmax.f32 %v2312_v46, 0.0  ;;  %v2129_v56 = vadd.f32 %v2128_v7, %v7592_v15  ;;  %v2898_v30 = vmax.f32 %v2897_v29, %v2531_v33  ;;  %v2940_v27 = vmax.f32 %v2939_v34, %v2533_v31 }
 0x385   : > { %v2130_v55 = vpop.f32.mrf.mxu0  ;;  %v2323_v63 = vpop.f32.mrf.mxu1  ;;  %v2322_v5 = vadd.f32 %v2321_v20, %v7595_v21  ;;  %v2878_v24 = vmax.f32 %v2877_v23, %v2538_v36  ;;  %v2546_v11 = vmax.f32 %v2125_v28, 0.0  ;;  %v2548_v26 = vmax.f32 %v2318_v0, 0.0 }
 0x386   : > { %v2547_v47 = vmax.f32 %v2127_v40, 0.0  ;;  %v2920_v2 = vmax.f32 %v2919_v14, %v2540_v8  ;;  %v2549_v35 = vmax.f32 %v2320_v50, 0.0  ;;  %v2131_v42 = vadd.f32 %v2130_v55, %v7598_v12 }
 0x387   : > { %v2134_v22 = vpop.f32.mrf.mxu0  ;;  %v2327_v62 = vpop.f32.mrf.mxu1  ;;  %v2324_v19 = vadd.f32 %v2323_v63, %v7601_v13  ;;  %v2899_v7 = vmax.f32 %v2898_v30, %v2539_v60  ;;  %v2554_v41 = vmax.f32 %v2129_v56, 0.0  ;;  %v2941_v46 = vmax.f32 %v2940_v27, %v2541_v1 }
 0x388   : > { %v2135_v4 = vadd.f32 %v2134_v22, %v7592_v15  ;;  %v2328_v20 = vadd.f32 %v2327_v62, %v7595_v21  ;;  %v2556_v16 = vmax.f32 %v2322_v5, 0.0  ;;  %v2879_v33 = vmax.f32 %v2878_v24, %v2546_v11 }
 0x389   : > { %v2136_v10 = vpop.f32.mrf.mxu0  ;;  %v2329_v43 = vpop.f32.mrf.mxu1  ;;  %v2921_v55 = vmax.f32 %v2920_v2, %v2548_v26  ;;  %v2900_v31 = vmax.f32 %v2899_v7, %v2547_v47  ;;  %v2942_v17 = vmax.f32 %v2941_v46, %v2549_v35  ;;  %v2555_v36 = vmax.f32 %v2131_v42, 0.0 }
 0x38a   : > { %v2137_v39 = vadd.f32 %v2136_v10, %v7598_v12  ;;  %v2330_v38 = vadd.f32 %v2329_v43, %v7601_v13  ;;  %v2557_v28 = vmax.f32 %v2324_v19, 0.0  ;;  %v2880_v40 = vmax.f32 %v2879_v33, %v2554_v41 }
 0x38b   : > { %v2138_v58 = vpop.f32.mrf.mxu0  ;;  %v2331_v25 = vpop.f32.mrf.mxu1  ;;  %v2562_v29 = vmax.f32 %v2135_v4, 0.0  ;;  %v2564_v34 = vmax.f32 %v2328_v20, 0.0  ;;  %v2922_v50 = vmax.f32 %v2921_v55, %v2556_v16  ;;  %v2901_v5 = vmax.f32 %v2900_v31, %v2555_v36 }
 0x38c   : > { %v2139_v63 = vadd.f32 %v2138_v58, %v7592_v15  ;;  %v2332_v22 = vadd.f32 %v2331_v25, %v7595_v21  ;;  %v2563_v10 = vmax.f32 %v2137_v39, 0.0  ;;  %v2565_v43 = vmax.f32 %v2330_v38, 0.0 }
 0x38d   : > { %v2140_v9 = vpop.f32.mrf.mxu0  ;;  %v2333_v54 = vpop.f32.mrf.mxu1  ;;  %v2943_v58 = vmax.f32 %v2942_v17, %v2557_v28  ;;  %v2881_v47 = vmax.f32 %v2880_v40, %v2562_v29  ;;  %v2923_v2 = vmax.f32 %v2922_v50, %v2564_v34 }
 0x38e   : > { %v2141_v8 = vadd.f32 %v2140_v9, %v7598_v12  ;;  %v2334_v23 = vadd.f32 %v2333_v54, %v7601_v13  ;;  %v2570_v56 = vmax.f32 %v2139_v63, 0.0  ;;  %v2572_v25 = vmax.f32 %v2332_v22, 0.0 }
 0x38f   : > { %v2144_v53 = vpop.f32.mrf.mxu0  ;;  %v2337_v6 = vpop.f32.mrf.mxu1  ;;  %v2902_v19 = vmax.f32 %v2901_v5, %v2563_v10  ;;  %v2944_v9 = vmax.f32 %v2943_v58, %v2565_v43 }
 0x390   : > { %v2145_v30 = vadd.f32 %v2144_v53, %v7592_v15  ;;  %v2338_v27 = vadd.f32 %v2337_v6, %v7595_v21  ;;  %v2571_v35 = vmax.f32 %v2141_v8, 0.0  ;;  %v2573_v54 = vmax.f32 %v2334_v23, 0.0 }
 0x391   : > { %v2146_v0 = vpop.f32.mrf.mxu0  ;;  %v2339_v62 = vpop.f32.mrf.mxu1  ;;  %v2882_v20 = vmax.f32 %v2881_v47, %v2570_v56  ;;  %v2924_v38 = vmax.f32 %v2923_v2, %v2572_v25 }
 0x392   : > { %v2147_v1 = vadd.f32 %v2146_v0, %v7598_v12  ;;  %v2340_v24 = vadd.f32 %v2339_v62, %v7601_v13  ;;  %v2578_v46 = vmax.f32 %v2145_v30, 0.0  ;;  %v2580_v16 = vmax.f32 %v2338_v27, 0.0 }
 0x393   : > { %v2148_v14 = vpop.f32.mrf.mxu0  ;;  %v2341_v60 = vpop.f32.mrf.mxu1  ;;  %v2903_v63 = vmax.f32 %v2902_v19, %v2571_v35  ;;  %v2945_v22 = vmax.f32 %v2944_v9, %v2573_v54 }
 0x394   : > { %v2149_v42 = vadd.f32 %v2148_v14, %v7592_v15  ;;  %v2342_v7 = vadd.f32 %v2341_v60, %v7595_v21  ;;  %v2579_v39 = vmax.f32 %v2147_v1, 0.0  ;;  %v2581_v53 = vmax.f32 %v2340_v24, 0.0 }
 0x395   : > { %v2150_v11 = vpop.f32.mrf.mxu0  ;;  %v2343_v26 = vpop.f32.mrf.mxu1  ;;  %v2883_v8 = vmax.f32 %v2882_v20, %v2578_v46  ;;  %v2925_v50 = vmax.f32 %v2924_v38, %v2580_v16 }
 0x396   : > { %v2151_v6 = vadd.f32 %v2150_v11, %v7598_v12  ;;  %v2344_v33 = vadd.f32 %v2343_v26, %v7601_v13  ;;  %v2586_v17 = vmax.f32 %v2149_v42, 0.0  ;;  %v2588_v0 = vmax.f32 %v2342_v7, 0.0 }
 0x397   : > { %v2154_v41 = vpop.f32.mrf.mxu0  ;;  %v2347_v4 = vpop.f32.mrf.mxu1  ;;  %v2904_v10 = vmax.f32 %v2903_v63, %v2579_v39  ;;  %v2946_v23 = vmax.f32 %v2945_v22, %v2581_v53 }
 0x398   : > { %v2155_v36 = vadd.f32 %v2154_v41, %v7592_v15  ;;  %v2348_v28 = vadd.f32 %v2347_v4, %v7595_v21  ;;  %v2587_v14 = vmax.f32 %v2151_v6, 0.0  ;;  %v2589_v60 = vmax.f32 %v2344_v33, 0.0 }
 0x399   : > { %v2156_v55 = vpop.f32.mrf.mxu0  ;;  %v2349_v31 = vpop.f32.mrf.mxu1  ;;  %v2884_v1 = vmax.f32 %v2883_v8, %v2586_v17  ;;  %v2926_v24 = vmax.f32 %v2925_v50, %v2588_v0 }
 0x39a   : > { %v2157_v62 = vadd.f32 %v2156_v55, %v7598_v12  ;;  %v2350_v40 = vadd.f32 %v2349_v31, %v7601_v13  ;;  %v2594_v5 = vmax.f32 %v2155_v36, 0.0  ;;  %v2596_v58 = vmax.f32 %v2348_v28, 0.0 }
 0x39b   : > { %v2158_v29 = vpop.f32.mrf.mxu0  ;;  %v2351_v34 = vpop.f32.mrf.mxu1  ;;  %v2905_v7 = vmax.f32 %v2904_v10, %v2587_v14  ;;  %v2947_v41 = vmax.f32 %v2946_v23, %v2589_v60 }
 0x39c   : > { %v2159_v43 = vadd.f32 %v2158_v29, %v7592_v15  ;;  %v2352_v56 = vadd.f32 %v2351_v34, %v7595_v21  ;;  %v2595_v11 = vmax.f32 %v2157_v62, 0.0  ;;  %v2597_v26 = vmax.f32 %v2350_v40, 0.0 }
 0x39d   : > { %v2160_v30 = vpop.f32.mrf.mxu0  ;;  %v2353_v27 = vpop.f32.mrf.mxu1  ;;  %v2885_v39 = vmax.f32 %v2884_v1, %v2594_v5  ;;  %v2927_v38 = vmax.f32 %v2926_v24, %v2596_v58  ;;  %v2765_v24 = vrot.slane %v7829_v52, 2 }
 0x39e   : > { %v2161_v25 = vadd.f32 %v2160_v30, %v7598_v12  ;;  %v2354_v47 = vadd.f32 %v2353_v27, %v7601_v13  ;;  %v2602_v42 = vmax.f32 %v2159_v43, 0.0  ;;  %v2604_v19 = vmax.f32 %v2352_v56, 0.0 }
 0x39f   : > { %v2164_v2 = vpop.f32.mrf.mxu0  ;;  %v2357_v35 = vpop.f32.mrf.mxu1  ;;  %v2906_v33 = vmax.f32 %v2905_v7, %v2595_v11  ;;  %v2948_v55 = vmax.f32 %v2947_v41, %v2597_v26  ;;  %v2786_v26 = vrot.slane %v7838_v18, 2 }
 0x3a0   : > { %v2165_v9 = vadd.f32 %v2164_v2, %v7592_v15  ;;  %v2358_v54 = vadd.f32 %v2357_v35, %v7595_v21  ;;  %v2603_v4 = vmax.f32 %v2161_v25, 0.0  ;;  %v2605_v20 = vmax.f32 %v2354_v47, 0.0 }
 0x3a1   : > { %v2166_v46 = vpop.f32.mrf.mxu0  ;;  %v2359_v16 = vpop.f32.mrf.mxu1  ;;  %v2886_v28 = vmax.f32 %v2885_v39, %v2602_v42  ;;  %v2928_v22 = vmax.f32 %v2927_v38, %v2604_v19  ;;  %v2723_v25 = vrot.slane %v7824_v45, 2 }
 0x3a2   : > { %v2610_v53 = vmax.f32 %v2165_v9, 0.0  ;;  %v2167_v6 = vadd.f32 %v2166_v46, %v7598_v12  ;;  %v2612_v31 = vmax.f32 %v2358_v54, 0.0  ;;  %v2360_v63 = vadd.f32 %v2359_v16, %v7601_v13 }
 0x3a3   : > { %v2168_v17 = vpop.f32.mrf.mxu0  ;;  %v2361_v36 = vpop.f32.mrf.mxu1  ;;  %v2907_v40 = vmax.f32 %v2906_v33, %v2603_v4  ;;  %v2949_v29 = vmax.f32 %v2948_v55, %v2605_v20  ;;  %v2724_v9 = vmax.f32 %v7824_v45, %v2723_v25  ;;  %v2766_v54 = vmax.f32 %v7829_v52, %v2765_v24  ;;  %v6537_v25 = vld [vmem:[#allocation5 + $0xc8] ss:$16 sps:$4 sm:$0xff]  }
 0x3a4   : > { %v2611_v0 = vmax.f32 %v2167_v6, 0.0  ;;  %v2169_v62 = vadd.f32 %v2168_v17, %v7592_v15  ;;  %v2613_v34 = vmax.f32 %v2360_v63, 0.0  ;;  %v2362_v8 = vadd.f32 %v2361_v36, %v7595_v21  ;;  %v6540_v24 = vld [vmem:[#allocation5 + $0x2c8] ss:$16 sps:$4 sm:$0xff]  }
 0x3a5   : > { %v2170_v50 = vpop.f32.mrf.mxu0  ;;  %v2363_v10 = vpop.f32.mrf.mxu1  ;;  %v2887_v43 = vmax.f32 %v2886_v28, %v2610_v53  ;;  %v2929_v56 = vmax.f32 %v2928_v22, %v2612_v31  ;;  %v2744_v21 = vrot.slane %v7835_v37, 2  ;;  %v2787_v4 = vmax.f32 %v7838_v18, %v2786_v26  ;;  %v6543_v26 = vld [vmem:[#allocation5 + $0xa8] ss:$16 sps:$4 sm:$0xff]  }
 0x3a6   : > { %v2618_v23 = vmax.f32 %v2169_v62, 0.0  ;;  %v2171_v14 = vadd.f32 %v2170_v50, %v7598_v12  ;;  %v2364_v60 = vadd.f32 %v2363_v10, %v7601_v13  ;;  %v2908_v30 = vmax.f32 %v2907_v40, %v2611_v0 }
 0x3a7   : > { %v2620_v27 = vmax.f32 %v2362_v8, 0.0  ;;  %v2950_v1 = vmax.f32 %v2949_v29, %v2613_v34  ;;  %v2745_v7 = vmax.f32 %v7835_v37, %v2744_v21  ;;  %v2725_v33 = vrot.slane %v2724_v9, 1  ;;  %v6545_v21 = vld [vmem:[#allocation5 + $0xac] ss:$16 sps:$4 sm:$0xff]  }
 0x3a8   : > { %v2888_v5 = vmax.f32 %v2887_v43, %v2618_v23  ;;  %v2619_v58 = vmax.f32 %v2171_v14, 0.0  ;;  %v2621_v15 = vmax.f32 %v2364_v60, 0.0  ;;  %v2767_v55 = vrot.slane %v2766_v54, 1 }
 0x3a9   : > { %v2930_v11 = vmax.f32 %v2929_v56, %v2620_v27  ;;  %v2746_v31 = vrot.slane %v2745_v7, 1  ;;  %v2788_v17 = vrot.slane %v2787_v4, 1  ;;  %v2726_v18 = vmax.f32 %v2724_v9, %v2725_v33  ;;  %v6534_v27 = vld [vmem:[#allocation5 + $0x2e8] ss:$16 sps:$4 sm:$0xff]   ;;  %v6563_v9 = vld [vmem:[#allocation5 + $0x4c] ss:$16 sps:$4 sm:$0xff]  }
 0x3aa   : > { %v2889_v47 = vrot.slane %v2888_v5, 4  ;;  %v2909_v12 = vmax.f32 %v2908_v30, %v2619_v58  ;;  %v2951_v2 = vmax.f32 %v2950_v1, %v2621_v15  ;;  %v2768_v62 = vmax.f32 %v2766_v54, %v2767_v55  ;;  %v6531_v30 = vld [vmem:[#allocation5 + $0xe8] ss:$16 sps:$4 sm:$0xff]   ;;  %v6539_v58 = vld [vmem:[#allocation5 + $0xcc] ss:$16 sps:$4 sm:$0xff]  }
 0x3ab   : > { %v2931_v13 = vrot.slane %v2930_v11, 4  ;;  %v2747_v29 = vmax.f32 %v2745_v7, %v2746_v31  ;;  %v2789_v8 = vmax.f32 %v2787_v4, %v2788_v17  ;;  %v6542_v15 = vld [vmem:[#allocation5 + $0x2cc] ss:$16 sps:$4 sm:$0xff]   ;;  %v6561_v7 = vld [vmem:[#allocation5 + $0x48] ss:$16 sps:$4 sm:$0xff]  }
 0x3ac   : > { %v2890_v35 = vmax.f32 %v2888_v5, %v2889_v47  ;;  %v2910_v42 = vrot.slane %v2909_v12, 4  ;;  %v2952_v19 = vrot.slane %v2951_v2, 4  ;;  %v6546_v47 = vld [vmem:[#allocation5 + $0x2a8] ss:$16 sps:$4 sm:$0xff]   ;;  %v6566_v54 = vld [vmem:[#allocation5 + $0x24c] ss:$16 sps:$4 sm:$0xff]  }
 0x3ad   : > { %v2932_v41 = vmax.f32 %v2930_v11, %v2931_v13  ;;  %v6548_v11 = vld [vmem:[#allocation5 + $0x2ac] ss:$16 sps:$4 sm:$0xff]   ;;  %v6549_v13 = vld [vmem:[#allocation5 + $0x88] ss:$16 sps:$4 sm:$0xff]  }
 0x3ae   : > { %v2891_v20 = vrot.slane %v2890_v35, 2  ;;  %v2911_v46 = vmax.f32 %v2909_v12, %v2910_v42  ;;  %v2953_v16 = vmax.f32 %v2951_v2, %v2952_v19  ;;  %v6551_v12 = vld [vmem:[#allocation5 + $0x8c] ss:$16 sps:$4 sm:$0xff]   ;;  %v6555_v42 = vld [vmem:[#allocation5 + $0x68] ss:$16 sps:$4 sm:$0xff]  }
 0x3af   : > { %v2933_v39 = vrot.slane %v2932_v41, 2  ;;  %v6554_v2 = vld [vmem:[#allocation5 + $0x28c] ss:$16 sps:$4 sm:$0xff]   ;;  %v6558_v19 = vld [vmem:[#allocation5 + $0x268] ss:$16 sps:$4 sm:$0xff]  }
 0x3b0   : > { %v2892_v38 = vmax.f32 %v2890_v35, %v2891_v20  ;;  %v2912_v53 = vrot.slane %v2911_v46, 2  ;;  %v2954_v6 = vrot.slane %v2953_v16, 2  ;;  %v6552_v35 = vld [vmem:[#allocation5 + $0x288] ss:$16 sps:$4 sm:$0xff]   ;;  %v6569_v4 = vld [vmem:[#allocation5 + $0x2c] ss:$16 sps:$4 sm:$0xff]  }
 0x3b1   : > { %v2934_v63 = vmax.f32 %v2932_v41, %v2933_v39  ;;  %v6564_v41 = vld [vmem:[#allocation5 + $0x248] ss:$16 sps:$4 sm:$0xff]   ;;  %v6572_v20 = vld [vmem:[#allocation5 + $0x22c] ss:$16 sps:$4 sm:$0xff]  }
 0x3b2   : > { %v2893_v45 = vrot.slane %v2892_v38, 1  ;;  %v2913_v36 = vmax.f32 %v2911_v46, %v2912_v53  ;;  %v2955_v52 = vmax.f32 %v2953_v16, %v2954_v6  ;;  %v6567_v46 = vld [vmem:[#allocation5 + $0x28] ss:$16 sps:$4 sm:$0xff]   ;;  %v6575_v39 = vld [vmem:[#allocation5 + $0xc] ss:$16 sps:$4 sm:$0xff]  }
 0x3b3   : > { %v2935_v28 = vrot.slane %v2934_v63, 1  ;;  %v6570_v16 = vld [vmem:[#allocation5 + $0x228] ss:$16 sps:$4 sm:$0xff]   ;;  %v6581_v33 = vld [vmem:[#allocation5 + $0x1ec] ss:$16 sps:$4 sm:$0xff]  }
 0x3b4   : > { %v2894_v37 = vmax.f32 %v2892_v38, %v2893_v45  ;;  %v2914_v22 = vrot.slane %v2913_v36, 1  ;;  %v2956_v0 = vrot.slane %v2955_v52, 1  ;;  %v6578_v38 = vld [vmem:[#allocation5 + $0x20c] ss:$16 sps:$4 sm:$0xff]   ;;  %v6573_v53 = vld [vmem:[#allocation5 + $0x8] ss:$16 sps:$4 sm:$0xff]  }
 0x3b5   : > { %v2936_v40 = vmax.f32 %v2934_v63, %v2935_v28  ;;  %v6576_v6 = vld [vmem:[#allocation5 + $0x208] ss:$16 sps:$4 sm:$0xff]   ;;  %v6584_v55 = vld [vmem:[#allocation5 + $0x3ec] ss:$16 sps:$4 sm:$0xff]  }
 0x3b6   : > { %v2915_v34 = vmax.f32 %v2913_v36, %v2914_v22  ;;  %v2957_v50 = vmax.f32 %v2955_v52, %v2956_v0  ;;  %v2963_v10 = vsel %vm2958_vm3, %v2726_v18, %v2894_v37  ;;  %v6579_v31 = vld [vmem:[#allocation5 + $0x1e8] ss:$16 sps:$4 sm:$0xff]   ;;  %v6587_v17 = vld [vmem:[#allocation5 + $0x1cc] ss:$16 sps:$4 sm:$0xff]  }
 0x3b7   : > { %v2965_v43 = vsel %vm2958_vm3, %v2768_v62, %v2936_v40  ;;  %v7915_v1 = vpack.c.bf16 %v2963_v10, %v2963_v10  ;;  %v6582_v63 = vld [vmem:[#allocation5 + $0x3e8] ss:$16 sps:$4 sm:$0xff]   ;;  %v6590_v45 = vld [vmem:[#allocation5 + $0x3cc] ss:$16 sps:$4 sm:$0xff]  }
 0x3b8   : > { %v2964_v23 = vsel %vm2958_vm3, %v2747_v29, %v2915_v34  ;;  %v2966_v14 = vsel %vm2958_vm3, %v2789_v8, %v2957_v50  ;;  %v7917_v5 = vpack.c.bf16 %v2965_v43, %v2965_v43  ;;  %v6585_v36 = vld [vmem:[#allocation5 + $0x1c8] ss:$16 sps:$4 sm:$0xff]   ;;  %v6593_v28 = vld [vmem:[#allocation5 + $0x1ac] ss:$16 sps:$4 sm:$0xff]  }
 0x3b9   : > { %v7911_v60 = vpack.c.bf16 %v2964_v23, %v2964_v23  ;;  %v7913_v56 = vpack.c.bf16 %v2966_v14, %v2966_v14  ;;  %v6588_v52 = vld [vmem:[#allocation5 + $0x3c8] ss:$16 sps:$4 sm:$0xff]   ;;  %v6596_v37 = vld [vmem:[#allocation5 + $0x3ac] ss:$16 sps:$4 sm:$0xff]  }
 0x3ba   : > { %v6591_v22 = vld [vmem:[#allocation5 + $0x1a8] ss:$16 sps:$4 sm:$0xff]   ;;  %v6599_v18 = vld [vmem:[#allocation5 + $0x18c] ss:$16 sps:$4 sm:$0xff]  }
 0x3bb   : > { %4647 = vmatprep.mubr.bf16.mxu0 %v7911_v60  ;;  %4688 = vmatprep.mubr.bf16.mxu1 %v7913_v56  ;;  %v6594_v0 = vld [vmem:[#allocation5 + $0x3a8] ss:$16 sps:$4 sm:$0xff]   ;;  %v6602_v62 = vld [vmem:[#allocation5 + $0x38c] ss:$16 sps:$4 sm:$0xff]  }
 0x3bc   : > { %4648 = vmatmul.mubr.bf16.vlgmr.msra.gmra.mxu0 %v7915_v1  ;;  %4689 = vmatmul.mubr.bf16.vlgmr.msra.gmra.mxu1 %v7917_v5  ;;  %v6597_v40 = vld [vmem:[#allocation5 + $0x188] ss:$16 sps:$4 sm:$0xff]   ;;  %v6605_v34 = vld [vmem:[#allocation5 + $0x16c] ss:$16 sps:$4 sm:$0xff]  }
 0x3bd   : > { %4698 = vmatpush1.bf16.msra.mxu0 %v6531_v30  ;;  %4739 = vmatpush1.bf16.msra.mxu1 %v6534_v27  ;;  %v6600_v29 = vld [vmem:[#allocation5 + $0x388] ss:$16 sps:$4 sm:$0xff]   ;;  %v6608_v8 = vld [vmem:[#allocation5 + $0x36c] ss:$16 sps:$4 sm:$0xff]  }
 0x3be   : > { %4729 = vmatprep.mubr.bf16.mxu0 %v7735_v3  ;;  %4770 = vmatprep.mubr.bf16.mxu1 %v7737_v61  ;;  %v6557_v3 = vld [vmem:[#allocation5 + $0x6c] ss:$16 sps:$4 sm:$0xff]   ;;  %v6603_v50 = vld [vmem:[#allocation5 + $0x168] ss:$16 sps:$4 sm:$0xff]  }
 0x3bf   : > { %4699 = vmatprep.subr.bf16.mxu0 %v6539_v58  ;;  %4740 = vmatprep.subr.bf16.mxu1 %v6542_v15  ;;  %v6560_v61 = vld [vmem:[#allocation5 + $0x26c] ss:$16 sps:$4 sm:$0xff]   ;;  %v6606_v10 = vld [vmem:[#allocation5 + $0x368] ss:$16 sps:$4 sm:$0xff]  }
 0x3c0   : > { %v6611_v43 = vld [vmem:[#allocation5 + $0x14c] ss:$16 sps:$4 sm:$0xff]   ;;  %v6609_v14 = vld [vmem:[#allocation5 + $0x148] ss:$16 sps:$4 sm:$0xff]  }
 0x3c1   : > { %4700 = vmatpush1.bf16.msra.mxu0 %v6537_v25  ;;  %4741 = vmatpush1.bf16.msra.mxu1 %v6540_v24  ;;  %v6614_v23 = vld [vmem:[#allocation5 + $0x34c] ss:$16 sps:$4 sm:$0xff]   ;;  %v6612_v30 = vld [vmem:[#allocation5 + $0x348] ss:$16 sps:$4 sm:$0xff]  }
 0x3c2   : > { %4701 = vmatprep.subr.bf16.mxu0 %v6545_v21  ;;  %4742 = vmatprep.subr.bf16.mxu1 %v6548_v11  ;;  %v6617_v27 = vld [vmem:[#allocation5 + $0x12c] ss:$16 sps:$4 sm:$0xff]   ;;  %v6615_v15 = vld [vmem:[#allocation5 + $0x128] ss:$16 sps:$4 sm:$0xff]  }
 0x3c3   : > { %v6620_v58 = vld [vmem:[#allocation5 + $0x32c] ss:$16 sps:$4 sm:$0xff]   ;;  %v6618_v25 = vld [vmem:[#allocation5 + $0x328] ss:$16 sps:$4 sm:$0xff]  }
 0x3c4   : > { %v6623_v24 = vld [vmem:[#allocation5 + $0x10c] ss:$16 sps:$4 sm:$0xff]   ;;  %v6621_v11 = vld [vmem:[#allocation5 + $0x108] ss:$16 sps:$4 sm:$0xff]  }
 0x3c5   : > { %4702 = vmatpush1.bf16.msra.mxu0 %v6543_v26  ;;  %4743 = vmatpush1.bf16.msra.mxu1 %v6546_v47  ;;  %v6626_v21 = vld [vmem:[#allocation5 + $0x30c] ss:$16 sps:$4 sm:$0xff]   ;;  %v6624_v26 = vld [vmem:[#allocation5 + $0x308] ss:$16 sps:$4 sm:$0xff]  }
 0x3c6   : > { %4703 = vmatprep.subr.bf16.mxu0 %v6551_v12  ;;  %4744 = vmatprep.subr.bf16.mxu1 %v6554_v2  ;;  %v6629_v47 = vld [vmem:[#allocation5 + $0x4ec] ss:$16 sps:$4 sm:$0xff]   ;;  %v6627_v2 = vld [vmem:[#allocation5 + $0x4e8] ss:$16 sps:$4 sm:$0xff]  }
 0x3c7   : > { %v6632_v12 = vld [vmem:[#allocation5 + $0x6ec] ss:$16 sps:$4 sm:$0xff]  }
 0x3c9   : > { %4704 = vmatpush1.bf16.msra.mxu0 %v6549_v13  ;;  %4745 = vmatpush1.bf16.msra.mxu1 %v6552_v35  ;;  %v6630_v13 = vld [vmem:[#allocation5 + $0x6e8] ss:$16 sps:$4 sm:$0xff]   ;;  %v6635_v35 = vld [vmem:[#allocation5 + $0x4cc] ss:$16 sps:$4 sm:$0xff]  }
 0x3ca   : > { %4705 = vmatprep.subr.bf16.mxu0 %v6557_v3  ;;  %4746 = vmatprep.subr.bf16.mxu1 %v6560_v61  ;;  %v6638_v3 = vld [vmem:[#allocation5 + $0x6cc] ss:$16 sps:$4 sm:$0xff]   ;;  %v6633_v61 = vld [vmem:[#allocation5 + $0x4c8] ss:$16 sps:$4 sm:$0xff]  }
 0x3cd   : > { %4706 = vmatpush1.bf16.msra.mxu0 %v6555_v42  ;;  %4747 = vmatpush1.bf16.msra.mxu1 %v6558_v19  ;;  %v6636_v42 = vld [vmem:[#allocation5 + $0x6c8] ss:$16 sps:$4 sm:$0xff]   ;;  %v6641_v19 = vld [vmem:[#allocation5 + $0x4ac] ss:$16 sps:$4 sm:$0xff]  }
 0x3ce   : > { %4707 = vmatprep.subr.bf16.mxu0 %v6563_v9  ;;  %4748 = vmatprep.subr.bf16.mxu1 %v6566_v54  ;;  %v7932_v9 = vld [vmem:[%s8056_s8] sm:$0xf]  ;;  %v6644_v54 = vld [vmem:[#allocation5 + $0x6ac] ss:$16 sps:$4 sm:$0xff]  }
 0x3d1   : > { %4708 = vmatpush1.bf16.msra.mxu0 %v6561_v7  ;;  %4749 = vmatpush1.bf16.msra.mxu1 %v6564_v41  ;;  %v6647_v7 = vld [vmem:[#allocation5 + $0x48c] ss:$16 sps:$4 sm:$0xff]   ;;  %v3240_v41 = vrot.slane %v7932_v9, %v7466_v57 }
 0x3d2   : > { %4709 = vmatprep.subr.bf16.mxu0 %v6569_v4  ;;  %4750 = vmatprep.subr.bf16.mxu1 %v6572_v20 }
 0x3d5   : > { %4710 = vmatpush1.bf16.msra.mxu0 %v6567_v46  ;;  %4751 = vmatpush1.bf16.msra.mxu1 %v6570_v16  ;;  %v6645_v46 = vld [vmem:[#allocation5 + $0x488] ss:$16 sps:$4 sm:$0xff]  }
 0x3d6   : > { %4711 = vmatprep.subr.bf16.mxu0 %v6575_v39  ;;  %4752 = vmatprep.subr.bf16.mxu1 %v6578_v38  ;;  %v6648_v39 = vld [vmem:[#allocation5 + $0x688] ss:$16 sps:$4 sm:$0xff]   ;;  %v6653_v38 = vld [vmem:[#allocation5 + $0x46c] ss:$16 sps:$4 sm:$0xff]  }
 0x3d9   : > { %4712 = vmatpush1.bf16.msra.mxu0 %v6573_v53  ;;  %4753 = vmatpush1.bf16.msra.mxu1 %v6576_v6 }
 0x3da   : > { %4713 = vmatprep.subr.bf16.mxu0 %v6581_v33  ;;  %4754 = vmatprep.subr.bf16.mxu1 %v6584_v55  ;;  %v6656_v33 = vld [vmem:[#allocation5 + $0x66c] ss:$16 sps:$4 sm:$0xff]  }
 0x3dd   : > { %4714 = vmatpush2.bf16.msra.mxu0 %v6579_v31  ;;  %4755 = vmatpush2.bf16.msra.mxu1 %v6582_v63 }
 0x3de   : > { %4715 = vmatprep.subr.bf16.mxu0 %v6587_v17  ;;  %4756 = vmatprep.subr.bf16.mxu1 %v6590_v45  ;;  %v6651_v45 = vld [vmem:[#allocation5 + $0x468] ss:$16 sps:$4 sm:$0xff]  }
 0x3e1   : > { %4716 = vmatpush2.bf16.msra.mxu0 %v6585_v36  ;;  %4757 = vmatpush2.bf16.msra.mxu1 %v6588_v52  ;;  %v6654_v52 = vld [vmem:[#allocation5 + $0x668] ss:$16 sps:$4 sm:$0xff]  }
 0x3e2   : > { %4717 = vmatprep.subr.bf16.mxu0 %v6593_v28  ;;  %4758 = vmatprep.subr.bf16.mxu1 %v6596_v37  ;;  %v6659_v28 = vld [vmem:[#allocation5 + $0x44c] ss:$16 sps:$4 sm:$0xff]  }
 0x3e5   : > { %4718 = vmatpush2.bf16.msra.mxu0 %v6591_v22  ;;  %4759 = vmatpush2.bf16.msra.mxu1 %v6594_v0  ;;  %v6662_v0 = vld [vmem:[#allocation5 + $0x64c] ss:$16 sps:$4 sm:$0xff]  }
 0x3e6   : > { %4719 = vmatprep.subr.bf16.mxu0 %v6599_v18  ;;  %4760 = vmatprep.subr.bf16.mxu1 %v6602_v62  ;;  %v6657_v18 = vld [vmem:[#allocation5 + $0x448] ss:$16 sps:$4 sm:$0xff]  }
 0x3e7   : > { %v6660_v62 = vld [vmem:[#allocation5 + $0x648] ss:$16 sps:$4 sm:$0xff]  }
 0x3e9   : > { %4720 = vmatpush2.bf16.msra.mxu0 %v6597_v40  ;;  %4761 = vmatpush2.bf16.msra.mxu1 %v6600_v29  ;;  %v6665_v40 = vld [vmem:[#allocation5 + $0x42c] ss:$16 sps:$4 sm:$0xff]  }
 0x3ea   : > { %4721 = vmatprep.subr.bf16.mxu0 %v6605_v34  ;;  %4762 = vmatprep.subr.bf16.mxu1 %v6608_v8  ;;  %v6668_v29 = vld [vmem:[#allocation5 + $0x62c] ss:$16 sps:$4 sm:$0xff]   ;;  %v6663_v34 = vld [vmem:[#allocation5 + $0x428] ss:$16 sps:$4 sm:$0xff]  }
 0x3eb   : > { %v6666_v8 = vld [vmem:[#allocation5 + $0x628] ss:$16 sps:$4 sm:$0xff]  }
 0x3ed   : > { %4722 = vmatpush2.bf16.msra.mxu0 %v6603_v50  ;;  %4763 = vmatpush2.bf16.msra.mxu1 %v6606_v10  ;;  %v6671_v50 = vld [vmem:[#allocation5 + $0x40c] ss:$16 sps:$4 sm:$0xff]  }
 0x3ee   : > { %4723 = vmatprep.subr.bf16.mxu0 %v6611_v43  ;;  %4764 = vmatprep.subr.bf16.mxu1 %v6614_v23  ;;  %v6674_v10 = vld [vmem:[#allocation5 + $0x60c] ss:$16 sps:$4 sm:$0xff]   ;;  %v6669_v43 = vld [vmem:[#allocation5 + $0x408] ss:$16 sps:$4 sm:$0xff]  }
 0x3ef   : > { %v6672_v23 = vld [vmem:[#allocation5 + $0x608] ss:$16 sps:$4 sm:$0xff]  }
 0x3f1   : > { %4724 = vmatpush2.bf16.msra.mxu0 %v6609_v14  ;;  %4765 = vmatpush2.bf16.msra.mxu1 %v6612_v30  ;;  %v6677_v14 = vld [vmem:[#allocation5 + $0x5ec] ss:$16 sps:$4 sm:$0xff]  }
 0x3f2   : > { %4725 = vmatprep.subr.bf16.mxu0 %v6617_v27  ;;  %4766 = vmatprep.subr.bf16.mxu1 %v6620_v58  ;;  %v6680_v30 = vld [vmem:[#allocation5 + $0x7ec] ss:$16 sps:$4 sm:$0xff]   ;;  %v6675_v27 = vld [vmem:[#allocation5 + $0x5e8] ss:$16 sps:$4 sm:$0xff]  }
 0x3f3   : > { %v6678_v58 = vld [vmem:[#allocation5 + $0x7e8] ss:$16 sps:$4 sm:$0xff]  }
 0x3f5   : > { %4726 = vmatpush2.bf16.msra.mxu0 %v6615_v15  ;;  %4767 = vmatpush2.bf16.msra.mxu1 %v6618_v25  ;;  %v6683_v15 = vld [vmem:[#allocation5 + $0x5cc] ss:$16 sps:$4 sm:$0xff]  }
 0x3f6   : > { %4727 = vmatprep.subr.bf16.mxu0 %v6623_v24  ;;  %4768 = vmatprep.subr.bf16.mxu1 %v6626_v21  ;;  %v6686_v25 = vld [vmem:[#allocation5 + $0x7cc] ss:$16 sps:$4 sm:$0xff]   ;;  %v6681_v24 = vld [vmem:[#allocation5 + $0x5c8] ss:$16 sps:$4 sm:$0xff]  }
 0x3f7   : > { %v6684_v21 = vld [vmem:[#allocation5 + $0x7c8] ss:$16 sps:$4 sm:$0xff]  }
 0x3f9   : > { %4728 = vmatpush2.bf16.msra.mxu0 %v6621_v11  ;;  %4769 = vmatpush2.bf16.msra.mxu1 %v6624_v26  ;;  %v6689_v11 = vld [vmem:[#allocation5 + $0x5ac] ss:$16 sps:$4 sm:$0xff]  }
 0x3fa   : > { %4779 = vmatprep.subr.bf16.mxu0 %v6629_v47  ;;  %4820 = vmatprep.subr.bf16.mxu1 %v6632_v12  ;;  %v6692_v26 = vld [vmem:[#allocation5 + $0x7ac] ss:$16 sps:$4 sm:$0xff]   ;;  %v6687_v47 = vld [vmem:[#allocation5 + $0x5a8] ss:$16 sps:$4 sm:$0xff]  }
 0x3fb   : > { %v6690_v12 = vld [vmem:[#allocation5 + $0x7a8] ss:$16 sps:$4 sm:$0xff]  }
 0x3fc   : > { %4730 = vmatmul.mubr.bf16.vlgmr.msra.gmra.mxu0 %v7713_v32  ;;  %4771 = vmatmul.mubr.bf16.vlgmr.msra.gmra.mxu1 %v7715_v51  ;;  %v6639_v32 = vld [vmem:[#allocation5 + $0x4a8] ss:$16 sps:$4 sm:$0xff]   ;;  %v3236_v51 = vrot.slane %v7932_v9, %v7457_v48 }
 0x3fd   : > { %4780 = vmatpush1.bf16.msra.mxu0 %v6627_v2  ;;  %4811 = vmatprep.mubr.bf16.mxu0 %v7911_v60  ;;  %v6642_v60 = vld [vmem:[#allocation5 + $0x6a8] ss:$16 sps:$4 sm:$0xff]   ;;  %v6695_v2 = vld [vmem:[#allocation5 + $0x58c] ss:$16 sps:$4 sm:$0xff]  }
 0x3fe   : > { %4821 = vmatpush1.bf16.msra.mxu1 %v6630_v13  ;;  %4852 = vmatprep.mubr.bf16.mxu1 %v7913_v56  ;;  %v6650_v56 = vld [vmem:[#allocation5 + $0x68c] ss:$16 sps:$4 sm:$0xff]  }
 0x3ff   : > { %4781 = vmatprep.subr.bf16.mxu0 %v6635_v35  ;;  %4822 = vmatprep.subr.bf16.mxu1 %v6638_v3  ;;  %v6698_v13 = vld [vmem:[#allocation5 + $0x78c] ss:$16 sps:$4 sm:$0xff]   ;;  %v6693_v35 = vld [vmem:[#allocation5 + $0x588] ss:$16 sps:$4 sm:$0xff]  }
 0x400   : > { %v6696_v3 = vld [vmem:[#allocation5 + $0x788] ss:$16 sps:$4 sm:$0xff]  }
 0x401   : > { %4782 = vmatpush1.bf16.msra.mxu0 %v6633_v61  ;;  %v6701_v61 = vld [vmem:[#allocation5 + $0x56c] ss:$16 sps:$4 sm:$0xff]  }
 0x402   : > { %4823 = vmatpush1.bf16.msra.mxu1 %v6636_v42  ;;  %4783 = vmatprep.subr.bf16.mxu0 %v6641_v19  ;;  %v6704_v42 = vld [vmem:[#allocation5 + $0x76c] ss:$16 sps:$4 sm:$0xff]   ;;  %v6699_v19 = vld [vmem:[#allocation5 + $0x568] ss:$16 sps:$4 sm:$0xff]  }
 0x403   : > { %4824 = vmatprep.subr.bf16.mxu1 %v6644_v54  ;;  %v6702_v54 = vld [vmem:[#allocation5 + $0x768] ss:$16 sps:$4 sm:$0xff]  }
 0x405   : > { %v4567_v4 = vpop.f32.mrf.mxu0  ;;  %v4608_v20 = vpop.f32.mrf.mxu1  ;;  %4784 = vmatpush1.bf16.msra.mxu0 %v6639_v32  ;;  %v6707_v32 = vld [vmem:[#allocation5 + $0x54c] ss:$16 sps:$4 sm:$0xff]  }
 0x406   : > { %v4568_v16 = vadd.f32 %v4567_v4, %v3236_v51  ;;  %4825 = vmatpush1.bf16.msra.mxu1 %v6642_v60  ;;  %4785 = vmatprep.subr.bf16.mxu0 %v6647_v7  ;;  %v6710_v51 = vld [vmem:[#allocation5 + $0x74c] ss:$16 sps:$4 sm:$0xff]   ;;  %v6705_v60 = vld [vmem:[#allocation5 + $0x548] ss:$16 sps:$4 sm:$0xff]  }
 0x407   : > { %v4569_v53 = vpop.f32.mrf.mxu0  ;;  %v4610_v6 = vpop.f32.mrf.mxu1  ;;  %4826 = vmatprep.subr.bf16.mxu1 %v6650_v56  ;;  %v6708_v7 = vld [vmem:[#allocation5 + $0x748] ss:$16 sps:$4 sm:$0xff]   ;;  %v6713_v56 = vld [vmem:[#allocation5 + $0x52c] ss:$16 sps:$4 sm:$0xff]  }
 0x408   : > { %v7938_v55 = vadd.f32 %v4608_v20, %v4568_v16  ;;  %v4570_v31 = vadd.f32 %v4569_v53, %v3240_v41  ;;  %v6716_v41 = vld [vmem:[#allocation5 + $0x72c] ss:$16 sps:$4 sm:$0xff]   ;;  %v6711_v4 = vld [vmem:[#allocation5 + $0x528] ss:$16 sps:$4 sm:$0xff]  }
 0x409   : > { %v4571_v63 = vpop.f32.mrf.mxu0  ;;  %v4612_v17 = vpop.f32.mrf.mxu1  ;;  %4786 = vmatpush1.bf16.msra.mxu0 %v6645_v46  ;;  %v6714_v20 = vld [vmem:[#allocation5 + $0x728] ss:$16 sps:$4 sm:$0xff]   ;;  %v6719_v46 = vld [vmem:[#allocation5 + $0x50c] ss:$16 sps:$4 sm:$0xff]  }
 0x40a   : > { %v7940_v36 = vadd.f32 %v4610_v6, %v4570_v31  ;;  %4827 = vmatpush1.bf16.msra.mxu1 %v6648_v39  ;;  %4787 = vmatprep.subr.bf16.mxu0 %v6653_v38  ;;  %v6722_v16 = vld [vmem:[#allocation5 + $0x70c] ss:$16 sps:$4 sm:$0xff]   ;;  %v6717_v39 = vld [vmem:[#allocation5 + $0x508] ss:$16 sps:$4 sm:$0xff]  }
 0x40b   : > { %v4572_v37 = vpop.f32.mrf.mxu0  ;;  %v4613_v22 = vpop.f32.mrf.mxu1  ;;  %4828 = vmatprep.subr.bf16.mxu1 %v6656_v33  ;;  %v6720_v38 = vld [vmem:[#allocation5 + $0x708] ss:$16 sps:$4 sm:$0xff]   ;;  %v6725_v53 = vld [vmem:[#allocation7 + $0x74] ss:$8 sps:$4 sm:$0xff]   ;;  %v6728_v33 = vld [vmem:[#allocation7 + $0x64] ss:$8 sps:$4 sm:$0xff]  }
 0x40c   : > { %v6723_v6 = vld [vmem:[#allocation7 + $0x70] ss:$8 sps:$4 sm:$0xff]   ;;  %v6726_v31 = vld [vmem:[#allocation7 + $0x60] ss:$8 sps:$4 sm:$0xff]   ;;  %v6731_v63 = vld [vmem:[#allocation7 + $0x54] ss:$8 sps:$4 sm:$0xff]  }
 0x40d   : > { %4788 = vmatpush1.bf16.msra.mxu0 %v6651_v45  ;;  %v6729_v17 = vld [vmem:[#allocation7 + $0x50] ss:$8 sps:$4 sm:$0xff]   ;;  %v6734_v45 = vld [vmem:[#allocation7 + $0x44] ss:$8 sps:$4 sm:$0xff]   ;;  %v6732_v22 = vld [vmem:[#allocation7 + $0x40] ss:$8 sps:$4 sm:$0xff]  }
 0x40e   : > { %4829 = vmatpush1.bf16.msra.mxu1 %v6654_v52  ;;  %4789 = vmatprep.subr.bf16.mxu0 %v6659_v28  ;;  %v6771_v52 = vld [vmem:[#allocation7 + $0x170] ss:$8 sps:$4 sm:$0xff]   ;;  %v6773_v28 = vld [vmem:[#allocation7 + $0x174] ss:$8 sps:$4 sm:$0xff]   ;;  %v6776_v37 = vld [vmem:[#allocation7 + $0x164] ss:$8 sps:$4 sm:$0xff]  }
 0x40f   : > { %4830 = vmatprep.subr.bf16.mxu1 %v6662_v0  ;;  %v6774_v0 = vld [vmem:[#allocation7 + $0x160] ss:$8 sps:$4 sm:$0xff]  }
 0x411   : > { %4790 = vmatpush1.bf16.msra.mxu0 %v6657_v18  ;;  %v6735_v18 = vld [vmem:[#allocation7 + $0x30] ss:$8 sps:$4 sm:$0xff]  }
 0x412   : > { %4831 = vmatpush1.bf16.msra.mxu1 %v6660_v62  ;;  %4791 = vmatprep.subr.bf16.mxu0 %v6665_v40  ;;  %v6777_v62 = vld [vmem:[#allocation7 + $0x150] ss:$8 sps:$4 sm:$0xff]   ;;  %v6740_v40 = vld [vmem:[#allocation7 + $0x24] ss:$8 sps:$4 sm:$0xff]  }
 0x413   : > { %4832 = vmatprep.subr.bf16.mxu1 %v6668_v29  ;;  %v6782_v29 = vld [vmem:[#allocation7 + $0x144] ss:$8 sps:$4 sm:$0xff]  }
 0x415   : > { %4792 = vmatpush1.bf16.msra.mxu0 %v6663_v34  ;;  %v6738_v34 = vld [vmem:[#allocation7 + $0x20] ss:$8 sps:$4 sm:$0xff]  }
 0x416   : > { %4833 = vmatpush1.bf16.msra.mxu1 %v6666_v8  ;;  %4793 = vmatprep.subr.bf16.mxu0 %v6671_v50  ;;  %v6780_v8 = vld [vmem:[#allocation7 + $0x140] ss:$8 sps:$4 sm:$0xff]   ;;  %v6743_v50 = vld [vmem:[#allocation7 + $0x14] ss:$8 sps:$4 sm:$0xff]  }
 0x417   : > { %4834 = vmatprep.subr.bf16.mxu1 %v6674_v10  ;;  %v6785_v10 = vld [vmem:[#allocation7 + $0x134] ss:$8 sps:$4 sm:$0xff]  }
 0x419   : > { %4794 = vmatpush1.bf16.msra.mxu0 %v6669_v43  ;;  %v6741_v43 = vld [vmem:[#allocation7 + $0x10] ss:$8 sps:$4 sm:$0xff]  }
 0x41a   : > { %4835 = vmatpush1.bf16.msra.mxu1 %v6672_v23  ;;  %4795 = vmatprep.subr.bf16.mxu0 %v6677_v14  ;;  %v6783_v23 = vld [vmem:[#allocation7 + $0x130] ss:$8 sps:$4 sm:$0xff]   ;;  %v6746_v14 = vld [vmem:[#allocation7 + $0x4] ss:$8 sps:$4 sm:$0xff]  }
 0x41b   : > { %4836 = vmatprep.subr.bf16.mxu1 %v6680_v30  ;;  %v6788_v30 = vld [vmem:[#allocation7 + $0x124] ss:$8 sps:$4 sm:$0xff]  }
 0x41d   : > { %4796 = vmatpush2.bf16.msra.mxu0 %v6675_v27  ;;  %v6744_v27 = vld [vmem:[#allocation7] ss:$8 sps:$4 sm:$0xff]  }
 0x41e   : > { %4837 = vmatpush2.bf16.msra.mxu1 %v6678_v58  ;;  %4797 = vmatprep.subr.bf16.mxu0 %v6683_v15  ;;  %v6786_v58 = vld [vmem:[#allocation7 + $0x120] ss:$8 sps:$4 sm:$0xff]   ;;  %v6749_v15 = vld [vmem:[#allocation7 + $0xf4] ss:$8 sps:$4 sm:$0xff]  }
 0x41f   : > { %4838 = vmatprep.subr.bf16.mxu1 %v6686_v25  ;;  %v6791_v25 = vld [vmem:[#allocation7 + $0x114] ss:$8 sps:$4 sm:$0xff]  }
 0x421   : > { %4798 = vmatpush2.bf16.msra.mxu0 %v6681_v24  ;;  %v6747_v24 = vld [vmem:[#allocation7 + $0xf0] ss:$8 sps:$4 sm:$0xff]  }
 0x422   : > { %4839 = vmatpush2.bf16.msra.mxu1 %v6684_v21  ;;  %4799 = vmatprep.subr.bf16.mxu0 %v6689_v11  ;;  %v6789_v21 = vld [vmem:[#allocation7 + $0x110] ss:$8 sps:$4 sm:$0xff]   ;;  %v6752_v11 = vld [vmem:[#allocation7 + $0xe4] ss:$8 sps:$4 sm:$0xff]  }
 0x423   : > { %4840 = vmatprep.subr.bf16.mxu1 %v6692_v26  ;;  %v6794_v26 = vld [vmem:[#allocation7 + $0x104] ss:$8 sps:$4 sm:$0xff]  }
 0x425   : > { %4800 = vmatpush2.bf16.msra.mxu0 %v6687_v47  ;;  %v6750_v47 = vld [vmem:[#allocation7 + $0xe0] ss:$8 sps:$4 sm:$0xff]  }
 0x426   : > { %4841 = vmatpush2.bf16.msra.mxu1 %v6690_v12  ;;  %4801 = vmatprep.subr.bf16.mxu0 %v6695_v2  ;;  %v6792_v12 = vld [vmem:[#allocation7 + $0x100] ss:$8 sps:$4 sm:$0xff]   ;;  %v6755_v2 = vld [vmem:[#allocation7 + $0xd4] ss:$8 sps:$4 sm:$0xff]  }
 0x427   : > { %4842 = vmatprep.subr.bf16.mxu1 %v6698_v13  ;;  %v6797_v13 = vld [vmem:[#allocation7 + $0x1f4] ss:$8 sps:$4 sm:$0xff]  }
 0x429   : > { %4802 = vmatpush2.bf16.msra.mxu0 %v6693_v35  ;;  %v6753_v35 = vld [vmem:[#allocation7 + $0xd0] ss:$8 sps:$4 sm:$0xff]  }
 0x42a   : > { %4843 = vmatpush2.bf16.msra.mxu1 %v6696_v3  ;;  %4803 = vmatprep.subr.bf16.mxu0 %v6701_v61  ;;  %v6795_v3 = vld [vmem:[#allocation7 + $0x1f0] ss:$8 sps:$4 sm:$0xff]   ;;  %v6758_v61 = vld [vmem:[#allocation7 + $0xc4] ss:$8 sps:$4 sm:$0xff]  }
 0x42b   : > { %4844 = vmatprep.subr.bf16.mxu1 %v6704_v42  ;;  %v6800_v42 = vld [vmem:[#allocation7 + $0x1e4] ss:$8 sps:$4 sm:$0xff]  }
 0x42d   : > { %4804 = vmatpush2.bf16.msra.mxu0 %v6699_v19  ;;  %v6756_v19 = vld [vmem:[#allocation7 + $0xc0] ss:$8 sps:$4 sm:$0xff]  }
 0x42e   : > { %4845 = vmatpush2.bf16.msra.mxu1 %v6702_v54  ;;  %4805 = vmatprep.subr.bf16.mxu0 %v6707_v32  ;;  %v6798_v54 = vld [vmem:[#allocation7 + $0x1e0] ss:$8 sps:$4 sm:$0xff]   ;;  %v6761_v32 = vld [vmem:[#allocation7 + $0xb4] ss:$8 sps:$4 sm:$0xff]  }
 0x42f   : > { %4846 = vmatprep.subr.bf16.mxu1 %v6710_v51  ;;  %v6803_v51 = vld [vmem:[#allocation7 + $0x1d4] ss:$8 sps:$4 sm:$0xff]  }
 0x431   : > { %4806 = vmatpush2.bf16.msra.mxu0 %v6705_v60  ;;  %v6759_v60 = vld [vmem:[#allocation7 + $0xb0] ss:$8 sps:$4 sm:$0xff]  }
 0x432   : > { %4847 = vmatpush2.bf16.msra.mxu1 %v6708_v7  ;;  %4807 = vmatprep.subr.bf16.mxu0 %v6713_v56  ;;  %v6801_v7 = vld [vmem:[#allocation7 + $0x1d0] ss:$8 sps:$4 sm:$0xff]   ;;  %v6764_v56 = vld [vmem:[#allocation7 + $0xa4] ss:$8 sps:$4 sm:$0xff]  }
 0x433   : > { %4848 = vmatprep.subr.bf16.mxu1 %v6716_v41  ;;  %v6806_v41 = vld [vmem:[#allocation7 + $0x1c4] ss:$8 sps:$4 sm:$0xff]  }
 0x435   : > { %4808 = vmatpush2.bf16.msra.mxu0 %v6711_v4  ;;  %v6762_v4 = vld [vmem:[#allocation7 + $0xa0] ss:$8 sps:$4 sm:$0xff]  }
 0x436   : > { %4849 = vmatpush2.bf16.msra.mxu1 %v6714_v20  ;;  %4809 = vmatprep.subr.bf16.mxu0 %v6719_v46  ;;  %v6804_v20 = vld [vmem:[#allocation7 + $0x1c0] ss:$8 sps:$4 sm:$0xff]   ;;  %v6767_v46 = vld [vmem:[#allocation7 + $0x94] ss:$8 sps:$4 sm:$0xff]  }
 0x437   : > { %4850 = vmatprep.subr.bf16.mxu1 %v6722_v16  ;;  %v6809_v16 = vld [vmem:[#allocation7 + $0x1b4] ss:$8 sps:$4 sm:$0xff]  }
 0x439   : > { %4810 = vmatpush2.bf16.msra.mxu0 %v6717_v39  ;;  %v6765_v39 = vld [vmem:[#allocation7 + $0x90] ss:$8 sps:$4 sm:$0xff]  }
 0x43a   : > { %4851 = vmatpush2.bf16.msra.mxu1 %v6720_v38  ;;  %5265 = vmatprep.subr.bf16.mxu0 %v6725_v53  ;;  %v6807_v38 = vld [vmem:[#allocation7 + $0x1b0] ss:$8 sps:$4 sm:$0xff]   ;;  %v6770_v53 = vld [vmem:[#allocation7 + $0x84] ss:$8 sps:$4 sm:$0xff]  }
 0x43b   : > { %5306 = vmatprep.subr.bf16.mxu1 %v6773_v28 }
 0x43c   : > { %4812 = vmatmul.mubr.bf16.vlgmr.msra.gmra.mxu0 %v7915_v1  ;;  %v6737_v1 = vld [vmem:[#allocation7 + $0x34] ss:$8 sps:$4 sm:$0xff]  }
 0x43d   : > { %4853 = vmatmul.mubr.bf16.vlgmr.msra.gmra.mxu1 %v7917_v5  ;;  %5266 = vmatpush1.bf16.msra.mxu0 %v6723_v6  ;;  %v6779_v5 = vld [vmem:[#allocation7 + $0x154] ss:$8 sps:$4 sm:$0xff]   ;;  %v6768_v6 = vld [vmem:[#allocation7 + $0x80] ss:$8 sps:$4 sm:$0xff]  }
 0x43e   : > { %5267 = vmatprep.subr.bf16.mxu0 %v6728_v33  ;;  %5307 = vmatpush1.bf16.msra.mxu1 %v6771_v52 }
 0x43f   : > { %5308 = vmatprep.subr.bf16.mxu1 %v6776_v37 }
 0x441   : > { %5268 = vmatpush1.bf16.msra.mxu0 %v6726_v31 }
 0x442   : > { %5269 = vmatprep.subr.bf16.mxu0 %v6731_v63  ;;  %5309 = vmatpush1.bf16.msra.mxu1 %v6774_v0 }
 0x443   : > { %5310 = vmatprep.subr.bf16.mxu1 %v6779_v5 }
 0x445   : > { %5270 = vmatpush1.bf16.msra.mxu0 %v6729_v17 }
 0x446   : > { %5271 = vmatprep.subr.bf16.mxu0 %v6734_v45  ;;  %5311 = vmatpush1.bf16.msra.mxu1 %v6777_v62  ;;  %v6812_v62 = vld [vmem:[#allocation7 + $0x1a4] ss:$8 sps:$4 sm:$0xff]  }
 0x447   : > { %5312 = vmatprep.subr.bf16.mxu1 %v6782_v29  ;;  %v6810_v29 = vld [vmem:[#allocation7 + $0x1a0] ss:$8 sps:$4 sm:$0xff]  }
 0x449   : > { %5272 = vmatpush1.bf16.msra.mxu0 %v6732_v22 }
 0x44a   : > { %5273 = vmatprep.subr.bf16.mxu0 %v6737_v1  ;;  %5313 = vmatpush1.bf16.msra.mxu1 %v6780_v8  ;;  %v6813_v8 = vld [vmem:[#allocation7 + $0x190] ss:$8 sps:$4 sm:$0xff]  }
 0x44b   : > { %5314 = vmatprep.subr.bf16.mxu1 %v6785_v10  ;;  %v6818_v10 = vld [vmem:[#allocation7 + $0x184] ss:$8 sps:$4 sm:$0xff]  }
 0x44d   : > { %5274 = vmatpush1.bf16.msra.mxu0 %v6735_v18 }
 0x44e   : > { %5275 = vmatprep.subr.bf16.mxu0 %v6740_v40  ;;  %5315 = vmatpush1.bf16.msra.mxu1 %v6783_v23 }
 0x44f   : > { %5316 = vmatprep.subr.bf16.mxu1 %v6788_v30 }
 0x451   : > { %5276 = vmatpush1.bf16.msra.mxu0 %v6738_v34 }
 0x452   : > { %5277 = vmatprep.subr.bf16.mxu0 %v6743_v50  ;;  %5317 = vmatpush1.bf16.msra.mxu1 %v6786_v58  ;;  %v6815_v50 = vld [vmem:[#allocation7 + $0x194] ss:$8 sps:$4 sm:$0xff]  }
 0x453   : > { %5318 = vmatprep.subr.bf16.mxu1 %v6791_v25 }
 0x455   : > { %5278 = vmatpush1.bf16.msra.mxu0 %v6741_v43 }
 0x456   : > { %5279 = vmatprep.subr.bf16.mxu0 %v6746_v14  ;;  %5319 = vmatpush1.bf16.msra.mxu1 %v6789_v21  ;;  %v6820_v21 = vld [vmem:[%s8059_s11 + $0x38] sm:$0xff]  }
 0x457   : > { %5320 = vmatprep.subr.bf16.mxu1 %v6794_v26  ;;  %v6822_v26 = vld [vmem:[%s8059_s11 + $0x30] sm:$0xff]  }
 0x459   : > { %5280 = vmatpush1.bf16.msra.mxu0 %v6744_v27 }
 0x45a   : > { %5281 = vmatprep.subr.bf16.mxu0 %v6749_v15  ;;  %5321 = vmatpush1.bf16.msra.mxu1 %v6792_v12  ;;  %v6824_v12 = vld [vmem:[%s8059_s11 + $0x28] sm:$0xff]  }
 0x45b   : > { %5322 = vmatprep.subr.bf16.mxu1 %v6797_v13  ;;  %v6826_v13 = vld [vmem:[%s8059_s11 + $0x20] sm:$0xff]  }
 0x45d   : > { %5282 = vmatpush2.bf16.msra.mxu0 %v6747_v24  ;;  %v6819_v24 = vld [vmem:[%s8059_s11 + $0x78] sm:$0xff]  }
 0x45e   : > { %5283 = vmatprep.subr.bf16.mxu0 %v6752_v11  ;;  %5323 = vmatpush2.bf16.msra.mxu1 %v6795_v3  ;;  %v6821_v11 = vld [vmem:[%s8059_s11 + $0x70] sm:$0xff]   ;;  %v6828_v3 = vld [vmem:[%s8059_s11 + $0x18] sm:$0xff]  }
 0x45f   : > { %5324 = vmatprep.subr.bf16.mxu1 %v6800_v42  ;;  %v6830_v42 = vld [vmem:[%s8059_s11 + $0x10] sm:$0xff]  }
 0x461   : > { %5284 = vmatpush2.bf16.msra.mxu0 %v6750_v47  ;;  %v6823_v47 = vld [vmem:[%s8059_s11 + $0x68] sm:$0xff]  }
 0x462   : > { %5285 = vmatprep.subr.bf16.mxu0 %v6755_v2  ;;  %5325 = vmatpush2.bf16.msra.mxu1 %v6798_v54  ;;  %v6825_v2 = vld [vmem:[%s8059_s11 + $0x60] sm:$0xff]   ;;  %v3248_v54 = vrot.slane %v7932_v9, %v1248_v59 }
 0x463   : > { %5326 = vmatprep.subr.bf16.mxu1 %v6803_v51 }
 0x465   : > { %5286 = vmatpush2.bf16.msra.mxu0 %v6753_v35  ;;  %v6827_v35 = vld [vmem:[%s8059_s11 + $0x58] sm:$0xff]  }
 0x466   : > { %5287 = vmatprep.subr.bf16.mxu0 %v6758_v61  ;;  %5327 = vmatpush2.bf16.msra.mxu1 %v6801_v7  ;;  %v6829_v61 = vld [vmem:[%s8059_s11 + $0x50] sm:$0xff]  }
 0x467   : > { %5328 = vmatprep.subr.bf16.mxu1 %v6806_v41 }
 0x469   : > { %5288 = vmatpush2.bf16.msra.mxu0 %v6756_v19  ;;  %v3244_v19 = vrot.slane %v7932_v9, %v1244_v49 }
 0x46a   : > { %5289 = vmatprep.subr.bf16.mxu0 %v6761_v32  ;;  %5329 = vmatpush2.bf16.msra.mxu1 %v6804_v20 }
 0x46b   : > { %5330 = vmatprep.subr.bf16.mxu1 %v6809_v16 }
 0x46d   : > { %5290 = vmatpush2.bf16.msra.mxu0 %v6759_v60 }
 0x46e   : > { %5291 = vmatprep.subr.bf16.mxu0 %v6764_v56  ;;  %5331 = vmatpush2.bf16.msra.mxu1 %v6807_v38 }
 0x46f   : > { %5332 = vmatprep.subr.bf16.mxu1 %v6812_v62 }
 0x471   : > { %5292 = vmatpush2.bf16.msra.mxu0 %v6762_v4 }
 0x472   : > { %5293 = vmatprep.subr.bf16.mxu0 %v6767_v46  ;;  %5333 = vmatpush2.bf16.msra.mxu1 %v6810_v29 }
 0x473   : > { %5334 = vmatprep.subr.bf16.mxu1 %v6815_v50 }
 0x475   : > { %5294 = vmatpush2.bf16.msra.mxu0 %v6765_v39 }
 0x476   : > { %5295 = vmatprep.subr.bf16.mxu0 %v6770_v53  ;;  %5335 = vmatpush2.bf16.msra.mxu1 %v6813_v8 }
 0x477   : > { %5336 = vmatprep.subr.bf16.mxu1 %v6818_v10 }
 0x479   : > { %5296 = vmatpush2.bf16.msra.mxu0 %v6768_v6 }
 0x47a   : > { %6142 = vmatprep.subr.bf16.mxu0 %v6819_v24 }
 0x47c   : > { %v4649_v33 = vpop.f32.mrf.mxu0  ;;  %v4690_v31 = vpop.f32.mrf.mxu1 }
 0x47d   : > { %v4650_v63 = vadd.f32 %v4649_v33, %v7938_v55 }
 0x47e   : > { %v4651_v17 = vpop.f32.mrf.mxu0  ;;  %v4692_v45 = vpop.f32.mrf.mxu1 }
 0x47f   : > { %v4691_v52 = vadd.f32 %v4690_v31, %v4650_v63  ;;  %v4652_v28 = vadd.f32 %v4651_v17, %v7940_v36  ;;  %v6816_v36 = vld [vmem:[#allocation7 + $0x180] ss:$8 sps:$4 sm:$0xff]  }
 0x480   : > { %v4653_v37 = vpop.f32.mrf.mxu0  ;;  %v4694_v22 = vpop.f32.mrf.mxu1  ;;  %5337 = vmatpush2.bf16.msra.mxu1 %v6816_v36 }
 0x481   : > { %v4693_v0 = vadd.f32 %v4692_v45, %v4652_v28  ;;  %v4861_v1 = vmax.f32 %v4691_v52, 0.0  ;;  %v6831_v28 = vld [vmem:[%s8059_s11 + $0x48] sm:$0xff]   ;;  %v6833_v22 = vld [vmem:[%s8059_s11 + $0x40] sm:$0xff]  }
 0x482   : > { %v4654_v5 = vpop.f32.mrf.mxu0  ;;  %v4695_v18 = vpop.f32.mrf.mxu1  ;;  %v6832_v37 = vld [vmem:[%s8059_s11 + $0x8] sm:$0xff]  }
 0x483   : > { %v4862_v40 = vmax.f32 %v4693_v0, 0.0  ;;  %v4865_v55 = vpack.c.bf16 %v4861_v1, %v4861_v1  ;;  %v6834_v0 = vld [vmem:[%s8059_s11] sm:$0xff]  }
 0x484   : > { %v4933_v1 = vld [vmem:[%s8058_s10] sm:$0x3] }
 0x485   : > { %v4866_v34 = vpack.c.bf16 %v4862_v40, %v4862_v40  ;;  %v4938_v5 = vrot.slane %v4933_v1, %v7457_v48  ;;  %v4942_v18 = vrot.slane %v4933_v1, %v7466_v57  ;;  %v6083_v57 = vld [vmem:[%s8060_s12] ss:$0 sm:$0xff] }
 0x487   : > { %5297 = vmatprep.mubr.bf16.mxu0 %v4866_v34 }
 0x488   : > { %5298 = vmatmul.mubr.bf16.vlgmr.msra.gmra.mxu0 %v4865_v55 }
 0x489   : > { %6143 = vmatpush3.bf16.msra.mxu0 %v6820_v21 }
 0x48a   : > { %6144 = vmatprep.subr.bf16.mxu0 %v6821_v11 }
 0x48d   : > { %6145 = vmatpush3.bf16.msra.mxu0 %v6822_v26 }
 0x48e   : > { %6146 = vmatprep.subr.bf16.mxu0 %v6823_v47 }
 0x491   : > { %6147 = vmatpush3.bf16.msra.mxu0 %v6824_v12 }
 0x492   : > { %6148 = vmatprep.subr.bf16.mxu0 %v6825_v2 }
 0x495   : > { %6149 = vmatpush3.bf16.msra.mxu0 %v6826_v13 }
 0x496   : > { %6150 = vmatprep.subr.bf16.mxu0 %v6827_v35 }
 0x499   : > { %6151 = vmatpush3.bf16.msra.mxu0 %v6828_v3 }
 0x49a   : > { %6152 = vmatprep.subr.bf16.mxu0 %v6829_v61 }
 0x49d   : > { %6153 = vmatpush3.bf16.msra.mxu0 %v6830_v42 }
 0x49e   : > { %6154 = vmatprep.subr.bf16.mxu0 %v6831_v28 }
 0x4a1   : > { %6155 = vmatpush3.bf16.msra.mxu0 %v6832_v37 }
 0x4a2   : > { %6156 = vmatprep.subr.bf16.mxu0 %v6833_v22 }
 0x4a5   : > { %6157 = vmatpush3.bf16.msra.mxu0 %v6834_v0 }
 0x4bc   : > { %v4731_v43 = vpop.f32.mrf.mxu0  ;;  %v4772_v23 = vpop.f32.mrf.mxu1 }
 0x4bd   : > { %v4732_v32 = vadd.f32 %v4731_v43, %v3244_v19 }
 0x4be   : > { %v4733_v14 = vpop.f32.mrf.mxu0  ;;  %v4774_v30 = vpop.f32.mrf.mxu1 }
 0x4bf   : > { %v4734_v51 = vadd.f32 %v4733_v14, %v3248_v54  ;;  %v4773_v60 = vadd.f32 %v4772_v23, %v4732_v32 }
 0x4c0   : > { %v4735_v27 = vpop.f32.mrf.mxu0  ;;  %v4776_v58 = vpop.f32.mrf.mxu1 }
 0x4c1   : > { %v4775_v56 = vadd.f32 %v4774_v30, %v4734_v51 }
 0x4c2   : > { %v4736_v15 = vpop.f32.mrf.mxu0  ;;  %v4777_v25 = vpop.f32.mrf.mxu1 }
 0x4fc   : > { %v4813_v7 = vpop.f32.mrf.mxu0 }
 0x4fd   : > { %v4814_v41 = vadd.f32 %v4813_v7, %v4773_v60  ;;  %v4854_v4 = vpop.f32.mrf.mxu1 }
 0x4fe   : > { %v4815_v20 = vpop.f32.mrf.mxu0 }
 0x4ff   : > { %v4855_v46 = vadd.f32 %v4854_v4, %v4814_v41  ;;  %v4816_v16 = vadd.f32 %v4815_v20, %v4775_v56  ;;  %v4856_v39 = vpop.f32.mrf.mxu1 }
 0x500   : > { %v4817_v38 = vpop.f32.mrf.mxu0 }
 0x501   : > { %v4857_v53 = vadd.f32 %v4856_v39, %v4816_v16  ;;  %v4858_v6 = vpop.f32.mrf.mxu1  ;;  %v4863_v33 = vmax.f32 %v4855_v46, 0.0 }
 0x502   : > { %v4818_v49 = vpop.f32.mrf.mxu0 }
 0x503   : > { %v4864_v31 = vmax.f32 %v4857_v53, 0.0  ;;  %v4859_v44 = vpop.f32.mrf.mxu1  ;;  %v4867_v59 = vpack.c.bf16 %v4863_v33, %v4863_v33 }
 0x505   : > { %v4868_v63 = vpack.c.bf16 %v4864_v31, %v4864_v31 }
 0x507   : > { %5338 = vmatprep.mubr.bf16.mxu1 %v4868_v63 }
 0x508   : > { %5339 = vmatmul.mubr.bf16.vlgmr.msra.gmra.mxu1 %v4867_v59 }
 0x548   : > { %v5299_v9 = vpop.f32.mrf.mxu0 }
 0x549   : > { %v5300_v62 = vadd.f32 %v5299_v9, %v4938_v5 }
 0x54a   : > { %v5301_v17 = vpop.f32.mrf.mxu0 }
 0x54b   : > { %v5302_v29 = vadd.f32 %v5301_v17, %v4942_v18 }
 0x54c   : > { %v5303_v45 = vpop.f32.mrf.mxu0 }
 0x54e   : > { %v5304_v52 = vpop.f32.mrf.mxu0 }
 0x5c8   : > { %v5340_v40 = vpop.f32.mrf.mxu1 }
 0x5c9   : > { %v5341_v34 = vadd.f32 %v5340_v40, %v5300_v62 }
 0x5ca   : > { %v5342_v8 = vpop.f32.mrf.mxu1 }
 0x5cb   : > { %v5343_v50 = vadd.f32 %v5342_v8, %v5302_v29  ;;  %v5347_v55 = vmax.f32 %v5341_v34, 0.0 }
 0x5cc   : > { %v5344_v10 = vpop.f32.mrf.mxu1 }
 0x5cd   : > { %v5348_v36 = vmax.f32 %v5343_v50, 0.0  ;;  %v5349_v14 = vpack.c.bf16 %v5347_v55, %v5347_v55 }
 0x5ce   : > { %v5345_v43 = vpop.f32.mrf.mxu1 }
 0x5cf   : > { %v5350_v23 = vpack.c.bf16 %v5348_v36, %v5348_v36 }
 0x5d1   : > { %5518 = vmatprep.mubr.bf16.mxu0 %v5350_v23 }
 0x5d2   : > { %5519 = vmatmul.mubr.bf16.vlgmr.msra.gmra.mxu0 %v5349_v14 }
 0x692   : > { %v6158_v48 = vpop.f32.mrf.mxu0 }
 0x694   : > { %v6159_v30 = vpop.f32.mrf.mxu0 }
 0x695   : > { %v6160_v27 = vadd.f32 %v6159_v30, %v6158_v48 }
 0x696   : > { %v6161_v58 = vpop.f32.mrf.mxu0 }
 0x697   : > { %v5521_v15 = vadd.f32 %v6160_v27, %v6083_v57 }
 0x698   : > { %v6162_v25 = vpop.f32.mrf.mxu0 }
 0x699   : > { %5526 = vst [vmem:[%s480_s21] sm:$0x3] %v5521_v15 }
 0x69a   : > { %6926 = shalt.err (!%p6923_p11)
}
 0x69b   : > { %s6927_s22 = scalar_lea.hbm %s8013_s23, 32  ;;  %s6931_s27 = scalar_lea.hbm %s8061_s13, 64 }
 0x69c   : > { %p6928_p0 = scmp.ne.s32.totalorder %s8013_s23, %s6927_s22  ;;  %p6932_p3 = scmp.lt.s32.totalorder %s8013_s23, %s8061_s13 }
 0x69d   : > { %p6933_p2 = scmp.lt.s32.totalorder %s6931_s27, %s6927_s22 }
 0x69e   : > { %p6929_p1 = pnand %p6928_p0, %p7102_p5 }
 0x69f   : > { %p6934_p4 = por %p6933_p2, %p6932_p3 }
 0x6a0   : > { %p6930_p13 = pneg %p6929_p1 }
 0x6a2   : > { %p6935_p10 = pnand %p6934_p4, %p6930_p13 }
 0x6a4   : > { %6938 = shalt.err (!%p6935_p10)
}
 0x6a5   : > { %6254 = dma.vmem_to_hbm [thread:$0]  (%p7102_p5), %s5542_s25, 32, %s8013_s23, %s5528_s20  }
 0x6a6 PF: > { %s8081_s19 = sld [smem:[#allocation12_spill]]  ;;  %p6276_p12 = scmp.ge.s32.totalorder %s6981_s28, 2 }
 0x6a7   : > { %s8082_s30 = sld [smem:[#allocation16_spill]] }
 0x6ac   : > { %s5553_s29 = sand.u32 1, %s8081_s19  }
 0x6ad   : > { %p8083_p7 = scmp.ne.s32.totalorder %s8082_s30, 0  ;;  %s5554_s24 = scalar_lea.sflag [#allocation4], %s5553_s29 }
 0x6af   : > { %p6267_p6 = pnand %p6276_p12, %p8083_p7 }
 0x6b1   : > { %p6268_p9 = pneg %p6267_p6 }
 0x6b3   : > { %6964 = dma.done.wait (%p6268_p9), %s5554_s24, 32  }
 0x6b4   : > { %6966 = vsyncadd (%p6268_p9), %s5554_s24, 4294967264  ;;  %s8084_s28 = sld [smem:[#allocation14_spill]]  ;;  %s8087_s25 = smov %s6973_s26 }
 0x6b5   : > { %s8085_s17 = sld [smem:[#allocation13_spill]] }
 0x6b6   : > { %s8086_s27 = sld [smem:[#allocation15_spill]] }
 0x6ba   : > { %p25_p8 = scmp.ge.s32.totalorder %s8084_s28, 4  }
 0x6bb   : > { %s8088_s26 = smov %s8085_s17 }
 0x6bc   :  { %27 = sbr.rel (!%p25_p8) target bundleno = 5 (0x5), region = 120 }
 0x6c1   :  { %5559 = vsyncpa [#allocation3], 1 }
 0x6c2   :  { %5561 = vsyncpa [#allocation3 + $0x1], 1 }
 0x6c3   :  { %5562 = vsyncpa [#allocation6], 1 }
 0x6c4   :  { %5563 = vsyncpa [#allocation4], 1 }
 0x6c5   :  { %5565 = vsyncpa [#allocation4 + $0x1], 1 }

</bundles_post_ra>
